<compile_context>
chip_gen: v7x
topology: tpu7x:2x2x1
jax: 0.10.0
libtpu: 0.0.40
codegen_flags: <defaults>
</compile_context>

<pallas_src>
import numpy as np
import jax
import jax.numpy as jnp
from jax import lax
from jax.experimental import pallas as pl
from jax.experimental.pallas import tpu as pltpu

EPS = 1e-5


# ---------------------------------------------------------------------------
# In-kernel building blocks (traced inline, all shapes static)
# ---------------------------------------------------------------------------
def _conv_pool_block(x, pad_ref, w_ref, b_ref):
    """conv3x3(pad=1) + folded-BN bias + ReLU + 2x2 maxpool for one sample.

    x:       (H, W, Cin)     f32 value
    pad_ref: (H+2, W+2, Cin) f32 VMEM scratch (halo padding)
    w_ref:   (9, Cin, Cout)  bf16 ref (3x3 taps flattened, BN folded in)
    b_ref:   (1, Cout)       f32 ref
    returns  (H//2, W//2, Cout) f32 value
    """
    H, W, Cin = x.shape
    Cout = w_ref.shape[-1]
    Hp, Wp = H // 2, W // 2

    # Zero-pad halo inside VMEM (no HBM round trip, no jnp.pad).
    pad_ref[...] = jnp.zeros(pad_ref.shape, pad_ref.dtype)
    pad_ref[1:H + 1, 1:W + 1, :] = x

    # 9 per-tap whole-plane matmuls, bf16 operands, f32 accumulator.
    acc = jnp.zeros((H * W, Cout), jnp.float32)
    for dy in range(3):
        for dx in range(3):
            plane = pad_ref[dy:dy + H, dx:dx + W, :].reshape(H * W, Cin)
            acc = acc + jnp.dot(plane.astype(jnp.bfloat16), w_ref[dy * 3 + dx],
                                preferred_element_type=jnp.float32)

    # Bias + ReLU once on the full plane (hoisted out of any per-row loop).
    y = jnp.maximum(acc + b_ref[...], 0.0)                    # (H*W, Cout)

    # 2x2 max-pool fully in-register.
    y = y.reshape(Hp, 2 * W, Cout)
    y = jnp.maximum(y[:, :W, :], y[:, W:, :])                 # pool along H -> (Hp, W, Cout)
    z = y.reshape(Hp * Wp, 2, Cout)
    y = jnp.maximum(z[:, 0, :], z[:, 1, :])                   # pool along W -> (Hp*Wp, Cout)
    return y.reshape(Hp, Wp, Cout)


def _dense(x, w_ref, b_ref, relu):
    """x: (1, Din) f32; w_ref: (Din, Dout) bf16; b_ref: (1, Dout) f32."""
    y = jnp.dot(x.astype(jnp.bfloat16), w_ref[...],
                preferred_element_type=jnp.float32) + b_ref[...]
    return jnp.maximum(y, 0.0) if relu else y


def _fused_net_kernel(img_ref, stat_ref,
                      w1, b1, w2, b2, w3, b3, w4, b4,
                      ws1, bs1, ws2, bs2,
                      wc1a, wc1b, bc1, wc2, bc2, wc3, bc3,
                      out_ref,
                      pad1, pad2, pad3, pad4):
    # ----- CNN branch (one sample per grid step) -----
    x = img_ref[0]                                   # (H, W, C0) f32
    x = _conv_pool_block(x, pad1, w1, b1)
    x = _conv_pool_block(x, pad2, w2, b2)
    x = _conv_pool_block(x, pad3, w3, b3)
    x = _conv_pool_block(x, pad4, w4, b4)
    Hf, Wf, Cf = x.shape
    if Hf == 1 and Wf == 1:
        img_flat = x.reshape(1, Cf)                  # 1x1 spatial: NCHW/NHWC flatten identical
    else:
        # TODO(synk): NCHW flatten order for feat > 1 (untested path at demo shapes)
        img_flat = jnp.transpose(x, (2, 0, 1)).reshape(1, Cf * Hf * Wf)

    # ----- stat branch (Dropout = identity at inference) -----
    s = stat_ref[0]                                  # (1, NSTAT)
    s = _dense(s, ws1, bs1, relu=True)
    s = _dense(s, ws2, bs2, relu=True)

    # ----- combined head; layer-1 weight split along Din avoids an in-kernel concat -----
    h = jnp.dot(img_flat.astype(jnp.bfloat16), wc1a[...], preferred_element_type=jnp.float32)
    h = h + jnp.dot(s.astype(jnp.bfloat16), wc1b[...], preferred_element_type=jnp.float32)
    h = jnp.maximum(h + bc1[...], 0.0)
    h = _dense(h, wc2, bc2, relu=True)
    out = _dense(h, wc3, bc3, relu=False)
    out_ref[0] = out.astype(out_ref.dtype)


# ---------------------------------------------------------------------------
# Wrapper: one pallas_call for the whole network
# ---------------------------------------------------------------------------
def _resident_spec(arr):
    """Full-array block, same block for every grid step (stays VMEM-resident)."""
    zeros = (0,) * arr.ndim
    return pl.BlockSpec(arr.shape, lambda b: zeros)


def custom_net_forward(params, img_nchw, stat_features):
    B, C, H, W = img_nchw.shape
    num_stat = stat_features.shape[-1]

    # host/XLA-side prep: layout + bf16 casts of BN-folded weights
    img_nhwc = jnp.transpose(img_nchw, (0, 2, 3, 1)).astype(jnp.float32)
    stat3 = stat_features.astype(jnp.float32).reshape(B, 1, num_stat)

    conv_inputs, conv_cin = [], []
    for (w, b) in params["conv"]:
        kh, kw, cin, cout = w.shape
        conv_inputs += [w.reshape(kh * kw, cin, cout).astype(jnp.bfloat16),
                        b.reshape(1, cout).astype(jnp.float32)]
        conv_cin.append(cin)

    (ws1, bs1), (ws2, bs2) = params["stat"]
    (wc1, bc1), (wc2, bc2), (wc3, bc3) = params["comb"]
    stat_out = ws2.shape[1]
    cnn_out = wc1.shape[0] - stat_out
    num_classes = wc3.shape[1]

    lin_inputs = [
        ws1.astype(jnp.bfloat16), bs1.reshape(1, -1),
        ws2.astype(jnp.bfloat16), bs2.reshape(1, -1),
        wc1[:cnn_out].astype(jnp.bfloat16),          # img part of comb layer 1
        wc1[cnn_out:].astype(jnp.bfloat16),          # stat part of comb layer 1
        bc1.reshape(1, -1),
        wc2.astype(jnp.bfloat16), bc2.reshape(1, -1),
        wc3.astype(jnp.bfloat16), bc3.reshape(1, -1),
    ]

    operands = [img_nhwc, stat3] + conv_inputs + lin_inputs
    in_specs = ([pl.BlockSpec((1, H, W, C), lambda b: (b, 0, 0, 0)),
                 pl.BlockSpec((1, 1, num_stat), lambda b: (b, 0, 0))]
                + [_resident_spec(a) for a in conv_inputs + lin_inputs])
    out_specs = pl.BlockSpec((1, 1, num_classes), lambda b: (b, 0, 0))

    # per-conv-layer halo-padded input scratch (all a few KB; total VMEM use ~2 MB)
    scratch = [pltpu.VMEM((H // (2 ** i) + 2, W // (2 ** i) + 2, cin), jnp.float32)
               for i, cin in enumerate(conv_cin)]

    out = pl.pallas_call(
        _fused_net_kernel,
        out_shape=jax.ShapeDtypeStruct((B, 1, num_classes), jnp.float32),
        grid=(B,),
        in_specs=in_specs,
        out_specs=out_specs,
        scratch_shapes=scratch,
        compiler_params=pltpu.CompilerParams(
            dimension_semantics=("parallel",)),      # batch is independent -> v7x 2-TC split
    )(*operands)
    return out.reshape(B, num_classes)


# ---------------------------------------------------------------------------
# Parameter init (deterministic) + eval-mode BN folding
# ---------------------------------------------------------------------------
def _fold_bn(w, b, gamma, beta, mean, var):
    scale = gamma / jnp.sqrt(var + EPS)        # (Cout,)
    return w * scale, b * scale + (beta - mean * scale)


def init_params(key, img_channels, img_size, num_stat, num_classes):
    conv_channels = [img_channels, 32, 64, 128, 256]
    params = {"conv": [], "stat": [], "comb": []}

    def bn(k, c):
        k1, k2, k3, k4 = jax.random.split(k, 4)
        gamma = 1.0 + 0.1 * jax.random.normal(k1, (c,), jnp.float32)
        beta = 0.1 * jax.random.normal(k2, (c,), jnp.float32)
        mean = 0.1 * jax.random.normal(k3, (c,), jnp.float32)
        var = 1.0 + 0.1 * jnp.abs(jax.random.normal(k4, (c,), jnp.float32))
        return gamma, beta, mean, var

    for i in range(4):
        cin, cout = conv_channels[i], conv_channels[i + 1]
        key, kw, kb, kbn = jax.random.split(key, 4)
        w = jax.random.normal(kw, (3, 3, cin, cout), jnp.float32) * np.sqrt(2.0 / (9 * cin))
        b = 0.01 * jax.random.normal(kb, (cout,), jnp.float32)
        params["conv"].append(_fold_bn(w, b, *bn(kbn, cout)))

    feat = img_size // (2 ** 4)
    cnn_out = 256 * feat * feat

    def lin(k, din, dout, with_bn):
        k, kw, kb, kbn = jax.random.split(k, 4)
        w = jax.random.normal(kw, (din, dout), jnp.float32) * np.sqrt(2.0 / din)
        b = 0.01 * jax.random.normal(kb, (dout,), jnp.float32)
        if with_bn:
            w, b = _fold_bn(w, b, *bn(kbn, dout))
        return k, (w, b)

    key, p = lin(key, num_stat, 64, True); params["stat"].append(p)
    key, p = lin(key, 64, 128, True); params["stat"].append(p)
    key, p = lin(key, cnn_out + 128, 512, True); params["comb"].append(p)
    key, p = lin(key, 512, 256, True); params["comb"].append(p)
    key, p = lin(key, 256, num_classes, False); params["comb"].append(p)
    return params


# ---------------------------------------------------------------------------
# Pure-JAX f32 reference for validation
# ---------------------------------------------------------------------------
def reference_forward(params, img_nchw, stat_features):
    x = jnp.transpose(img_nchw, (0, 2, 3, 1))
    for (w, b) in params["conv"]:
        y = lax.conv_general_dilated(x, w, (1, 1), "SAME",
                                     dimension_numbers=("NHWC", "HWIO", "NHWC"),
                                     precision=lax.Precision.HIGHEST)
        y = jnp.maximum(y + b, 0.0)
        x = lax.reduce_window(y, -jnp.inf, lax.max, (1, 2, 2, 1), (1, 2, 2, 1), "VALID")
    x = jnp.transpose(x, (0, 3, 1, 2)).reshape(x.shape[0], -1)
    s = stat_features
    for (w, b) in params["stat"]:
        s = jnp.maximum(s @ w + b, 0.0)
    h = jnp.concatenate([x, s], axis=1)
    (w1, b1), (w2, b2), (w3, b3) = params["comb"]
    h = jnp.maximum(h @ w1 + b1, 0.0)
    h = jnp.maximum(h @ w2 + b2, 0.0)
    return h @ w3 + b3


if __name__ == "__main__":
    B, C, S = 2, 4, 16           # batch, img_channels, img_size
    NUM_STAT, NUM_CLASSES = 32, 4
    key = jax.random.PRNGKey(0)
    kp, ki, ks = jax.random.split(key, 3)
    params = init_params(kp, C, S, NUM_STAT, NUM_CLASSES)
    img = jax.random.normal(ki, (B, C, S, S), jnp.float32)     # NCHW like PyTorch
    stat = jax.random.normal(ks, (B, NUM_STAT), jnp.float32)

    fwd = jax.jit(custom_net_forward)
    out = jax.block_until_ready(fwd(params, img, stat))
    ref = reference_forward(params, img, stat)

    assert out.shape == (B, NUM_CLASSES)
    # Kernel uses bf16 MXU operands with f32 accumulation -> compare vs f32 reference
    # with a modest tolerance (structural bugs would be O(1) off).
    np.testing.assert_allclose(np.asarray(out), np.asarray(ref), atol=5e-2, rtol=5e-2)
    print("KERNEL_OK")
</pallas_src>

<mosaic_0001>
module attributes {stable_mosaic.version = 11 : i64} {
  func.func @_fused_net_kernel(%arg0: i32, %arg1: memref<1x16x16x4xf32, #tpu.memory_space<vmem>>, %arg2: memref<1x1x32xf32, #tpu.memory_space<vmem>>, %arg3: memref<9x4x32xbf16, #tpu.memory_space<vmem>>, %arg4: memref<1x32xf32, #tpu.memory_space<vmem>>, %arg5: memref<9x32x64xbf16, #tpu.memory_space<vmem>>, %arg6: memref<1x64xf32, #tpu.memory_space<vmem>>, %arg7: memref<9x64x128xbf16, #tpu.memory_space<vmem>>, %arg8: memref<1x128xf32, #tpu.memory_space<vmem>>, %arg9: memref<9x128x256xbf16, #tpu.memory_space<vmem>>, %arg10: memref<1x256xf32, #tpu.memory_space<vmem>>, %arg11: memref<32x64xbf16, #tpu.memory_space<vmem>>, %arg12: memref<1x64xf32, #tpu.memory_space<vmem>>, %arg13: memref<64x128xbf16, #tpu.memory_space<vmem>>, %arg14: memref<1x128xf32, #tpu.memory_space<vmem>>, %arg15: memref<256x512xbf16, #tpu.memory_space<vmem>>, %arg16: memref<128x512xbf16, #tpu.memory_space<vmem>>, %arg17: memref<1x512xf32, #tpu.memory_space<vmem>>, %arg18: memref<512x256xbf16, #tpu.memory_space<vmem>>, %arg19: memref<1x256xf32, #tpu.memory_space<vmem>>, %arg20: memref<256x4xbf16, #tpu.memory_space<vmem>>, %arg21: memref<1x4xf32, #tpu.memory_space<vmem>>, %arg22: memref<1x1x4xf32, #tpu.memory_space<vmem>>, %arg23: memref<18x18x4xf32, #tpu.memory_space<vmem>>, %arg24: memref<10x10x32xf32, #tpu.memory_space<vmem>>, %arg25: memref<6x6x64xf32, #tpu.memory_space<vmem>>, %arg26: memref<4x4x128xf32, #tpu.memory_space<vmem>>) attributes {dimension_semantics = [#tpu.dimension_semantics<parallel>], iteration_bounds = array<i64: 2>, scalar_prefetch = 0 : i64, scratch_operands = 4 : i64, tpu.core_type = #tpu.core_type<tc>, window_params = [{transform_indices = @transform_0, window_bounds = array<i64: 1, 16, 16, 4>}, {transform_indices = @transform_1, window_bounds = array<i64: 1, 1, 32>}, {pipeline_mode = #tpu.pipeline_mode<synchronous>, transform_indices = @transform_2, window_bounds = array<i64: 9, 4, 32>}, {pipeline_mode = #tpu.pipeline_mode<synchronous>, transform_indices = @transform_3, window_bounds = array<i64: 1, 32>}, {pipeline_mode = #tpu.pipeline_mode<synchronous>, transform_indices = @transform_4, window_bounds = array<i64: 9, 32, 64>}, {pipeline_mode = #tpu.pipeline_mode<synchronous>, transform_indices = @transform_5, window_bounds = array<i64: 1, 64>}, {pipeline_mode = #tpu.pipeline_mode<synchronous>, transform_indices = @transform_6, window_bounds = array<i64: 9, 64, 128>}, {pipeline_mode = #tpu.pipeline_mode<synchronous>, transform_indices = @transform_7, window_bounds = array<i64: 1, 128>}, {pipeline_mode = #tpu.pipeline_mode<synchronous>, transform_indices = @transform_8, window_bounds = array<i64: 9, 128, 256>}, {pipeline_mode = #tpu.pipeline_mode<synchronous>, transform_indices = @transform_9, window_bounds = array<i64: 1, 256>}, {pipeline_mode = #tpu.pipeline_mode<synchronous>, transform_indices = @transform_10, window_bounds = array<i64: 32, 64>}, {pipeline_mode = #tpu.pipeline_mode<synchronous>, transform_indices = @transform_11, window_bounds = array<i64: 1, 64>}, {pipeline_mode = #tpu.pipeline_mode<synchronous>, transform_indices = @transform_12, window_bounds = array<i64: 64, 128>}, {pipeline_mode = #tpu.pipeline_mode<synchronous>, transform_indices = @transform_13, window_bounds = array<i64: 1, 128>}, {pipeline_mode = #tpu.pipeline_mode<synchronous>, transform_indices = @transform_14, window_bounds = array<i64: 256, 512>}, {pipeline_mode = #tpu.pipeline_mode<synchronous>, transform_indices = @transform_15, window_bounds = array<i64: 128, 512>}, {pipeline_mode = #tpu.pipeline_mode<synchronous>, transform_indices = @transform_16, window_bounds = array<i64: 1, 512>}, {pipeline_mode = #tpu.pipeline_mode<synchronous>, transform_indices = @transform_17, window_bounds = array<i64: 512, 256>}, {pipeline_mode = #tpu.pipeline_mode<synchronous>, transform_indices = @transform_18, window_bounds = array<i64: 1, 256>}, {pipeline_mode = #tpu.pipeline_mode<synchronous>, transform_indices = @transform_19, window_bounds = array<i64: 256, 4>}, {pipeline_mode = #tpu.pipeline_mode<synchronous>, transform_indices = @transform_20, window_bounds = array<i64: 1, 4>}, {transform_indices = @transform_21, window_bounds = array<i64: 1, 1, 4>}]} {
    %c0 = arith.constant 0 : index
    %c0_0 = arith.constant 0 : index
    %c0_1 = arith.constant 0 : index
    %c0_2 = arith.constant 0 : index
    %0 = vector.load %arg1[%c0, %c0_0, %c0_1, %c0_2] : memref<1x16x16x4xf32, #tpu.memory_space<vmem>>, vector<1x16x16x4xf32>
    %1 = vector.shape_cast %0 : vector<1x16x16x4xf32> to vector<16x16x4xf32>
    %cst = arith.constant 0.000000e+00 : f32
    %2 = vector.broadcast %cst : f32 to vector<18x18x4xf32>
    %c0_3 = arith.constant 0 : index
    %c0_4 = arith.constant 0 : index
    %c0_5 = arith.constant 0 : index
    %3 = vector.load %arg23[%c0_3, %c0_4, %c0_5] : memref<18x18x4xf32, #tpu.memory_space<vmem>>, vector<18x18x4xf32>
    tpu.vector_store %arg23[%c0_3, %c0_4, %c0_5], %2 {strides = array<i32>} : memref<18x18x4xf32, #tpu.memory_space<vmem>>, vector<18x18x4xf32>,
    %c1 = arith.constant 1 : index
    %c1_6 = arith.constant 1 : index
    %c0_7 = arith.constant 0 : index
    %4 = vector.load %arg23[%c1, %c1_6, %c0_7] : memref<18x18x4xf32, #tpu.memory_space<vmem>>, vector<16x16x4xf32>
    tpu.vector_store %arg23[%c1, %c1_6, %c0_7], %1 {strides = array<i32>} : memref<18x18x4xf32, #tpu.memory_space<vmem>>, vector<16x16x4xf32>,
    %cst_8 = arith.constant 0.000000e+00 : f32
    %5 = vector.broadcast %cst_8 : f32 to vector<256x32xf32>
    %c0_9 = arith.constant 0 : index
    %c0_10 = arith.constant 0 : index
    %c0_11 = arith.constant 0 : index
    %6 = vector.load %arg23[%c0_9, %c0_10, %c0_11] : memref<18x18x4xf32, #tpu.memory_space<vmem>>, vector<16x16x4xf32>
    %7 = vector.shape_cast %6 : vector<16x16x4xf32> to vector<256x4xf32>
    %8 = arith.truncf %7 : vector<256x4xf32> to vector<256x4xbf16>
    %c0_12 = arith.constant 0 : index
    %c0_13 = arith.constant 0 : index
    %c0_14 = arith.constant 0 : index
    %9 = vector.load %arg3[%c0_12, %c0_13, %c0_14] : memref<9x4x32xbf16, #tpu.memory_space<vmem>>, vector<1x4x32xbf16>
    %10 = vector.shape_cast %9 : vector<1x4x32xbf16> to vector<4x32xbf16>
    %cst_15 = arith.constant dense<0.000000e+00> : vector<256x32xf32>
    %11 = tpu.matmul %8, %10, %cst_15 {dimension_numbers = #tpu.dot_dimension_numbers<[1], [0], [0], [1], [0, 0, 1, 1], [], []>} : vector<256x4xbf16>, vector<4x32xbf16>, vector<256x32xf32> -> vector<256x32xf32>
    %12 = arith.addf %5, %11 : vector<256x32xf32>
    %c0_16 = arith.constant 0 : index
    %c1_17 = arith.constant 1 : index
    %c0_18 = arith.constant 0 : index
    %13 = vector.load %arg23[%c0_16, %c1_17, %c0_18] : memref<18x18x4xf32, #tpu.memory_space<vmem>>, vector<16x16x4xf32>
    %14 = vector.shape_cast %13 : vector<16x16x4xf32> to vector<256x4xf32>
    %15 = arith.truncf %14 : vector<256x4xf32> to vector<256x4xbf16>
    %c1_19 = arith.constant 1 : index
    %c0_20 = arith.constant 0 : index
    %c0_21 = arith.constant 0 : index
    %16 = vector.load %arg3[%c1_19, %c0_20, %c0_21] : memref<9x4x32xbf16, #tpu.memory_space<vmem>>, vector<1x4x32xbf16>
    %17 = vector.shape_cast %16 : vector<1x4x32xbf16> to vector<4x32xbf16>
    %cst_22 = arith.constant dense<0.000000e+00> : vector<256x32xf32>
    %18 = tpu.matmul %15, %17, %cst_22 {dimension_numbers = #tpu.dot_dimension_numbers<[1], [0], [0], [1], [0, 0, 1, 1], [], []>} : vector<256x4xbf16>, vector<4x32xbf16>, vector<256x32xf32> -> vector<256x32xf32>
    %19 = arith.addf %12, %18 : vector<256x32xf32>
    %c0_23 = arith.constant 0 : index
    %c2 = arith.constant 2 : index
    %c0_24 = arith.constant 0 : index
    %20 = vector.load %arg23[%c0_23, %c2, %c0_24] : memref<18x18x4xf32, #tpu.memory_space<vmem>>, vector<16x16x4xf32>
    %21 = vector.shape_cast %20 : vector<16x16x4xf32> to vector<256x4xf32>
    %22 = arith.truncf %21 : vector<256x4xf32> to vector<256x4xbf16>
    %c2_25 = arith.constant 2 : index
    %c0_26 = arith.constant 0 : index
    %c0_27 = arith.constant 0 : index
    %23 = vector.load %arg3[%c2_25, %c0_26, %c0_27] : memref<9x4x32xbf16, #tpu.memory_space<vmem>>, vector<1x4x32xbf16>
    %24 = vector.shape_cast %23 : vector<1x4x32xbf16> to vector<4x32xbf16>
    %cst_28 = arith.constant dense<0.000000e+00> : vector<256x32xf32>
    %25 = tpu.matmul %22, %24, %cst_28 {dimension_numbers = #tpu.dot_dimension_numbers<[1], [0], [0], [1], [0, 0, 1, 1], [], []>} : vector<256x4xbf16>, vector<4x32xbf16>, vector<256x32xf32> -> vector<256x32xf32>
    %26 = arith.addf %19, %25 : vector<256x32xf32>
    %c1_29 = arith.constant 1 : index
    %c0_30 = arith.constant 0 : index
    %c0_31 = arith.constant 0 : index
    %27 = vector.load %arg23[%c1_29, %c0_30, %c0_31] : memref<18x18x4xf32, #tpu.memory_space<vmem>>, vector<16x16x4xf32>
    %28 = vector.shape_cast %27 : vector<16x16x4xf32> to vector<256x4xf32>
    %29 = arith.truncf %28 : vector<256x4xf32> to vector<256x4xbf16>
    %c3 = arith.constant 3 : index
    %c0_32 = arith.constant 0 : index
    %c0_33 = arith.constant 0 : index
    %30 = vector.load %arg3[%c3, %c0_32, %c0_33] : memref<9x4x32xbf16, #tpu.memory_space<vmem>>, vector<1x4x32xbf16>
    %31 = vector.shape_cast %30 : vector<1x4x32xbf16> to vector<4x32xbf16>
    %cst_34 = arith.constant dense<0.000000e+00> : vector<256x32xf32>
    %32 = tpu.matmul %29, %31, %cst_34 {dimension_numbers = #tpu.dot_dimension_numbers<[1], [0], [0], [1], [0, 0, 1, 1], [], []>} : vector<256x4xbf16>, vector<4x32xbf16>, vector<256x32xf32> -> vector<256x32xf32>
    %33 = arith.addf %26, %32 : vector<256x32xf32>
    %c1_35 = arith.constant 1 : index
    %c1_36 = arith.constant 1 : index
    %c0_37 = arith.constant 0 : index
    %34 = vector.load %arg23[%c1_35, %c1_36, %c0_37] : memref<18x18x4xf32, #tpu.memory_space<vmem>>, vector<16x16x4xf32>
    %35 = vector.shape_cast %34 : vector<16x16x4xf32> to vector<256x4xf32>
    %36 = arith.truncf %35 : vector<256x4xf32> to vector<256x4xbf16>
    %c4 = arith.constant 4 : index
    %c0_38 = arith.constant 0 : index
    %c0_39 = arith.constant 0 : index
    %37 = vector.load %arg3[%c4, %c0_38, %c0_39] : memref<9x4x32xbf16, #tpu.memory_space<vmem>>, vector<1x4x32xbf16>
    %38 = vector.shape_cast %37 : vector<1x4x32xbf16> to vector<4x32xbf16>
    %cst_40 = arith.constant dense<0.000000e+00> : vector<256x32xf32>
    %39 = tpu.matmul %36, %38, %cst_40 {dimension_numbers = #tpu.dot_dimension_numbers<[1], [0], [0], [1], [0, 0, 1, 1], [], []>} : vector<256x4xbf16>, vector<4x32xbf16>, vector<256x32xf32> -> vector<256x32xf32>
    %40 = arith.addf %33, %39 : vector<256x32xf32>
    %c1_41 = arith.constant 1 : index
    %c2_42 = arith.constant 2 : index
    %c0_43 = arith.constant 0 : index
    %41 = vector.load %arg23[%c1_41, %c2_42, %c0_43] : memref<18x18x4xf32, #tpu.memory_space<vmem>>, vector<16x16x4xf32>
    %42 = vector.shape_cast %41 : vector<16x16x4xf32> to vector<256x4xf32>
    %43 = arith.truncf %42 : vector<256x4xf32> to vector<256x4xbf16>
    %c5 = arith.constant 5 : index
    %c0_44 = arith.constant 0 : index
    %c0_45 = arith.constant 0 : index
    %44 = vector.load %arg3[%c5, %c0_44, %c0_45] : memref<9x4x32xbf16, #tpu.memory_space<vmem>>, vector<1x4x32xbf16>
    %45 = vector.shape_cast %44 : vector<1x4x32xbf16> to vector<4x32xbf16>
    %cst_46 = arith.constant dense<0.000000e+00> : vector<256x32xf32>
    %46 = tpu.matmul %43, %45, %cst_46 {dimension_numbers = #tpu.dot_dimension_numbers<[1], [0], [0], [1], [0, 0, 1, 1], [], []>} : vector<256x4xbf16>, vector<4x32xbf16>, vector<256x32xf32> -> vector<256x32xf32>
    %47 = arith.addf %40, %46 : vector<256x32xf32>
    %c2_47 = arith.constant 2 : index
    %c0_48 = arith.constant 0 : index
    %c0_49 = arith.constant 0 : index
    %48 = vector.load %arg23[%c2_47, %c0_48, %c0_49] : memref<18x18x4xf32, #tpu.memory_space<vmem>>, vector<16x16x4xf32>
    %49 = vector.shape_cast %48 : vector<16x16x4xf32> to vector<256x4xf32>
    %50 = arith.truncf %49 : vector<256x4xf32> to vector<256x4xbf16>
    %c6 = arith.constant 6 : index
    %c0_50 = arith.constant 0 : index
    %c0_51 = arith.constant 0 : index
    %51 = vector.load %arg3[%c6, %c0_50, %c0_51] : memref<9x4x32xbf16, #tpu.memory_space<vmem>>, vector<1x4x32xbf16>
    %52 = vector.shape_cast %51 : vector<1x4x32xbf16> to vector<4x32xbf16>
    %cst_52 = arith.constant dense<0.000000e+00> : vector<256x32xf32>
    %53 = tpu.matmul %50, %52, %cst_52 {dimension_numbers = #tpu.dot_dimension_numbers<[1], [0], [0], [1], [0, 0, 1, 1], [], []>} : vector<256x4xbf16>, vector<4x32xbf16>, vector<256x32xf32> -> vector<256x32xf32>
    %54 = arith.addf %47, %53 : vector<256x32xf32>
    %c2_53 = arith.constant 2 : index
    %c1_54 = arith.constant 1 : index
    %c0_55 = arith.constant 0 : index
    %55 = vector.load %arg23[%c2_53, %c1_54, %c0_55] : memref<18x18x4xf32, #tpu.memory_space<vmem>>, vector<16x16x4xf32>
    %56 = vector.shape_cast %55 : vector<16x16x4xf32> to vector<256x4xf32>
    %57 = arith.truncf %56 : vector<256x4xf32> to vector<256x4xbf16>
    %c7 = arith.constant 7 : index
    %c0_56 = arith.constant 0 : index
    %c0_57 = arith.constant 0 : index
    %58 = vector.load %arg3[%c7, %c0_56, %c0_57] : memref<9x4x32xbf16, #tpu.memory_space<vmem>>, vector<1x4x32xbf16>
    %59 = vector.shape_cast %58 : vector<1x4x32xbf16> to vector<4x32xbf16>
    %cst_58 = arith.constant dense<0.000000e+00> : vector<256x32xf32>
    %60 = tpu.matmul %57, %59, %cst_58 {dimension_numbers = #tpu.dot_dimension_numbers<[1], [0], [0], [1], [0, 0, 1, 1], [], []>} : vector<256x4xbf16>, vector<4x32xbf16>, vector<256x32xf32> -> vector<256x32xf32>
    %61 = arith.addf %54, %60 : vector<256x32xf32>
    %c2_59 = arith.constant 2 : index
    %c2_60 = arith.constant 2 : index
    %c0_61 = arith.constant 0 : index
    %62 = vector.load %arg23[%c2_59, %c2_60, %c0_61] : memref<18x18x4xf32, #tpu.memory_space<vmem>>, vector<16x16x4xf32>
    %63 = vector.shape_cast %62 : vector<16x16x4xf32> to vector<256x4xf32>
    %64 = arith.truncf %63 : vector<256x4xf32> to vector<256x4xbf16>
    %c8 = arith.constant 8 : index
    %c0_62 = arith.constant 0 : index
    %c0_63 = arith.constant 0 : index
    %65 = vector.load %arg3[%c8, %c0_62, %c0_63] : memref<9x4x32xbf16, #tpu.memory_space<vmem>>, vector<1x4x32xbf16>
    %66 = vector.shape_cast %65 : vector<1x4x32xbf16> to vector<4x32xbf16>
    %cst_64 = arith.constant dense<0.000000e+00> : vector<256x32xf32>
    %67 = tpu.matmul %64, %66, %cst_64 {dimension_numbers = #tpu.dot_dimension_numbers<[1], [0], [0], [1], [0, 0, 1, 1], [], []>} : vector<256x4xbf16>, vector<4x32xbf16>, vector<256x32xf32> -> vector<256x32xf32>
    %68 = arith.addf %61, %67 : vector<256x32xf32>
    %c0_65 = arith.constant 0 : index
    %c0_66 = arith.constant 0 : index
    %69 = vector.load %arg4[%c0_65, %c0_66] : memref<1x32xf32, #tpu.memory_space<vmem>>, vector<1x32xf32>
    %70 = vector.broadcast %69 : vector<1x32xf32> to vector<256x32xf32>
    %71 = arith.addf %68, %70 : vector<256x32xf32>
    %cst_67 = arith.constant 0.000000e+00 : f32
    %72 = vector.broadcast %cst_67 : f32 to vector<256x32xf32>
    %73 = arith.maximumf %71, %72 : vector<256x32xf32>
    %74 = vector.shape_cast %73 : vector<256x32xf32> to vector<8x32x32xf32>
    %75 = vector.extract_strided_slice %74 {offsets = [0, 0, 0], sizes = [8, 16, 32], strides = [1, 1, 1]} : vector<8x32x32xf32> to vector<8x16x32xf32>
    %76 = vector.extract_strided_slice %74 {offsets = [0, 16, 0], sizes = [8, 16, 32], strides = [1, 1, 1]} : vector<8x32x32xf32> to vector<8x16x32xf32>
    %77 = arith.maximumf %75, %76 : vector<8x16x32xf32>
    %78 = vector.shape_cast %77 : vector<8x16x32xf32> to vector<64x2x32xf32>
    %79 = vector.extract_strided_slice %78 {offsets = [0, 0, 0], sizes = [64, 1, 32], strides = [1, 1, 1]} : vector<64x2x32xf32> to vector<64x1x32xf32>
    %80 = vector.shape_cast %79 : vector<64x1x32xf32> to vector<64x32xf32>
    %81 = vector.extract_strided_slice %78 {offsets = [0, 1, 0], sizes = [64, 1, 32], strides = [1, 1, 1]} : vector<64x2x32xf32> to vector<64x1x32xf32>
    %82 = vector.shape_cast %81 : vector<64x1x32xf32> to vector<64x32xf32>
    %83 = arith.maximumf %80, %82 : vector<64x32xf32>
    %84 = vector.shape_cast %83 : vector<64x32xf32> to vector<8x8x32xf32>
    %cst_68 = arith.constant 0.000000e+00 : f32
    %85 = vector.broadcast %cst_68 : f32 to vector<10x10x32xf32>
    %c0_69 = arith.constant 0 : index
    %c0_70 = arith.constant 0 : index
    %c0_71 = arith.constant 0 : index
    %86 = vector.load %arg24[%c0_69, %c0_70, %c0_71] : memref<10x10x32xf32, #tpu.memory_space<vmem>>, vector<10x10x32xf32>
    tpu.vector_store %arg24[%c0_69, %c0_70, %c0_71], %85 {strides = array<i32>} : memref<10x10x32xf32, #tpu.memory_space<vmem>>, vector<10x10x32xf32>,
    %c1_72 = arith.constant 1 : index
    %c1_73 = arith.constant 1 : index
    %c0_74 = arith.constant 0 : index
    %87 = vector.load %arg24[%c1_72, %c1_73, %c0_74] : memref<10x10x32xf32, #tpu.memory_space<vmem>>, vector<8x8x32xf32>
    tpu.vector_store %arg24[%c1_72, %c1_73, %c0_74], %84 {strides = array<i32>} : memref<10x10x32xf32, #tpu.memory_space<vmem>>, vector<8x8x32xf32>,
    %cst_75 = arith.constant 0.000000e+00 : f32
    %88 = vector.broadcast %cst_75 : f32 to vector<64x64xf32>
    %c0_76 = arith.constant 0 : index
    %c0_77 = arith.constant 0 : index
    %c0_78 = arith.constant 0 : index
    %89 = vector.load %arg24[%c0_76, %c0_77, %c0_78] : memref<10x10x32xf32, #tpu.memory_space<vmem>>, vector<8x8x32xf32>
    %90 = vector.shape_cast %89 : vector<8x8x32xf32> to vector<64x32xf32>
    %91 = arith.truncf %90 : vector<64x32xf32> to vector<64x32xbf16>
    %c0_79 = arith.constant 0 : index
    %c0_80 = arith.constant 0 : index
    %c0_81 = arith.constant 0 : index
    %92 = vector.load %arg5[%c0_79, %c0_80, %c0_81] : memref<9x32x64xbf16, #tpu.memory_space<vmem>>, vector<1x32x64xbf16>
    %93 = vector.shape_cast %92 : vector<1x32x64xbf16> to vector<32x64xbf16>
    %cst_82 = arith.constant dense<0.000000e+00> : vector<64x64xf32>
    %94 = tpu.matmul %91, %93, %cst_82 {dimension_numbers = #tpu.dot_dimension_numbers<[1], [0], [0], [1], [0, 0, 1, 1], [], []>} : vector<64x32xbf16>, vector<32x64xbf16>, vector<64x64xf32> -> vector<64x64xf32>
    %95 = arith.addf %88, %94 : vector<64x64xf32>
    %c0_83 = arith.constant 0 : index
    %c1_84 = arith.constant 1 : index
    %c0_85 = arith.constant 0 : index
    %96 = vector.load %arg24[%c0_83, %c1_84, %c0_85] : memref<10x10x32xf32, #tpu.memory_space<vmem>>, vector<8x8x32xf32>
    %97 = vector.shape_cast %96 : vector<8x8x32xf32> to vector<64x32xf32>
    %98 = arith.truncf %97 : vector<64x32xf32> to vector<64x32xbf16>
    %c1_86 = arith.constant 1 : index
    %c0_87 = arith.constant 0 : index
    %c0_88 = arith.constant 0 : index
    %99 = vector.load %arg5[%c1_86, %c0_87, %c0_88] : memref<9x32x64xbf16, #tpu.memory_space<vmem>>, vector<1x32x64xbf16>
    %100 = vector.shape_cast %99 : vector<1x32x64xbf16> to vector<32x64xbf16>
    %cst_89 = arith.constant dense<0.000000e+00> : vector<64x64xf32>
    %101 = tpu.matmul %98, %100, %cst_89 {dimension_numbers = #tpu.dot_dimension_numbers<[1], [0], [0], [1], [0, 0, 1, 1], [], []>} : vector<64x32xbf16>, vector<32x64xbf16>, vector<64x64xf32> -> vector<64x64xf32>
    %102 = arith.addf %95, %101 : vector<64x64xf32>
    %c0_90 = arith.constant 0 : index
    %c2_91 = arith.constant 2 : index
    %c0_92 = arith.constant 0 : index
    %103 = vector.load %arg24[%c0_90, %c2_91, %c0_92] : memref<10x10x32xf32, #tpu.memory_space<vmem>>, vector<8x8x32xf32>
    %104 = vector.shape_cast %103 : vector<8x8x32xf32> to vector<64x32xf32>
    %105 = arith.truncf %104 : vector<64x32xf32> to vector<64x32xbf16>
    %c2_93 = arith.constant 2 : index
    %c0_94 = arith.constant 0 : index
    %c0_95 = arith.constant 0 : index
    %106 = vector.load %arg5[%c2_93, %c0_94, %c0_95] : memref<9x32x64xbf16, #tpu.memory_space<vmem>>, vector<1x32x64xbf16>
    %107 = vector.shape_cast %106 : vector<1x32x64xbf16> to vector<32x64xbf16>
    %cst_96 = arith.constant dense<0.000000e+00> : vector<64x64xf32>
    %108 = tpu.matmul %105, %107, %cst_96 {dimension_numbers = #tpu.dot_dimension_numbers<[1], [0], [0], [1], [0, 0, 1, 1], [], []>} : vector<64x32xbf16>, vector<32x64xbf16>, vector<64x64xf32> -> vector<64x64xf32>
    %109 = arith.addf %102, %108 : vector<64x64xf32>
    %c1_97 = arith.constant 1 : index
    %c0_98 = arith.constant 0 : index
    %c0_99 = arith.constant 0 : index
    %110 = vector.load %arg24[%c1_97, %c0_98, %c0_99] : memref<10x10x32xf32, #tpu.memory_space<vmem>>, vector<8x8x32xf32>
    %111 = vector.shape_cast %110 : vector<8x8x32xf32> to vector<64x32xf32>
    %112 = arith.truncf %111 : vector<64x32xf32> to vector<64x32xbf16>
    %c3_100 = arith.constant 3 : index
    %c0_101 = arith.constant 0 : index
    %c0_102 = arith.constant 0 : index
    %113 = vector.load %arg5[%c3_100, %c0_101, %c0_102] : memref<9x32x64xbf16, #tpu.memory_space<vmem>>, vector<1x32x64xbf16>
    %114 = vector.shape_cast %113 : vector<1x32x64xbf16> to vector<32x64xbf16>
    %cst_103 = arith.constant dense<0.000000e+00> : vector<64x64xf32>
    %115 = tpu.matmul %112, %114, %cst_103 {dimension_numbers = #tpu.dot_dimension_numbers<[1], [0], [0], [1], [0, 0, 1, 1], [], []>} : vector<64x32xbf16>, vector<32x64xbf16>, vector<64x64xf32> -> vector<64x64xf32>
    %116 = arith.addf %109, %115 : vector<64x64xf32>
    %c1_104 = arith.constant 1 : index
    %c1_105 = arith.constant 1 : index
    %c0_106 = arith.constant 0 : index
    %117 = vector.load %arg24[%c1_104, %c1_105, %c0_106] : memref<10x10x32xf32, #tpu.memory_space<vmem>>, vector<8x8x32xf32>
    %118 = vector.shape_cast %117 : vector<8x8x32xf32> to vector<64x32xf32>
    %119 = arith.truncf %118 : vector<64x32xf32> to vector<64x32xbf16>
    %c4_107 = arith.constant 4 : index
    %c0_108 = arith.constant 0 : index
    %c0_109 = arith.constant 0 : index
    %120 = vector.load %arg5[%c4_107, %c0_108, %c0_109] : memref<9x32x64xbf16, #tpu.memory_space<vmem>>, vector<1x32x64xbf16>
    %121 = vector.shape_cast %120 : vector<1x32x64xbf16> to vector<32x64xbf16>
    %cst_110 = arith.constant dense<0.000000e+00> : vector<64x64xf32>
    %122 = tpu.matmul %119, %121, %cst_110 {dimension_numbers = #tpu.dot_dimension_numbers<[1], [0], [0], [1], [0, 0, 1, 1], [], []>} : vector<64x32xbf16>, vector<32x64xbf16>, vector<64x64xf32> -> vector<64x64xf32>
    %123 = arith.addf %116, %122 : vector<64x64xf32>
    %c1_111 = arith.constant 1 : index
    %c2_112 = arith.constant 2 : index
    %c0_113 = arith.constant 0 : index
    %124 = vector.load %arg24[%c1_111, %c2_112, %c0_113] : memref<10x10x32xf32, #tpu.memory_space<vmem>>, vector<8x8x32xf32>
    %125 = vector.shape_cast %124 : vector<8x8x32xf32> to vector<64x32xf32>
    %126 = arith.truncf %125 : vector<64x32xf32> to vector<64x32xbf16>
    %c5_114 = arith.constant 5 : index
    %c0_115 = arith.constant 0 : index
    %c0_116 = arith.constant 0 : index
    %127 = vector.load %arg5[%c5_114, %c0_115, %c0_116] : memref<9x32x64xbf16, #tpu.memory_space<vmem>>, vector<1x32x64xbf16>
    %128 = vector.shape_cast %127 : vector<1x32x64xbf16> to vector<32x64xbf16>
    %cst_117 = arith.constant dense<0.000000e+00> : vector<64x64xf32>
    %129 = tpu.matmul %126, %128, %cst_117 {dimension_numbers = #tpu.dot_dimension_numbers<[1], [0], [0], [1], [0, 0, 1, 1], [], []>} : vector<64x32xbf16>, vector<32x64xbf16>, vector<64x64xf32> -> vector<64x64xf32>
    %130 = arith.addf %123, %129 : vector<64x64xf32>
    %c2_118 = arith.constant 2 : index
    %c0_119 = arith.constant 0 : index
    %c0_120 = arith.constant 0 : index
    %131 = vector.load %arg24[%c2_118, %c0_119, %c0_120] : memref<10x10x32xf32, #tpu.memory_space<vmem>>, vector<8x8x32xf32>
    %132 = vector.shape_cast %131 : vector<8x8x32xf32> to vector<64x32xf32>
    %133 = arith.truncf %132 : vector<64x32xf32> to vector<64x32xbf16>
    %c6_121 = arith.constant 6 : index
    %c0_122 = arith.constant 0 : index
    %c0_123 = arith.constant 0 : index
    %134 = vector.load %arg5[%c6_121, %c0_122, %c0_123] : memref<9x32x64xbf16, #tpu.memory_space<vmem>>, vector<1x32x64xbf16>
    %135 = vector.shape_cast %134 : vector<1x32x64xbf16> to vector<32x64xbf16>
    %cst_124 = arith.constant dense<0.000000e+00> : vector<64x64xf32>
    %136 = tpu.matmul %133, %135, %cst_124 {dimension_numbers = #tpu.dot_dimension_numbers<[1], [0], [0], [1], [0, 0, 1, 1], [], []>} : vector<64x32xbf16>, vector<32x64xbf16>, vector<64x64xf32> -> vector<64x64xf32>
    %137 = arith.addf %130, %136 : vector<64x64xf32>
    %c2_125 = arith.constant 2 : index
    %c1_126 = arith.constant 1 : index
    %c0_127 = arith.constant 0 : index
    %138 = vector.load %arg24[%c2_125, %c1_126, %c0_127] : memref<10x10x32xf32, #tpu.memory_space<vmem>>, vector<8x8x32xf32>
    %139 = vector.shape_cast %138 : vector<8x8x32xf32> to vector<64x32xf32>
    %140 = arith.truncf %139 : vector<64x32xf32> to vector<64x32xbf16>
    %c7_128 = arith.constant 7 : index
    %c0_129 = arith.constant 0 : index
    %c0_130 = arith.constant 0 : index
    %141 = vector.load %arg5[%c7_128, %c0_129, %c0_130] : memref<9x32x64xbf16, #tpu.memory_space<vmem>>, vector<1x32x64xbf16>
    %142 = vector.shape_cast %141 : vector<1x32x64xbf16> to vector<32x64xbf16>
    %cst_131 = arith.constant dense<0.000000e+00> : vector<64x64xf32>
    %143 = tpu.matmul %140, %142, %cst_131 {dimension_numbers = #tpu.dot_dimension_numbers<[1], [0], [0], [1], [0, 0, 1, 1], [], []>} : vector<64x32xbf16>, vector<32x64xbf16>, vector<64x64xf32> -> vector<64x64xf32>
    %144 = arith.addf %137, %143 : vector<64x64xf32>
    %c2_132 = arith.constant 2 : index
    %c2_133 = arith.constant 2 : index
    %c0_134 = arith.constant 0 : index
    %145 = vector.load %arg24[%c2_132, %c2_133, %c0_134] : memref<10x10x32xf32, #tpu.memory_space<vmem>>, vector<8x8x32xf32>
    %146 = vector.shape_cast %145 : vector<8x8x32xf32> to vector<64x32xf32>
    %147 = arith.truncf %146 : vector<64x32xf32> to vector<64x32xbf16>
    %c8_135 = arith.constant 8 : index
    %c0_136 = arith.constant 0 : index
    %c0_137 = arith.constant 0 : index
    %148 = vector.load %arg5[%c8_135, %c0_136, %c0_137] : memref<9x32x64xbf16, #tpu.memory_space<vmem>>, vector<1x32x64xbf16>
    %149 = vector.shape_cast %148 : vector<1x32x64xbf16> to vector<32x64xbf16>
    %cst_138 = arith.constant dense<0.000000e+00> : vector<64x64xf32>
    %150 = tpu.matmul %147, %149, %cst_138 {dimension_numbers = #tpu.dot_dimension_numbers<[1], [0], [0], [1], [0, 0, 1, 1], [], []>} : vector<64x32xbf16>, vector<32x64xbf16>, vector<64x64xf32> -> vector<64x64xf32>
    %151 = arith.addf %144, %150 : vector<64x64xf32>
    %c0_139 = arith.constant 0 : index
    %c0_140 = arith.constant 0 : index
    %152 = vector.load %arg6[%c0_139, %c0_140] : memref<1x64xf32, #tpu.memory_space<vmem>>, vector<1x64xf32>
    %153 = vector.broadcast %152 : vector<1x64xf32> to vector<64x64xf32>
    %154 = arith.addf %151, %153 : vector<64x64xf32>
    %cst_141 = arith.constant 0.000000e+00 : f32
    %155 = vector.broadcast %cst_141 : f32 to vector<64x64xf32>
    %156 = arith.maximumf %154, %155 : vector<64x64xf32>
    %157 = vector.shape_cast %156 : vector<64x64xf32> to vector<4x16x64xf32>
    %158 = vector.extract_strided_slice %157 {offsets = [0, 0, 0], sizes = [4, 8, 64], strides = [1, 1, 1]} : vector<4x16x64xf32> to vector<4x8x64xf32>
    %159 = vector.extract_strided_slice %157 {offsets = [0, 8, 0], sizes = [4, 8, 64], strides = [1, 1, 1]} : vector<4x16x64xf32> to vector<4x8x64xf32>
    %160 = arith.maximumf %158, %159 : vector<4x8x64xf32>
    %161 = vector.shape_cast %160 : vector<4x8x64xf32> to vector<16x2x64xf32>
    %162 = vector.extract_strided_slice %161 {offsets = [0, 0, 0], sizes = [16, 1, 64], strides = [1, 1, 1]} : vector<16x2x64xf32> to vector<16x1x64xf32>
    %163 = vector.shape_cast %162 : vector<16x1x64xf32> to vector<16x64xf32>
    %164 = vector.extract_strided_slice %161 {offsets = [0, 1, 0], sizes = [16, 1, 64], strides = [1, 1, 1]} : vector<16x2x64xf32> to vector<16x1x64xf32>
    %165 = vector.shape_cast %164 : vector<16x1x64xf32> to vector<16x64xf32>
    %166 = arith.maximumf %163, %165 : vector<16x64xf32>
    %167 = vector.shape_cast %166 : vector<16x64xf32> to vector<4x4x64xf32>
    %cst_142 = arith.constant 0.000000e+00 : f32
    %168 = vector.broadcast %cst_142 : f32 to vector<6x6x64xf32>
    %c0_143 = arith.constant 0 : index
    %c0_144 = arith.constant 0 : index
    %c0_145 = arith.constant 0 : index
    %169 = vector.load %arg25[%c0_143, %c0_144, %c0_145] : memref<6x6x64xf32, #tpu.memory_space<vmem>>, vector<6x6x64xf32>
    tpu.vector_store %arg25[%c0_143, %c0_144, %c0_145], %168 {strides = array<i32>} : memref<6x6x64xf32, #tpu.memory_space<vmem>>, vector<6x6x64xf32>,
    %c1_146 = arith.constant 1 : index
    %c1_147 = arith.constant 1 : index
    %c0_148 = arith.constant 0 : index
    %170 = vector.load %arg25[%c1_146, %c1_147, %c0_148] : memref<6x6x64xf32, #tpu.memory_space<vmem>>, vector<4x4x64xf32>
    tpu.vector_store %arg25[%c1_146, %c1_147, %c0_148], %167 {strides = array<i32>} : memref<6x6x64xf32, #tpu.memory_space<vmem>>, vector<4x4x64xf32>,
    %cst_149 = arith.constant 0.000000e+00 : f32
    %171 = vector.broadcast %cst_149 : f32 to vector<16x128xf32>
    %c0_150 = arith.constant 0 : index
    %c0_151 = arith.constant 0 : index
    %c0_152 = arith.constant 0 : index
    %172 = vector.load %arg25[%c0_150, %c0_151, %c0_152] : memref<6x6x64xf32, #tpu.memory_space<vmem>>, vector<4x4x64xf32>
    %173 = vector.shape_cast %172 : vector<4x4x64xf32> to vector<16x64xf32>
    %174 = arith.truncf %173 : vector<16x64xf32> to vector<16x64xbf16>
    %c0_153 = arith.constant 0 : index
    %c0_154 = arith.constant 0 : index
    %c0_155 = arith.constant 0 : index
    %175 = vector.load %arg7[%c0_153, %c0_154, %c0_155] : memref<9x64x128xbf16, #tpu.memory_space<vmem>>, vector<1x64x128xbf16>
    %176 = vector.shape_cast %175 : vector<1x64x128xbf16> to vector<64x128xbf16>
    %cst_156 = arith.constant dense<0.000000e+00> : vector<16x128xf32>
    %177 = tpu.matmul %174, %176, %cst_156 {dimension_numbers = #tpu.dot_dimension_numbers<[1], [0], [0], [1], [0, 0, 1, 1], [], []>} : vector<16x64xbf16>, vector<64x128xbf16>, vector<16x128xf32> -> vector<16x128xf32>
    %178 = arith.addf %171, %177 : vector<16x128xf32>
    %c0_157 = arith.constant 0 : index
    %c1_158 = arith.constant 1 : index
    %c0_159 = arith.constant 0 : index
    %179 = vector.load %arg25[%c0_157, %c1_158, %c0_159] : memref<6x6x64xf32, #tpu.memory_space<vmem>>, vector<4x4x64xf32>
    %180 = vector.shape_cast %179 : vector<4x4x64xf32> to vector<16x64xf32>
    %181 = arith.truncf %180 : vector<16x64xf32> to vector<16x64xbf16>
    %c1_160 = arith.constant 1 : index
    %c0_161 = arith.constant 0 : index
    %c0_162 = arith.constant 0 : index
    %182 = vector.load %arg7[%c1_160, %c0_161, %c0_162] : memref<9x64x128xbf16, #tpu.memory_space<vmem>>, vector<1x64x128xbf16>
    %183 = vector.shape_cast %182 : vector<1x64x128xbf16> to vector<64x128xbf16>
    %cst_163 = arith.constant dense<0.000000e+00> : vector<16x128xf32>
    %184 = tpu.matmul %181, %183, %cst_163 {dimension_numbers = #tpu.dot_dimension_numbers<[1], [0], [0], [1], [0, 0, 1, 1], [], []>} : vector<16x64xbf16>, vector<64x128xbf16>, vector<16x128xf32> -> vector<16x128xf32>
    %185 = arith.addf %178, %184 : vector<16x128xf32>
    %c0_164 = arith.constant 0 : index
    %c2_165 = arith.constant 2 : index
    %c0_166 = arith.constant 0 : index
    %186 = vector.load %arg25[%c0_164, %c2_165, %c0_166] : memref<6x6x64xf32, #tpu.memory_space<vmem>>, vector<4x4x64xf32>
    %187 = vector.shape_cast %186 : vector<4x4x64xf32> to vector<16x64xf32>
    %188 = arith.truncf %187 : vector<16x64xf32> to vector<16x64xbf16>
    %c2_167 = arith.constant 2 : index
    %c0_168 = arith.constant 0 : index
    %c0_169 = arith.constant 0 : index
    %189 = vector.load %arg7[%c2_167, %c0_168, %c0_169] : memref<9x64x128xbf16, #tpu.memory_space<vmem>>, vector<1x64x128xbf16>
    %190 = vector.shape_cast %189 : vector<1x64x128xbf16> to vector<64x128xbf16>
    %cst_170 = arith.constant dense<0.000000e+00> : vector<16x128xf32>
    %191 = tpu.matmul %188, %190, %cst_170 {dimension_numbers = #tpu.dot_dimension_numbers<[1], [0], [0], [1], [0, 0, 1, 1], [], []>} : vector<16x64xbf16>, vector<64x128xbf16>, vector<16x128xf32> -> vector<16x128xf32>
    %192 = arith.addf %185, %191 : vector<16x128xf32>
    %c1_171 = arith.constant 1 : index
    %c0_172 = arith.constant 0 : index
    %c0_173 = arith.constant 0 : index
    %193 = vector.load %arg25[%c1_171, %c0_172, %c0_173] : memref<6x6x64xf32, #tpu.memory_space<vmem>>, vector<4x4x64xf32>
    %194 = vector.shape_cast %193 : vector<4x4x64xf32> to vector<16x64xf32>
    %195 = arith.truncf %194 : vector<16x64xf32> to vector<16x64xbf16>
    %c3_174 = arith.constant 3 : index
    %c0_175 = arith.constant 0 : index
    %c0_176 = arith.constant 0 : index
    %196 = vector.load %arg7[%c3_174, %c0_175, %c0_176] : memref<9x64x128xbf16, #tpu.memory_space<vmem>>, vector<1x64x128xbf16>
    %197 = vector.shape_cast %196 : vector<1x64x128xbf16> to vector<64x128xbf16>
    %cst_177 = arith.constant dense<0.000000e+00> : vector<16x128xf32>
    %198 = tpu.matmul %195, %197, %cst_177 {dimension_numbers = #tpu.dot_dimension_numbers<[1], [0], [0], [1], [0, 0, 1, 1], [], []>} : vector<16x64xbf16>, vector<64x128xbf16>, vector<16x128xf32> -> vector<16x128xf32>
    %199 = arith.addf %192, %198 : vector<16x128xf32>
    %c1_178 = arith.constant 1 : index
    %c1_179 = arith.constant 1 : index
    %c0_180 = arith.constant 0 : index
    %200 = vector.load %arg25[%c1_178, %c1_179, %c0_180] : memref<6x6x64xf32, #tpu.memory_space<vmem>>, vector<4x4x64xf32>
    %201 = vector.shape_cast %200 : vector<4x4x64xf32> to vector<16x64xf32>
    %202 = arith.truncf %201 : vector<16x64xf32> to vector<16x64xbf16>
    %c4_181 = arith.constant 4 : index
    %c0_182 = arith.constant 0 : index
    %c0_183 = arith.constant 0 : index
    %203 = vector.load %arg7[%c4_181, %c0_182, %c0_183] : memref<9x64x128xbf16, #tpu.memory_space<vmem>>, vector<1x64x128xbf16>
    %204 = vector.shape_cast %203 : vector<1x64x128xbf16> to vector<64x128xbf16>
    %cst_184 = arith.constant dense<0.000000e+00> : vector<16x128xf32>
    %205 = tpu.matmul %202, %204, %cst_184 {dimension_numbers = #tpu.dot_dimension_numbers<[1], [0], [0], [1], [0, 0, 1, 1], [], []>} : vector<16x64xbf16>, vector<64x128xbf16>, vector<16x128xf32> -> vector<16x128xf32>
    %206 = arith.addf %199, %205 : vector<16x128xf32>
    %c1_185 = arith.constant 1 : index
    %c2_186 = arith.constant 2 : index
    %c0_187 = arith.constant 0 : index
    %207 = vector.load %arg25[%c1_185, %c2_186, %c0_187] : memref<6x6x64xf32, #tpu.memory_space<vmem>>, vector<4x4x64xf32>
    %208 = vector.shape_cast %207 : vector<4x4x64xf32> to vector<16x64xf32>
    %209 = arith.truncf %208 : vector<16x64xf32> to vector<16x64xbf16>
    %c5_188 = arith.constant 5 : index
    %c0_189 = arith.constant 0 : index
    %c0_190 = arith.constant 0 : index
    %210 = vector.load %arg7[%c5_188, %c0_189, %c0_190] : memref<9x64x128xbf16, #tpu.memory_space<vmem>>, vector<1x64x128xbf16>
    %211 = vector.shape_cast %210 : vector<1x64x128xbf16> to vector<64x128xbf16>
    %cst_191 = arith.constant dense<0.000000e+00> : vector<16x128xf32>
    %212 = tpu.matmul %209, %211, %cst_191 {dimension_numbers = #tpu.dot_dimension_numbers<[1], [0], [0], [1], [0, 0, 1, 1], [], []>} : vector<16x64xbf16>, vector<64x128xbf16>, vector<16x128xf32> -> vector<16x128xf32>
    %213 = arith.addf %206, %212 : vector<16x128xf32>
    %c2_192 = arith.constant 2 : index
    %c0_193 = arith.constant 0 : index
    %c0_194 = arith.constant 0 : index
    %214 = vector.load %arg25[%c2_192, %c0_193, %c0_194] : memref<6x6x64xf32, #tpu.memory_space<vmem>>, vector<4x4x64xf32>
    %215 = vector.shape_cast %214 : vector<4x4x64xf32> to vector<16x64xf32>
    %216 = arith.truncf %215 : vector<16x64xf32> to vector<16x64xbf16>
    %c6_195 = arith.constant 6 : index
    %c0_196 = arith.constant 0 : index
    %c0_197 = arith.constant 0 : index
    %217 = vector.load %arg7[%c6_195, %c0_196, %c0_197] : memref<9x64x128xbf16, #tpu.memory_space<vmem>>, vector<1x64x128xbf16>
    %218 = vector.shape_cast %217 : vector<1x64x128xbf16> to vector<64x128xbf16>
    %cst_198 = arith.constant dense<0.000000e+00> : vector<16x128xf32>
    %219 = tpu.matmul %216, %218, %cst_198 {dimension_numbers = #tpu.dot_dimension_numbers<[1], [0], [0], [1], [0, 0, 1, 1], [], []>} : vector<16x64xbf16>, vector<64x128xbf16>, vector<16x128xf32> -> vector<16x128xf32>
    %220 = arith.addf %213, %219 : vector<16x128xf32>
    %c2_199 = arith.constant 2 : index
    %c1_200 = arith.constant 1 : index
    %c0_201 = arith.constant 0 : index
    %221 = vector.load %arg25[%c2_199, %c1_200, %c0_201] : memref<6x6x64xf32, #tpu.memory_space<vmem>>, vector<4x4x64xf32>
    %222 = vector.shape_cast %221 : vector<4x4x64xf32> to vector<16x64xf32>
    %223 = arith.truncf %222 : vector<16x64xf32> to vector<16x64xbf16>
    %c7_202 = arith.constant 7 : index
    %c0_203 = arith.constant 0 : index
    %c0_204 = arith.constant 0 : index
    %224 = vector.load %arg7[%c7_202, %c0_203, %c0_204] : memref<9x64x128xbf16, #tpu.memory_space<vmem>>, vector<1x64x128xbf16>
    %225 = vector.shape_cast %224 : vector<1x64x128xbf16> to vector<64x128xbf16>
    %cst_205 = arith.constant dense<0.000000e+00> : vector<16x128xf32>
    %226 = tpu.matmul %223, %225, %cst_205 {dimension_numbers = #tpu.dot_dimension_numbers<[1], [0], [0], [1], [0, 0, 1, 1], [], []>} : vector<16x64xbf16>, vector<64x128xbf16>, vector<16x128xf32> -> vector<16x128xf32>
    %227 = arith.addf %220, %226 : vector<16x128xf32>
    %c2_206 = arith.constant 2 : index
    %c2_207 = arith.constant 2 : index
    %c0_208 = arith.constant 0 : index
    %228 = vector.load %arg25[%c2_206, %c2_207, %c0_208] : memref<6x6x64xf32, #tpu.memory_space<vmem>>, vector<4x4x64xf32>
    %229 = vector.shape_cast %228 : vector<4x4x64xf32> to vector<16x64xf32>
    %230 = arith.truncf %229 : vector<16x64xf32> to vector<16x64xbf16>
    %c8_209 = arith.constant 8 : index
    %c0_210 = arith.constant 0 : index
    %c0_211 = arith.constant 0 : index
    %231 = vector.load %arg7[%c8_209, %c0_210, %c0_211] : memref<9x64x128xbf16, #tpu.memory_space<vmem>>, vector<1x64x128xbf16>
    %232 = vector.shape_cast %231 : vector<1x64x128xbf16> to vector<64x128xbf16>
    %cst_212 = arith.constant dense<0.000000e+00> : vector<16x128xf32>
    %233 = tpu.matmul %230, %232, %cst_212 {dimension_numbers = #tpu.dot_dimension_numbers<[1], [0], [0], [1], [0, 0, 1, 1], [], []>} : vector<16x64xbf16>, vector<64x128xbf16>, vector<16x128xf32> -> vector<16x128xf32>
    %234 = arith.addf %227, %233 : vector<16x128xf32>
    %c0_213 = arith.constant 0 : index
    %c0_214 = arith.constant 0 : index
    %235 = vector.load %arg8[%c0_213, %c0_214] : memref<1x128xf32, #tpu.memory_space<vmem>>, vector<1x128xf32>
    %236 = vector.broadcast %235 : vector<1x128xf32> to vector<16x128xf32>
    %237 = arith.addf %234, %236 : vector<16x128xf32>
    %cst_215 = arith.constant 0.000000e+00 : f32
    %238 = vector.broadcast %cst_215 : f32 to vector<16x128xf32>
    %239 = arith.maximumf %237, %238 : vector<16x128xf32>
    %240 = vector.shape_cast %239 : vector<16x128xf32> to vector<2x8x128xf32>
    %241 = vector.extract_strided_slice %240 {offsets = [0, 0, 0], sizes = [2, 4, 128], strides = [1, 1, 1]} : vector<2x8x128xf32> to vector<2x4x128xf32>
    %242 = vector.extract_strided_slice %240 {offsets = [0, 4, 0], sizes = [2, 4, 128], strides = [1, 1, 1]} : vector<2x8x128xf32> to vector<2x4x128xf32>
    %243 = arith.maximumf %241, %242 : vector<2x4x128xf32>
    %244 = vector.shape_cast %243 : vector<2x4x128xf32> to vector<4x2x128xf32>
    %245 = vector.extract_strided_slice %244 {offsets = [0, 0, 0], sizes = [4, 1, 128], strides = [1, 1, 1]} : vector<4x2x128xf32> to vector<4x1x128xf32>
    %246 = vector.shape_cast %245 : vector<4x1x128xf32> to vector<4x128xf32>
    %247 = vector.extract_strided_slice %244 {offsets = [0, 1, 0], sizes = [4, 1, 128], strides = [1, 1, 1]} : vector<4x2x128xf32> to vector<4x1x128xf32>
    %248 = vector.shape_cast %247 : vector<4x1x128xf32> to vector<4x128xf32>
    %249 = arith.maximumf %246, %248 : vector<4x128xf32>
    %250 = vector.shape_cast %249 : vector<4x128xf32> to vector<2x2x128xf32>
    %cst_216 = arith.constant 0.000000e+00 : f32
    %251 = vector.broadcast %cst_216 : f32 to vector<4x4x128xf32>
    %c0_217 = arith.constant 0 : index
    %c0_218 = arith.constant 0 : index
    %c0_219 = arith.constant 0 : index
    %252 = vector.load %arg26[%c0_217, %c0_218, %c0_219] : memref<4x4x128xf32, #tpu.memory_space<vmem>>, vector<4x4x128xf32>
    tpu.vector_store %arg26[%c0_217, %c0_218, %c0_219], %251 {strides = array<i32>} : memref<4x4x128xf32, #tpu.memory_space<vmem>>, vector<4x4x128xf32>,
    %c1_220 = arith.constant 1 : index
    %c1_221 = arith.constant 1 : index
    %c0_222 = arith.constant 0 : index
    %253 = vector.load %arg26[%c1_220, %c1_221, %c0_222] : memref<4x4x128xf32, #tpu.memory_space<vmem>>, vector<2x2x128xf32>
    tpu.vector_store %arg26[%c1_220, %c1_221, %c0_222], %250 {strides = array<i32>} : memref<4x4x128xf32, #tpu.memory_space<vmem>>, vector<2x2x128xf32>,
    %cst_223 = arith.constant 0.000000e+00 : f32
    %254 = vector.broadcast %cst_223 : f32 to vector<4x256xf32>
    %c0_224 = arith.constant 0 : index
    %c0_225 = arith.constant 0 : index
    %c0_226 = arith.constant 0 : index
    %255 = vector.load %arg26[%c0_224, %c0_225, %c0_226] : memref<4x4x128xf32, #tpu.memory_space<vmem>>, vector<2x2x128xf32>
    %256 = vector.shape_cast %255 : vector<2x2x128xf32> to vector<4x128xf32>
    %257 = arith.truncf %256 : vector<4x128xf32> to vector<4x128xbf16>
    %c0_227 = arith.constant 0 : index
    %c0_228 = arith.constant 0 : index
    %c0_229 = arith.constant 0 : index
    %258 = vector.load %arg9[%c0_227, %c0_228, %c0_229] : memref<9x128x256xbf16, #tpu.memory_space<vmem>>, vector<1x128x256xbf16>
    %259 = vector.shape_cast %258 : vector<1x128x256xbf16> to vector<128x256xbf16>
    %cst_230 = arith.constant dense<0.000000e+00> : vector<4x256xf32>
    %260 = tpu.matmul %257, %259, %cst_230 {dimension_numbers = #tpu.dot_dimension_numbers<[1], [0], [0], [1], [0, 0, 1, 1], [], []>} : vector<4x128xbf16>, vector<128x256xbf16>, vector<4x256xf32> -> vector<4x256xf32>
    %261 = arith.addf %254, %260 : vector<4x256xf32>
    %c0_231 = arith.constant 0 : index
    %c1_232 = arith.constant 1 : index
    %c0_233 = arith.constant 0 : index
    %262 = vector.load %arg26[%c0_231, %c1_232, %c0_233] : memref<4x4x128xf32, #tpu.memory_space<vmem>>, vector<2x2x128xf32>
    %263 = vector.shape_cast %262 : vector<2x2x128xf32> to vector<4x128xf32>
    %264 = arith.truncf %263 : vector<4x128xf32> to vector<4x128xbf16>
    %c1_234 = arith.constant 1 : index
    %c0_235 = arith.constant 0 : index
    %c0_236 = arith.constant 0 : index
    %265 = vector.load %arg9[%c1_234, %c0_235, %c0_236] : memref<9x128x256xbf16, #tpu.memory_space<vmem>>, vector<1x128x256xbf16>
    %266 = vector.shape_cast %265 : vector<1x128x256xbf16> to vector<128x256xbf16>
    %cst_237 = arith.constant dense<0.000000e+00> : vector<4x256xf32>
    %267 = tpu.matmul %264, %266, %cst_237 {dimension_numbers = #tpu.dot_dimension_numbers<[1], [0], [0], [1], [0, 0, 1, 1], [], []>} : vector<4x128xbf16>, vector<128x256xbf16>, vector<4x256xf32> -> vector<4x256xf32>
    %268 = arith.addf %261, %267 : vector<4x256xf32>
    %c0_238 = arith.constant 0 : index
    %c2_239 = arith.constant 2 : index
    %c0_240 = arith.constant 0 : index
    %269 = vector.load %arg26[%c0_238, %c2_239, %c0_240] : memref<4x4x128xf32, #tpu.memory_space<vmem>>, vector<2x2x128xf32>
    %270 = vector.shape_cast %269 : vector<2x2x128xf32> to vector<4x128xf32>
    %271 = arith.truncf %270 : vector<4x128xf32> to vector<4x128xbf16>
    %c2_241 = arith.constant 2 : index
    %c0_242 = arith.constant 0 : index
    %c0_243 = arith.constant 0 : index
    %272 = vector.load %arg9[%c2_241, %c0_242, %c0_243] : memref<9x128x256xbf16, #tpu.memory_space<vmem>>, vector<1x128x256xbf16>
    %273 = vector.shape_cast %272 : vector<1x128x256xbf16> to vector<128x256xbf16>
    %cst_244 = arith.constant dense<0.000000e+00> : vector<4x256xf32>
    %274 = tpu.matmul %271, %273, %cst_244 {dimension_numbers = #tpu.dot_dimension_numbers<[1], [0], [0], [1], [0, 0, 1, 1], [], []>} : vector<4x128xbf16>, vector<128x256xbf16>, vector<4x256xf32> -> vector<4x256xf32>
    %275 = arith.addf %268, %274 : vector<4x256xf32>
    %c1_245 = arith.constant 1 : index
    %c0_246 = arith.constant 0 : index
    %c0_247 = arith.constant 0 : index
    %276 = vector.load %arg26[%c1_245, %c0_246, %c0_247] : memref<4x4x128xf32, #tpu.memory_space<vmem>>, vector<2x2x128xf32>
    %277 = vector.shape_cast %276 : vector<2x2x128xf32> to vector<4x128xf32>
    %278 = arith.truncf %277 : vector<4x128xf32> to vector<4x128xbf16>
    %c3_248 = arith.constant 3 : index
    %c0_249 = arith.constant 0 : index
    %c0_250 = arith.constant 0 : index
    %279 = vector.load %arg9[%c3_248, %c0_249, %c0_250] : memref<9x128x256xbf16, #tpu.memory_space<vmem>>, vector<1x128x256xbf16>
    %280 = vector.shape_cast %279 : vector<1x128x256xbf16> to vector<128x256xbf16>
    %cst_251 = arith.constant dense<0.000000e+00> : vector<4x256xf32>
    %281 = tpu.matmul %278, %280, %cst_251 {dimension_numbers = #tpu.dot_dimension_numbers<[1], [0], [0], [1], [0, 0, 1, 1], [], []>} : vector<4x128xbf16>, vector<128x256xbf16>, vector<4x256xf32> -> vector<4x256xf32>
    %282 = arith.addf %275, %281 : vector<4x256xf32>
    %c1_252 = arith.constant 1 : index
    %c1_253 = arith.constant 1 : index
    %c0_254 = arith.constant 0 : index
    %283 = vector.load %arg26[%c1_252, %c1_253, %c0_254] : memref<4x4x128xf32, #tpu.memory_space<vmem>>, vector<2x2x128xf32>
    %284 = vector.shape_cast %283 : vector<2x2x128xf32> to vector<4x128xf32>
    %285 = arith.truncf %284 : vector<4x128xf32> to vector<4x128xbf16>
    %c4_255 = arith.constant 4 : index
    %c0_256 = arith.constant 0 : index
    %c0_257 = arith.constant 0 : index
    %286 = vector.load %arg9[%c4_255, %c0_256, %c0_257] : memref<9x128x256xbf16, #tpu.memory_space<vmem>>, vector<1x128x256xbf16>
    %287 = vector.shape_cast %286 : vector<1x128x256xbf16> to vector<128x256xbf16>
    %cst_258 = arith.constant dense<0.000000e+00> : vector<4x256xf32>
    %288 = tpu.matmul %285, %287, %cst_258 {dimension_numbers = #tpu.dot_dimension_numbers<[1], [0], [0], [1], [0, 0, 1, 1], [], []>} : vector<4x128xbf16>, vector<128x256xbf16>, vector<4x256xf32> -> vector<4x256xf32>
    %289 = arith.addf %282, %288 : vector<4x256xf32>
    %c1_259 = arith.constant 1 : index
    %c2_260 = arith.constant 2 : index
    %c0_261 = arith.constant 0 : index
    %290 = vector.load %arg26[%c1_259, %c2_260, %c0_261] : memref<4x4x128xf32, #tpu.memory_space<vmem>>, vector<2x2x128xf32>
    %291 = vector.shape_cast %290 : vector<2x2x128xf32> to vector<4x128xf32>
    %292 = arith.truncf %291 : vector<4x128xf32> to vector<4x128xbf16>
    %c5_262 = arith.constant 5 : index
    %c0_263 = arith.constant 0 : index
    %c0_264 = arith.constant 0 : index
    %293 = vector.load %arg9[%c5_262, %c0_263, %c0_264] : memref<9x128x256xbf16, #tpu.memory_space<vmem>>, vector<1x128x256xbf16>
    %294 = vector.shape_cast %293 : vector<1x128x256xbf16> to vector<128x256xbf16>
    %cst_265 = arith.constant dense<0.000000e+00> : vector<4x256xf32>
    %295 = tpu.matmul %292, %294, %cst_265 {dimension_numbers = #tpu.dot_dimension_numbers<[1], [0], [0], [1], [0, 0, 1, 1], [], []>} : vector<4x128xbf16>, vector<128x256xbf16>, vector<4x256xf32> -> vector<4x256xf32>
    %296 = arith.addf %289, %295 : vector<4x256xf32>
    %c2_266 = arith.constant 2 : index
    %c0_267 = arith.constant 0 : index
    %c0_268 = arith.constant 0 : index
    %297 = vector.load %arg26[%c2_266, %c0_267, %c0_268] : memref<4x4x128xf32, #tpu.memory_space<vmem>>, vector<2x2x128xf32>
    %298 = vector.shape_cast %297 : vector<2x2x128xf32> to vector<4x128xf32>
    %299 = arith.truncf %298 : vector<4x128xf32> to vector<4x128xbf16>
    %c6_269 = arith.constant 6 : index
    %c0_270 = arith.constant 0 : index
    %c0_271 = arith.constant 0 : index
    %300 = vector.load %arg9[%c6_269, %c0_270, %c0_271] : memref<9x128x256xbf16, #tpu.memory_space<vmem>>, vector<1x128x256xbf16>
    %301 = vector.shape_cast %300 : vector<1x128x256xbf16> to vector<128x256xbf16>
    %cst_272 = arith.constant dense<0.000000e+00> : vector<4x256xf32>
    %302 = tpu.matmul %299, %301, %cst_272 {dimension_numbers = #tpu.dot_dimension_numbers<[1], [0], [0], [1], [0, 0, 1, 1], [], []>} : vector<4x128xbf16>, vector<128x256xbf16>, vector<4x256xf32> -> vector<4x256xf32>
    %303 = arith.addf %296, %302 : vector<4x256xf32>
    %c2_273 = arith.constant 2 : index
    %c1_274 = arith.constant 1 : index
    %c0_275 = arith.constant 0 : index
    %304 = vector.load %arg26[%c2_273, %c1_274, %c0_275] : memref<4x4x128xf32, #tpu.memory_space<vmem>>, vector<2x2x128xf32>
    %305 = vector.shape_cast %304 : vector<2x2x128xf32> to vector<4x128xf32>
    %306 = arith.truncf %305 : vector<4x128xf32> to vector<4x128xbf16>
    %c7_276 = arith.constant 7 : index
    %c0_277 = arith.constant 0 : index
    %c0_278 = arith.constant 0 : index
    %307 = vector.load %arg9[%c7_276, %c0_277, %c0_278] : memref<9x128x256xbf16, #tpu.memory_space<vmem>>, vector<1x128x256xbf16>
    %308 = vector.shape_cast %307 : vector<1x128x256xbf16> to vector<128x256xbf16>
    %cst_279 = arith.constant dense<0.000000e+00> : vector<4x256xf32>
    %309 = tpu.matmul %306, %308, %cst_279 {dimension_numbers = #tpu.dot_dimension_numbers<[1], [0], [0], [1], [0, 0, 1, 1], [], []>} : vector<4x128xbf16>, vector<128x256xbf16>, vector<4x256xf32> -> vector<4x256xf32>
    %310 = arith.addf %303, %309 : vector<4x256xf32>
    %c2_280 = arith.constant 2 : index
    %c2_281 = arith.constant 2 : index
    %c0_282 = arith.constant 0 : index
    %311 = vector.load %arg26[%c2_280, %c2_281, %c0_282] : memref<4x4x128xf32, #tpu.memory_space<vmem>>, vector<2x2x128xf32>
    %312 = vector.shape_cast %311 : vector<2x2x128xf32> to vector<4x128xf32>
    %313 = arith.truncf %312 : vector<4x128xf32> to vector<4x128xbf16>
    %c8_283 = arith.constant 8 : index
    %c0_284 = arith.constant 0 : index
    %c0_285 = arith.constant 0 : index
    %314 = vector.load %arg9[%c8_283, %c0_284, %c0_285] : memref<9x128x256xbf16, #tpu.memory_space<vmem>>, vector<1x128x256xbf16>
    %315 = vector.shape_cast %314 : vector<1x128x256xbf16> to vector<128x256xbf16>
    %cst_286 = arith.constant dense<0.000000e+00> : vector<4x256xf32>
    %316 = tpu.matmul %313, %315, %cst_286 {dimension_numbers = #tpu.dot_dimension_numbers<[1], [0], [0], [1], [0, 0, 1, 1], [], []>} : vector<4x128xbf16>, vector<128x256xbf16>, vector<4x256xf32> -> vector<4x256xf32>
    %317 = arith.addf %310, %316 : vector<4x256xf32>
    %c0_287 = arith.constant 0 : index
    %c0_288 = arith.constant 0 : index
    %318 = vector.load %arg10[%c0_287, %c0_288] : memref<1x256xf32, #tpu.memory_space<vmem>>, vector<1x256xf32>
    %319 = vector.broadcast %318 : vector<1x256xf32> to vector<4x256xf32>
    %320 = arith.addf %317, %319 : vector<4x256xf32>
    %cst_289 = arith.constant 0.000000e+00 : f32
    %321 = vector.broadcast %cst_289 : f32 to vector<4x256xf32>
    %322 = arith.maximumf %320, %321 : vector<4x256xf32>
    %323 = vector.shape_cast %322 : vector<4x256xf32> to vector<1x4x256xf32>
    %324 = vector.extract_strided_slice %323 {offsets = [0, 0, 0], sizes = [1, 2, 256], strides = [1, 1, 1]} : vector<1x4x256xf32> to vector<1x2x256xf32>
    %325 = vector.extract_strided_slice %323 {offsets = [0, 2, 0], sizes = [1, 2, 256], strides = [1, 1, 1]} : vector<1x4x256xf32> to vector<1x2x256xf32>
    %326 = arith.maximumf %324, %325 : vector<1x2x256xf32>
    %327 = vector.extract_strided_slice %326 {offsets = [0, 0, 0], sizes = [1, 1, 256], strides = [1, 1, 1]} : vector<1x2x256xf32> to vector<1x1x256xf32>
    %328 = vector.shape_cast %327 : vector<1x1x256xf32> to vector<1x256xf32>
    %329 = vector.extract_strided_slice %326 {offsets = [0, 1, 0], sizes = [1, 1, 256], strides = [1, 1, 1]} : vector<1x2x256xf32> to vector<1x1x256xf32>
    %330 = vector.shape_cast %329 : vector<1x1x256xf32> to vector<1x256xf32>
    %331 = arith.maximumf %328, %330 : vector<1x256xf32>
    %332 = vector.shape_cast %331 : vector<1x256xf32> to vector<1x1x256xf32>
    %333 = vector.shape_cast %332 : vector<1x1x256xf32> to vector<1x256xf32>
    %c0_290 = arith.constant 0 : index
    %c0_291 = arith.constant 0 : index
    %c0_292 = arith.constant 0 : index
    %334 = vector.load %arg2[%c0_290, %c0_291, %c0_292] : memref<1x1x32xf32, #tpu.memory_space<vmem>>, vector<1x1x32xf32>
    %335 = vector.shape_cast %334 : vector<1x1x32xf32> to vector<1x32xf32>
    %336 = arith.truncf %335 : vector<1x32xf32> to vector<1x32xbf16>
    %c0_293 = arith.constant 0 : index
    %c0_294 = arith.constant 0 : index
    %337 = vector.load %arg11[%c0_293, %c0_294] : memref<32x64xbf16, #tpu.memory_space<vmem>>, vector<32x64xbf16>
    %cst_295 = arith.constant dense<0.000000e+00> : vector<1x64xf32>
    %338 = tpu.matmul %336, %337, %cst_295 {dimension_numbers = #tpu.dot_dimension_numbers<[1], [0], [0], [1], [0, 0, 1, 1], [], []>} : vector<1x32xbf16>, vector<32x64xbf16>, vector<1x64xf32> -> vector<1x64xf32>
    %c0_296 = arith.constant 0 : index
    %c0_297 = arith.constant 0 : index
    %339 = vector.load %arg12[%c0_296, %c0_297] : memref<1x64xf32, #tpu.memory_space<vmem>>, vector<1x64xf32>
    %340 = arith.addf %338, %339 : vector<1x64xf32>
    %cst_298 = arith.constant 0.000000e+00 : f32
    %341 = vector.broadcast %cst_298 : f32 to vector<1x64xf32>
    %342 = arith.maximumf %340, %341 : vector<1x64xf32>
    %343 = arith.truncf %342 : vector<1x64xf32> to vector<1x64xbf16>
    %c0_299 = arith.constant 0 : index
    %c0_300 = arith.constant 0 : index
    %344 = vector.load %arg13[%c0_299, %c0_300] : memref<64x128xbf16, #tpu.memory_space<vmem>>, vector<64x128xbf16>
    %cst_301 = arith.constant dense<0.000000e+00> : vector<1x128xf32>
    %345 = tpu.matmul %343, %344, %cst_301 {dimension_numbers = #tpu.dot_dimension_numbers<[1], [0], [0], [1], [0, 0, 1, 1], [], []>} : vector<1x64xbf16>, vector<64x128xbf16>, vector<1x128xf32> -> vector<1x128xf32>
    %c0_302 = arith.constant 0 : index
    %c0_303 = arith.constant 0 : index
    %346 = vector.load %arg14[%c0_302, %c0_303] : memref<1x128xf32, #tpu.memory_space<vmem>>, vector<1x128xf32>
    %347 = arith.addf %345, %346 : vector<1x128xf32>
    %cst_304 = arith.constant 0.000000e+00 : f32
    %348 = vector.broadcast %cst_304 : f32 to vector<1x128xf32>
    %349 = arith.maximumf %347, %348 : vector<1x128xf32>
    %350 = arith.truncf %333 : vector<1x256xf32> to vector<1x256xbf16>
    %c0_305 = arith.constant 0 : index
    %c0_306 = arith.constant 0 : index
    %351 = vector.load %arg15[%c0_305, %c0_306] : memref<256x512xbf16, #tpu.memory_space<vmem>>, vector<256x512xbf16>
    %cst_307 = arith.constant dense<0.000000e+00> : vector<1x512xf32>
    %352 = tpu.matmul %350, %351, %cst_307 {dimension_numbers = #tpu.dot_dimension_numbers<[1], [0], [0], [1], [0, 0, 1, 1], [], []>} : vector<1x256xbf16>, vector<256x512xbf16>, vector<1x512xf32> -> vector<1x512xf32>
    %353 = arith.truncf %349 : vector<1x128xf32> to vector<1x128xbf16>
    %c0_308 = arith.constant 0 : index
    %c0_309 = arith.constant 0 : index
    %354 = vector.load %arg16[%c0_308, %c0_309] : memref<128x512xbf16, #tpu.memory_space<vmem>>, vector<128x512xbf16>
    %cst_310 = arith.constant dense<0.000000e+00> : vector<1x512xf32>
    %355 = tpu.matmul %353, %354, %cst_310 {dimension_numbers = #tpu.dot_dimension_numbers<[1], [0], [0], [1], [0, 0, 1, 1], [], []>} : vector<1x128xbf16>, vector<128x512xbf16>, vector<1x512xf32> -> vector<1x512xf32>
    %356 = arith.addf %352, %355 : vector<1x512xf32>
    %c0_311 = arith.constant 0 : index
    %c0_312 = arith.constant 0 : index
    %357 = vector.load %arg17[%c0_311, %c0_312] : memref<1x512xf32, #tpu.memory_space<vmem>>, vector<1x512xf32>
    %358 = arith.addf %356, %357 : vector<1x512xf32>
    %cst_313 = arith.constant 0.000000e+00 : f32
    %359 = vector.broadcast %cst_313 : f32 to vector<1x512xf32>
    %360 = arith.maximumf %358, %359 : vector<1x512xf32>
    %361 = arith.truncf %360 : vector<1x512xf32> to vector<1x512xbf16>
    %c0_314 = arith.constant 0 : index
    %c0_315 = arith.constant 0 : index
    %362 = vector.load %arg18[%c0_314, %c0_315] : memref<512x256xbf16, #tpu.memory_space<vmem>>, vector<512x256xbf16>
    %cst_316 = arith.constant dense<0.000000e+00> : vector<1x256xf32>
    %363 = tpu.matmul %361, %362, %cst_316 {dimension_numbers = #tpu.dot_dimension_numbers<[1], [0], [0], [1], [0, 0, 1, 1], [], []>} : vector<1x512xbf16>, vector<512x256xbf16>, vector<1x256xf32> -> vector<1x256xf32>
    %c0_317 = arith.constant 0 : index
    %c0_318 = arith.constant 0 : index
    %364 = vector.load %arg19[%c0_317, %c0_318] : memref<1x256xf32, #tpu.memory_space<vmem>>, vector<1x256xf32>
    %365 = arith.addf %363, %364 : vector<1x256xf32>
    %cst_319 = arith.constant 0.000000e+00 : f32
    %366 = vector.broadcast %cst_319 : f32 to vector<1x256xf32>
    %367 = arith.maximumf %365, %366 : vector<1x256xf32>
    %368 = arith.truncf %367 : vector<1x256xf32> to vector<1x256xbf16>
    %c0_320 = arith.constant 0 : index
    %c0_321 = arith.constant 0 : index
    %369 = vector.load %arg20[%c0_320, %c0_321] : memref<256x4xbf16, #tpu.memory_space<vmem>>, vector<256x4xbf16>
    %cst_322 = arith.constant dense<0.000000e+00> : vector<1x4xf32>
    %370 = tpu.matmul %368, %369, %cst_322 {dimension_numbers = #tpu.dot_dimension_numbers<[1], [0], [0], [1], [0, 0, 1, 1], [], []>} : vector<1x256xbf16>, vector<256x4xbf16>, vector<1x4xf32> -> vector<1x4xf32>
    %c0_323 = arith.constant 0 : index
    %c0_324 = arith.constant 0 : index
    %371 = vector.load %arg21[%c0_323, %c0_324] : memref<1x4xf32, #tpu.memory_space<vmem>>, vector<1x4xf32>
    %372 = arith.addf %370, %371 : vector<1x4xf32>
    %c0_325 = arith.constant 0 : index
    %c0_326 = arith.constant 0 : index
    %c0_327 = arith.constant 0 : index
    %373 = vector.load %arg22[%c0_325, %c0_326, %c0_327] : memref<1x1x4xf32, #tpu.memory_space<vmem>>, vector<1x1x4xf32>
    %374 = vector.shape_cast %373 : vector<1x1x4xf32> to vector<1x4xf32>
    %375 = vector.shape_cast %372 : vector<1x4xf32> to vector<1x1x4xf32>
    tpu.vector_store %arg22[%c0_325, %c0_326, %c0_327], %375 {strides = array<i32>} : memref<1x1x4xf32, #tpu.memory_space<vmem>>, vector<1x1x4xf32>,
    return
  }
  func.func @transform_0(%arg0: i32) -> (i32, i32, i32, i32) {
    %c0_i32 = arith.constant 0 : i32
    %c0_i32_0 = arith.constant 0 : i32
    %c0_i32_1 = arith.constant 0 : i32
    %c0_i32_2 = arith.constant 0 : i32
    return %arg0, %c0_i32, %c0_i32_0, %c0_i32_1 : i32, i32, i32, i32
  }
  func.func @transform_1(%arg0: i32) -> (i32, i32, i32) {
    %c0_i32 = arith.constant 0 : i32
    %c0_i32_0 = arith.constant 0 : i32
    %c0_i32_1 = arith.constant 0 : i32
    return %arg0, %c0_i32, %c0_i32_0 : i32, i32, i32
  }
  func.func @transform_2(%arg0: i32) -> (i32, i32, i32) {
    %c0_i32 = arith.constant 0 : i32
    %c0_i32_0 = arith.constant 0 : i32
    %c0_i32_1 = arith.constant 0 : i32
    %c0_i32_2 = arith.constant 0 : i32
    return %c0_i32, %c0_i32_0, %c0_i32_1 : i32, i32, i32
  }
  func.func @transform_3(%arg0: i32) -> (i32, i32) {
    %c0_i32 = arith.constant 0 : i32
    %c0_i32_0 = arith.constant 0 : i32
    %c0_i32_1 = arith.constant 0 : i32
    return %c0_i32, %c0_i32_0 : i32, i32
  }
  func.func @transform_4(%arg0: i32) -> (i32, i32, i32) {
    %c0_i32 = arith.constant 0 : i32
    %c0_i32_0 = arith.constant 0 : i32
    %c0_i32_1 = arith.constant 0 : i32
    %c0_i32_2 = arith.constant 0 : i32
    return %c0_i32, %c0_i32_0, %c0_i32_1 : i32, i32, i32
  }
  func.func @transform_5(%arg0: i32) -> (i32, i32) {
    %c0_i32 = arith.constant 0 : i32
    %c0_i32_0 = arith.constant 0 : i32
    %c0_i32_1 = arith.constant 0 : i32
    return %c0_i32, %c0_i32_0 : i32, i32
  }
  func.func @transform_6(%arg0: i32) -> (i32, i32, i32) {
    %c0_i32 = arith.constant 0 : i32
    %c0_i32_0 = arith.constant 0 : i32
    %c0_i32_1 = arith.constant 0 : i32
    %c0_i32_2 = arith.constant 0 : i32
    return %c0_i32, %c0_i32_0, %c0_i32_1 : i32, i32, i32
  }
  func.func @transform_7(%arg0: i32) -> (i32, i32) {
    %c0_i32 = arith.constant 0 : i32
    %c0_i32_0 = arith.constant 0 : i32
    %c0_i32_1 = arith.constant 0 : i32
    return %c0_i32, %c0_i32_0 : i32, i32
  }
  func.func @transform_8(%arg0: i32) -> (i32, i32, i32) {
    %c0_i32 = arith.constant 0 : i32
    %c0_i32_0 = arith.constant 0 : i32
    %c0_i32_1 = arith.constant 0 : i32
    %c0_i32_2 = arith.constant 0 : i32
    return %c0_i32, %c0_i32_0, %c0_i32_1 : i32, i32, i32
  }
  func.func @transform_9(%arg0: i32) -> (i32, i32) {
    %c0_i32 = arith.constant 0 : i32
    %c0_i32_0 = arith.constant 0 : i32
    %c0_i32_1 = arith.constant 0 : i32
    return %c0_i32, %c0_i32_0 : i32, i32
  }
  func.func @transform_10(%arg0: i32) -> (i32, i32) {
    %c0_i32 = arith.constant 0 : i32
    %c0_i32_0 = arith.constant 0 : i32
    %c0_i32_1 = arith.constant 0 : i32
    return %c0_i32, %c0_i32_0 : i32, i32
  }
  func.func @transform_11(%arg0: i32) -> (i32, i32) {
    %c0_i32 = arith.constant 0 : i32
    %c0_i32_0 = arith.constant 0 : i32
    %c0_i32_1 = arith.constant 0 : i32
    return %c0_i32, %c0_i32_0 : i32, i32
  }
  func.func @transform_12(%arg0: i32) -> (i32, i32) {
    %c0_i32 = arith.constant 0 : i32
    %c0_i32_0 = arith.constant 0 : i32
    %c0_i32_1 = arith.constant 0 : i32
    return %c0_i32, %c0_i32_0 : i32, i32
  }
  func.func @transform_13(%arg0: i32) -> (i32, i32) {
    %c0_i32 = arith.constant 0 : i32
    %c0_i32_0 = arith.constant 0 : i32
    %c0_i32_1 = arith.constant 0 : i32
    return %c0_i32, %c0_i32_0 : i32, i32
  }
  func.func @transform_14(%arg0: i32) -> (i32, i32) {
    %c0_i32 = arith.constant 0 : i32
    %c0_i32_0 = arith.constant 0 : i32
    %c0_i32_1 = arith.constant 0 : i32
    return %c0_i32, %c0_i32_0 : i32, i32
  }
  func.func @transform_15(%arg0: i32) -> (i32, i32) {
    %c0_i32 = arith.constant 0 : i32
    %c0_i32_0 = arith.constant 0 : i32
    %c0_i32_1 = arith.constant 0 : i32
    return %c0_i32, %c0_i32_0 : i32, i32
  }
  func.func @transform_16(%arg0: i32) -> (i32, i32) {
    %c0_i32 = arith.constant 0 : i32
    %c0_i32_0 = arith.constant 0 : i32
    %c0_i32_1 = arith.constant 0 : i32
    return %c0_i32, %c0_i32_0 : i32, i32
  }
  func.func @transform_17(%arg0: i32) -> (i32, i32) {
    %c0_i32 = arith.constant 0 : i32
    %c0_i32_0 = arith.constant 0 : i32
    %c0_i32_1 = arith.constant 0 : i32
    return %c0_i32, %c0_i32_0 : i32, i32
  }
  func.func @transform_18(%arg0: i32) -> (i32, i32) {
    %c0_i32 = arith.constant 0 : i32
    %c0_i32_0 = arith.constant 0 : i32
    %c0_i32_1 = arith.constant 0 : i32
    return %c0_i32, %c0_i32_0 : i32, i32
  }
  func.func @transform_19(%arg0: i32) -> (i32, i32) {
    %c0_i32 = arith.constant 0 : i32
    %c0_i32_0 = arith.constant 0 : i32
    %c0_i32_1 = arith.constant 0 : i32
    return %c0_i32, %c0_i32_0 : i32, i32
  }
  func.func @transform_20(%arg0: i32) -> (i32, i32) {
    %c0_i32 = arith.constant 0 : i32
    %c0_i32_0 = arith.constant 0 : i32
    %c0_i32_1 = arith.constant 0 : i32
    return %c0_i32, %c0_i32_0 : i32, i32
  }
  func.func @transform_21(%arg0: i32) -> (i32, i32, i32) {
    %c0_i32 = arith.constant 0 : i32
    %c0_i32_0 = arith.constant 0 : i32
    %c0_i32_1 = arith.constant 0 : i32
    return %arg0, %c0_i32, %c0_i32_0 : i32, i32, i32
  }
}

</mosaic_0001>

<bundles_post_ra>
// kernel: custom_net_forward.1
= control target key start
LH: loop header
LB: loop body
LE: loop exit
PB: predicated region body
PF: predicated region fallthrough
CT: control target
= control target key end

     0   :  { %s15104_s0 = inlined_call_operand.vmem [shape: f32[2,16,16,4], index: 0, kind: input, shape index: {}]   ;;  %s15105_s1 = inlined_call_operand.vmem [shape: f32[2,1,32], index: 1, kind: input, shape index: {}]   ;;  %s15106_s2 = inlined_call_operand.vmem [shape: bf16[9,4,32], index: 2, kind: input, shape index: {}]   ;;  %s15107_s3 = inlined_call_operand.vmem [shape: f32[1,32], index: 3, kind: input, shape index: {}]   ;;  %s15108_s4 = inlined_call_operand.vmem [shape: bf16[9,32,64], index: 4, kind: input, shape index: {}]   ;;  %s15109_s5 = inlined_call_operand.vmem [shape: f32[1,64], index: 5, kind: input, shape index: {}]   ;;  %s15110_s6 = inlined_call_operand.vmem [shape: bf16[9,64,128], index: 6, kind: input, shape index: {}]   ;;  %s15111_s7 = inlined_call_operand.vmem [shape: f32[1,128], index: 7, kind: input, shape index: {}]   ;;  %s15112_s8 = inlined_call_operand.vmem [shape: bf16[9,128,256], index: 8, kind: input, shape index: {}]   ;;  %s15113_s9 = inlined_call_operand.vmem [shape: f32[1,256], index: 9, kind: input, shape index: {}]   ;;  %s15114_s10 = inlined_call_operand.vmem [shape: bf16[32,64], index: 10, kind: input, shape index: {}]   ;;  %s15115_s11 = inlined_call_operand.vmem [shape: f32[1,64], index: 11, kind: input, shape index: {}]   ;;  %s15116_s12 = inlined_call_operand.vmem [shape: bf16[64,128], index: 12, kind: input, shape index: {}]   ;;  %s15117_s13 = inlined_call_operand.vmem [shape: f32[1,128], index: 13, kind: input, shape index: {}]   ;;  %s15118_s14 = inlined_call_operand.vmem [shape: bf16[256,512], index: 14, kind: input, shape index: {}]   ;;  %s15119_s15 = inlined_call_operand.vmem [shape: bf16[128,512], index: 15, kind: input, shape index: {}]   ;;  %s15120_s16 = inlined_call_operand.vmem [shape: f32[1,512], index: 16, kind: input, shape index: {}]   ;;  %s15121_s17 = inlined_call_operand.vmem [shape: bf16[512,256], index: 17, kind: input, shape index: {}]   ;;  %s15122_s18 = inlined_call_operand.vmem [shape: f32[1,256], index: 18, kind: input, shape index: {}]   ;;  %s15123_s19 = inlined_call_operand.vmem [shape: bf16[256,4], index: 19, kind: input, shape index: {}]   ;;  %s15124_s20 = inlined_call_operand.vmem [shape: f32[1,4], index: 20, kind: input, shape index: {}]   ;;  %s15125_s21 = inlined_call_operand.hbm [shape: f32[2,1,4], index: 21, kind: output, shape index: {}]  }
   0x1   :  { %15135 = sst [smem:[#allocation14_spill]] %s15104_s0 }
   0x2   :  { %15136 = sst [smem:[#allocation15_spill]] %s15105_s1 }
   0x3   :  { %15137 = sst [smem:[#allocation16_spill]] %s15106_s2 }
   0x4   :  { %15138 = sst [smem:[#allocation17_spill]] %s15107_s3 }
   0x5   :  { %15139 = sst [smem:[#allocation18_spill]] %s15108_s4 }
   0x6   :  { %15140 = sst [smem:[#allocation19_spill]] %s15109_s5 }
   0x7   :  { %15141 = sst [smem:[#allocation20_spill]] %s15110_s6 }
   0x8   :  { %26 = vsyncpa [#allocation7], 0 }
   0x9   :  { %28 = vsyncpa [#allocation7 + $0x1], 0  ;;  %s12612_s2 = smov 0   ;;  %s12614_s25 = smov 0  }
   0xa   :  { %s12616_s26 = smov 0   ;;  %s12618_s27 = smov 0  }
   0xb LB: > { %15142 = sst [smem:[#allocation9_spill]] %s12483_s2  ;;  %s12633_s3 = sadd.s32 4294967295, %s12495_s27   ;;  %s12495_s27 = sphi %s12618_s27, %s15158_s27   ;;  %s12491_s26 = sphi %s12616_s26, %s15160_s26   ;;  %s12487_s25 = sphi %s12614_s25, %s15162_s25   ;;  %s12483_s2 = sphi %s12612_s2, %s15161_s2  }
   0xc   : > { %15143 = sst [smem:[#allocation10_spill]] %s12491_s26  ;;  %s9763_s28 = sadd.s32 4294967294, %s12495_s27  }
   0xd   : > { %s12637_s29 = sadd.s32 1, %s12495_s27   ;;  %s492_s0 = sadd.s32 1, %s12491_s26 }
   0xe   : > { %15144 = sst [smem:[#allocation11_spill]] %s12637_s29  ;;  %s489_s4 = ssub.s32 %s12495_s27, %s12637_s29 }
   0xf   : > { %p502_p0 = scmp.ne.s32.totalorder %s12491_s26, %s12487_s25  ;;  %p490_p1 = scmp.eq.s32.totalorder %s489_s4, 0 }
  0x10   : > { %p503_p2 = scmp.eq.s32.totalorder %s12633_s3, 1  ;;  %p508_p3 = scmp.ne.s32.totalorder %s12487_s25, %s12483_s2 }
  0x11   : > { %p509_p4 = scmp.eq.s32.totalorder %s9763_s28, 1  ;;  %p9766_p7 = scmp.ge.s32.totalorder %s12495_s27, 1 }
  0x12   : > { %s12648_s30 = scalar_select %p490_p1, %s12491_s26, %s492_s0  }
  0x13   : > { %p12650_p5 = por %p503_p2, %p502_p0  ;;  %p12654_p6 = por %p509_p4, %p508_p3 }
  0x14   : > { %15145 = sst [smem:[#allocation12_spill]] %s12648_s30  ;;  %p598_p8 = scmp.lt.s32.totalorder %s12495_s27, 3 }
  0x15   : > { %s15147_s22 = scalar_select %p12654_p6, 1, 0 }
  0x16   : > { %p599_p9 = pnand %p9766_p7, %p598_p8 }
  0x17   : > { %15148 = sst [smem:[#allocation13_spill]] %s15147_s22  ;;  %s15149_s24 = sld [smem:[#allocation16_spill]] (!%p599_p9)  ;;  %vm937_vm0 = vcmask (!%p599_p9), 1041408   ;;  %vm701_vm1 = vcmask (!%p599_p9), 31744   ;;  %vm704_vm2 = vcmask (!%p599_p9), 25600   ;;  %v12497_v2 = vmov (!%p599_p9), 0.0  }
  0x18   : > { %602 = sbr.rel (%p599_p9) target bundleno = 3104 (0xc20), region = 104  ;;  %702 = vst.msk [vmem:[#allocation2] sm:$0xff] (!%p599_p9), %vm701_vm1, %v12497_v2  ;;  %703 = vst.msk [vmem:[#allocation2 + $0x8] sm:$0xff] (!%p599_p9), %vm701_vm1, %v12497_v2  ;;  %p660_p10 = scmp.lt.s32.totalorder (!%p599_p9), %s12633_s3, 1  ;;  %vm4068_vm3 = vcmask (!%p599_p9), 261120   ;;  %vm4070_vm4 = vcmask (!%p599_p9), 254976  }
  0x19   : > { %705 = vst.msk [vmem:[#allocation2 + $0x10] sm:$0x3] (!%p599_p9), %vm704_vm2, %v12497_v2  ;;  %708 = vst.msk [vmem:[#allocation2 + $0x28] sm:$0x3] (!%p599_p9), %vm704_vm2, %v12497_v2  ;;  %s15150_s26 = sld [smem:[#allocation14_spill]] (!%p599_p9)  ;;  %s15151_s28 = sld [smem:[#allocation18_spill]] (!%p599_p9) }
  0x1a   : > { %706 = vst.msk [vmem:[#allocation2 + $0x18] sm:$0xff] (!%p599_p9), %vm701_vm1, %v12497_v2  ;;  %707 = vst.msk [vmem:[#allocation2 + $0x20] sm:$0xff] (!%p599_p9), %vm701_vm1, %v12497_v2  ;;  %vm4410_vm5 = vcmask (!%p599_p9), 1041409   ;;  %vm4412_vm6 = vcmask (!%p599_p9), 1042434   ;;  %vm4414_vm7 = vcmask (!%p599_p9), 1043459   ;;  %vm4416_vm8 = vcmask (!%p599_p9), 1044484  }
  0x1b   : > { %709 = vst.msk [vmem:[#allocation2 + $0x30] sm:$0xff] (!%p599_p9), %vm701_vm1, %v12497_v2  ;;  %710 = vst.msk [vmem:[#allocation2 + $0x38] sm:$0xff] (!%p599_p9), %vm701_vm1, %v12497_v2  ;;  %vm4418_vm9 = vcmask (!%p599_p9), 1045509   ;;  %vm4420_vm10 = vcmask (!%p599_p9), 1046534   ;;  %vm4422_vm11 = vcmask (!%p599_p9), 1047559   ;;  %vm5679_vm12 = vcmask (!%p599_p9), 521216  }
  0x1c   : > { %711 = vst.msk [vmem:[#allocation2 + $0x40] sm:$0x3] (!%p599_p9), %vm704_vm2, %v12497_v2  ;;  %714 = vst.msk [vmem:[#allocation2 + $0x58] sm:$0x3] (!%p599_p9), %vm704_vm2, %v12497_v2  ;;  %s15153_s6 = sld [smem:[#allocation20_spill]] (!%p599_p9)  ;;  %vm12499_vm13 = vmmov (!%p599_p9), 0  }
  0x1d   : > { %v9769_v0 = vld [vmem:[%s15149_s24 + $0x2] sm:$0x3] (!%p599_p9)  ;;  %712 = vst.msk [vmem:[#allocation2 + $0x48] sm:$0xff] (!%p599_p9), %vm701_vm1, %v12497_v2  ;;  %713 = vst.msk [vmem:[#allocation2 + $0x50] sm:$0xff] (!%p599_p9), %vm701_vm1, %v12497_v2  ;;  %v838_v3 = vld [vmem:[%s15149_s24] sm:$0x3] (!%p599_p9) }
  0x1e   : > { %11813 = vmatprep.subr.msk.bf16.mxu0 (!%p599_p9), %vm937_vm0, %v9769_v0  ;;  %v939_v1 = vsel (!%p599_p9), %vm937_vm0, %v9769_v0, 0  ;;  %715 = vst.msk [vmem:[#allocation2 + $0x60] sm:$0xff] (!%p599_p9), %vm701_vm1, %v12497_v2  ;;  %716 = vst.msk [vmem:[#allocation2 + $0x68] sm:$0xff] (!%p599_p9), %vm701_vm1, %v12497_v2  ;;  %v1151_v33 = vsel (!%p599_p9), %vm937_vm0, %v838_v3, 0  ;;  %v12848_v38 = vld [vmem:[%s15149_s24 + $0x4] sm:$0x3] (!%p599_p9) }
  0x1f   : > { %717 = vst.msk [vmem:[#allocation2 + $0x70] sm:$0x3] %vm704_vm2, %v12497_v2  ;;  %720 = vst.msk [vmem:[#allocation2 + $0x88] sm:$0x3] %vm704_vm2, %v12497_v2  ;;  %10946 = vmatpush3.bf16.msra.mxu0 %v939_v1  ;;  %s12782_s4 = scalar_select %p660_p10, %s12633_s3, 1  ;;  %v839_v7 = vld [vmem:[#allocation2 + $0x1] sm:$0xff] }
  0x20   : > { %718 = vst.msk [vmem:[#allocation2 + $0x78] sm:$0xff] %vm701_vm1, %v12497_v2  ;;  %719 = vst.msk [vmem:[#allocation2 + $0x80] sm:$0xff] %vm701_vm1, %v12497_v2  ;;  %11814 = vmatprep.subr.msk.bf16.mxu0 %vm937_vm0, %v838_v3  ;;  %v840_v8 = vld [vmem:[#allocation2 + $0x9] sm:$0xff]  ;;  %s15154_s30 = sld [smem:[#allocation19_spill]]  ;;  %vm5783_vm14 = vcmask 519168   ;;  %vm5855_vm15 = vcmask 523264  }
  0x21   : > { %721 = vst.msk [vmem:[#allocation2 + $0x90] sm:$0xff] %vm701_vm1, %v12497_v2  ;;  %722 = vst.msk [vmem:[#allocation2 + $0x98] sm:$0xff] %vm701_vm1, %v12497_v2  ;;  %s10662_s23 = sshll.u32 %s12782_s4, 8  ;;  %v871_v10 = vpack.c.bf16 %v840_v8, %v839_v7  ;;  %s15155_s2 = sld [smem:[#allocation15_spill]] }
  0x22   : > { %723 = vst.msk [vmem:[#allocation2 + $0xa0] sm:$0x3] %vm704_vm2, %v12497_v2  ;;  %726 = vst.msk [vmem:[#allocation2 + $0xb8] sm:$0x3] %vm704_vm2, %v12497_v2  ;;  %s12789_s29 = scalar_lea.vmem %s15150_s26, %s10662_s23  ;;  %s15152_s23 = sld [smem:[#allocation17_spill]] }
  0x23   : > { %724 = vst.msk [vmem:[#allocation2 + $0xa8] sm:$0xff] %vm701_vm1, %v12497_v2  ;;  %725 = vst.msk [vmem:[#allocation2 + $0xb0] sm:$0xff] %vm701_vm1, %v12497_v2  ;;  %v669_v4 = vld [vmem:[%s12789_s29] sm:$0xff]  ;;  %v670_v5 = vld [vmem:[%s12789_s29 + $0x8] sm:$0xff]  ;;  %10947 = vmatprep.mubr.msk.bf16.mxu0 %vm701_vm1, %v871_v10 }
  0x24   : > { %727 = vst.msk [vmem:[#allocation2 + $0xc0] sm:$0xff] %vm701_vm1, %v12497_v2  ;;  %728 = vst.msk [vmem:[#allocation2 + $0xc8] sm:$0xff] %vm701_vm1, %v12497_v2  ;;  %v671_v6 = vld [vmem:[%s12789_s29 + $0x10] sm:$0xff]  ;;  %v672_v9 = vld [vmem:[%s12789_s29 + $0x18] sm:$0xff] }
  0x25   : > { %729 = vst.msk [vmem:[#allocation2 + $0xd0] sm:$0x3] %vm704_vm2, %v12497_v2  ;;  %732 = vst.msk [vmem:[#allocation2 + $0xe8] sm:$0x3] %vm704_vm2, %v12497_v2  ;;  %v673_v11 = vld [vmem:[%s12789_s29 + $0x20] sm:$0xff]  ;;  %v674_v12 = vld [vmem:[%s12789_s29 + $0x28] sm:$0xff] }
  0x26   : > { %730 = vst.msk [vmem:[#allocation2 + $0xd8] sm:$0xff] %vm701_vm1, %v12497_v2  ;;  %731 = vst.msk [vmem:[#allocation2 + $0xe0] sm:$0xff] %vm701_vm1, %v12497_v2  ;;  %v675_v13 = vld [vmem:[%s12789_s29 + $0x30] sm:$0xff]  ;;  %v676_v14 = vld [vmem:[%s12789_s29 + $0x38] sm:$0xff] }
  0x27   : > { %733 = vst.msk [vmem:[#allocation2 + $0xf0] sm:$0xff] %vm701_vm1, %v12497_v2  ;;  %734 = vst.msk [vmem:[#allocation2 + $0xf8] sm:$0xff] %vm701_vm1, %v12497_v2  ;;  %v677_v15 = vld [vmem:[%s12789_s29 + $0x40] sm:$0xff]  ;;  %v678_v16 = vld [vmem:[%s12789_s29 + $0x48] sm:$0xff]  ;;  %s667_s26 = scalar_lea.vmem %s15155_s2, %s12782_s4  ;;  %s12501_s2 = smov [#allocation6]  }
  0x28   : > { %735 = vst.msk [vmem:[#allocation2 + $0x100] sm:$0x3] %vm704_vm2, %v12497_v2  ;;  %738 = vst.msk [vmem:[#allocation2 + $0x118] sm:$0x3] %vm704_vm2, %v12497_v2  ;;  %v679_v17 = vld [vmem:[%s12789_s29 + $0x50] sm:$0xff]  ;;  %v680_v18 = vld [vmem:[%s12789_s29 + $0x58] sm:$0xff] }
  0x29   : > { %736 = vst.msk [vmem:[#allocation2 + $0x108] sm:$0xff] %vm701_vm1, %v12497_v2  ;;  %737 = vst.msk [vmem:[#allocation2 + $0x110] sm:$0xff] %vm701_vm1, %v12497_v2  ;;  %v681_v19 = vld [vmem:[%s12789_s29 + $0x60] sm:$0xff]  ;;  %v682_v20 = vld [vmem:[%s12789_s29 + $0x68] sm:$0xff] }
  0x2a   : > { %739 = vst.msk [vmem:[#allocation2 + $0x120] sm:$0xff] %vm701_vm1, %v12497_v2  ;;  %740 = vst.msk [vmem:[#allocation2 + $0x128] sm:$0xff] %vm701_vm1, %v12497_v2  ;;  %v683_v21 = vld [vmem:[%s12789_s29 + $0x70] sm:$0xff]  ;;  %v684_v22 = vld [vmem:[%s12789_s29 + $0x78] sm:$0xff] }
  0x2b   : > { %741 = vst.msk [vmem:[#allocation2 + $0x130] sm:$0x3] %vm704_vm2, %v12497_v2  ;;  %744 = vst.msk [vmem:[#allocation2 + $0x148] sm:$0x3] %vm704_vm2, %v12497_v2  ;;  %v685_v23 = vld [vmem:[%s12789_s29 + $0x80] sm:$0xff]  ;;  %v686_v24 = vld [vmem:[%s12789_s29 + $0x88] sm:$0xff] }
  0x2c   : > { %742 = vst.msk [vmem:[#allocation2 + $0x138] sm:$0xff] %vm701_vm1, %v12497_v2  ;;  %743 = vst.msk [vmem:[#allocation2 + $0x140] sm:$0xff] %vm701_vm1, %v12497_v2  ;;  %v687_v25 = vld [vmem:[%s12789_s29 + $0x90] sm:$0xff]  ;;  %v688_v26 = vld [vmem:[%s12789_s29 + $0x98] sm:$0xff] }
  0x2d   : > { %745 = vst.msk [vmem:[#allocation2 + $0x150] sm:$0xff] %vm701_vm1, %v12497_v2  ;;  %746 = vst.msk [vmem:[#allocation2 + $0x158] sm:$0xff] %vm701_vm1, %v12497_v2  ;;  %v689_v27 = vld [vmem:[%s12789_s29 + $0xa0] sm:$0xff]  ;;  %v690_v28 = vld [vmem:[%s12789_s29 + $0xa8] sm:$0xff] }
  0x2e   : > { %747 = vst.msk [vmem:[#allocation2 + $0x160] sm:$0x3] %vm704_vm2, %v12497_v2  ;;  %750 = vst.msk [vmem:[#allocation2 + $0x178] sm:$0x3] %vm704_vm2, %v12497_v2  ;;  %v691_v35 = vld [vmem:[%s12789_s29 + $0xb0] sm:$0xff]  ;;  %v692_v36 = vld [vmem:[%s12789_s29 + $0xb8] sm:$0xff] }
  0x2f   : > { %748 = vst.msk [vmem:[#allocation2 + $0x168] sm:$0xff] %vm701_vm1, %v12497_v2  ;;  %749 = vst.msk [vmem:[#allocation2 + $0x170] sm:$0xff] %vm701_vm1, %v12497_v2  ;;  %v693_v45 = vld [vmem:[%s12789_s29 + $0xc0] sm:$0xff]  ;;  %v694_v46 = vld [vmem:[%s12789_s29 + $0xc8] sm:$0xff] }
  0x30   : > { %751 = vst.msk [vmem:[#allocation2 + $0x180] sm:$0xff] %vm701_vm1, %v12497_v2  ;;  %752 = vst.msk [vmem:[#allocation2 + $0x188] sm:$0xff] %vm701_vm1, %v12497_v2  ;;  %v695_v47 = vld [vmem:[%s12789_s29 + $0xd0] sm:$0xff]  ;;  %v696_v48 = vld [vmem:[%s12789_s29 + $0xd8] sm:$0xff] }
  0x31   : > { %753 = vst.msk [vmem:[#allocation2 + $0x190] sm:$0x3] %vm704_vm2, %v12497_v2  ;;  %756 = vst.msk [vmem:[#allocation2 + $0x1a8] sm:$0x3] %vm704_vm2, %v12497_v2  ;;  %v697_v49 = vld [vmem:[%s12789_s29 + $0xe0] sm:$0xff]  ;;  %v698_v50 = vld [vmem:[%s12789_s29 + $0xe8] sm:$0xff] }
  0x32   : > { %754 = vst.msk [vmem:[#allocation2 + $0x198] sm:$0xff] %vm701_vm1, %v12497_v2  ;;  %755 = vst.msk [vmem:[#allocation2 + $0x1a0] sm:$0xff] %vm701_vm1, %v12497_v2 }
  0x33   : > { %6670 = vst [vmem:[#allocation5] sm:$0xf] %v12497_v2  ;;  %6671 = vst [vmem:[#allocation5 + $0x4] sm:$0xf] %v12497_v2 }
  0x34   : > { %6672 = vst [vmem:[#allocation5 + $0x8] sm:$0xf] %v12497_v2  ;;  %6673 = vst [vmem:[#allocation5 + $0xc] sm:$0xf] %v12497_v2 }
  0x35   : > { %758 = vst.msk [vmem:[#allocation2 + $0x19] sm:$0xff] %vm701_vm1, %v669_v4  ;;  %759 = vst.msk [vmem:[#allocation2 + $0x21] sm:$0xff] %vm701_vm1, %v670_v5 }
  0x36   : > { %760 = vst.msk [vmem:[#allocation2 + $0x31] sm:$0xff] %vm701_vm1, %v671_v6  ;;  %761 = vst.msk [vmem:[#allocation2 + $0x39] sm:$0xff] %vm701_vm1, %v672_v9 }
  0x37   : > { %762 = vst.msk [vmem:[#allocation2 + $0x49] sm:$0xff] %vm701_vm1, %v673_v11  ;;  %763 = vst.msk [vmem:[#allocation2 + $0x51] sm:$0xff] %vm701_vm1, %v674_v12 }
  0x38   : > { %764 = vst.msk [vmem:[#allocation2 + $0x61] sm:$0xff] %vm701_vm1, %v675_v13  ;;  %765 = vst.msk [vmem:[#allocation2 + $0x69] sm:$0xff] %vm701_vm1, %v676_v14 }
  0x39   : > { %766 = vst.msk [vmem:[#allocation2 + $0x79] sm:$0xff] %vm701_vm1, %v677_v15  ;;  %767 = vst.msk [vmem:[#allocation2 + $0x81] sm:$0xff] %vm701_vm1, %v678_v16 }
  0x3a   : > { %768 = vst.msk [vmem:[#allocation2 + $0x91] sm:$0xff] %vm701_vm1, %v679_v17  ;;  %769 = vst.msk [vmem:[#allocation2 + $0x99] sm:$0xff] %vm701_vm1, %v680_v18  ;;  %v790_v18 = vld [vmem:[#allocation2] sm:$0xff] }
  0x3b   : > { %770 = vst.msk [vmem:[#allocation2 + $0xa9] sm:$0xff] %vm701_vm1, %v681_v19  ;;  %771 = vst.msk [vmem:[#allocation2 + $0xb1] sm:$0xff] %vm701_vm1, %v682_v20  ;;  %v791_v19 = vld [vmem:[#allocation2 + $0x8] sm:$0xff] }
  0x3c   : > { %772 = vst.msk [vmem:[#allocation2 + $0xc1] sm:$0xff] %vm701_vm1, %v683_v21  ;;  %773 = vst.msk [vmem:[#allocation2 + $0xc9] sm:$0xff] %vm701_vm1, %v684_v22  ;;  %v841_v29 = vld [vmem:[#allocation2 + $0x19] sm:$0xff]  ;;  %v842_v30 = vld [vmem:[#allocation2 + $0x21] sm:$0xff]  ;;  %v1413_v22 = vsel %vm937_vm0, %v12848_v38, 0 }
  0x3d   : > { %774 = vst.msk [vmem:[#allocation2 + $0xd9] sm:$0xff] %vm701_vm1, %v685_v23  ;;  %775 = vst.msk [vmem:[#allocation2 + $0xe1] sm:$0xff] %vm701_vm1, %v686_v24  ;;  %v843_v31 = vld [vmem:[#allocation2 + $0x31] sm:$0xff]  ;;  %v12836_v32 = vpack.c.bf16 %v842_v30, %v841_v29  ;;  %v844_v34 = vld [vmem:[#allocation2 + $0x39] sm:$0xff]  ;;  %v822_v24 = vpack.c.bf16 %v791_v19, %v790_v18 }
  0x3e   : > { %776 = vst.msk [vmem:[#allocation2 + $0xf1] sm:$0xff] %vm701_vm1, %v687_v25  ;;  %777 = vst.msk [vmem:[#allocation2 + $0xf9] sm:$0xff] %vm701_vm1, %v688_v26  ;;  %v12841_v37 = vpack.c.bf16 %v844_v34, %v843_v31  ;;  %v845_v39 = vld [vmem:[#allocation2 + $0x49] sm:$0xff]  ;;  %v846_v40 = vld [vmem:[#allocation2 + $0x51] sm:$0xff] }
  0x3f   : > { %778 = vst.msk [vmem:[#allocation2 + $0x109] sm:$0xff] %vm701_vm1, %v689_v27  ;;  %779 = vst.msk [vmem:[#allocation2 + $0x111] sm:$0xff] %vm701_vm1, %v690_v28  ;;  %10948 = vmatmul.mubr.msk.bf16.vlgmr.msra.gmra.mrb[0].mxu0 %vm701_vm1, %v12836_v32  ;;  %v847_v41 = vld [vmem:[#allocation2 + $0x61] sm:$0xff]  ;;  %v848_v42 = vld [vmem:[#allocation2 + $0x69] sm:$0xff]  ;;  %v12856_v43 = vpack.c.bf16 %v846_v40, %v845_v39 }
  0x40   : > { %780 = vst.msk [vmem:[#allocation2 + $0x121] sm:$0xff] %vm701_vm1, %v691_v35  ;;  %781 = vst.msk [vmem:[#allocation2 + $0x129] sm:$0xff] %vm701_vm1, %v692_v36  ;;  %10980 = vmatpush3.bf16.msra.mxu0 %v1151_v33  ;;  %10951 = vmatprep.mubr.msk.bf16.mxu0 %vm701_vm1, %v12841_v37  ;;  %v12858_v44 = vpack.c.bf16 %v848_v42, %v847_v41  ;;  %v849_v51 = vld [vmem:[#allocation2 + $0x79] sm:$0xff]  ;;  %v850_v52 = vld [vmem:[#allocation2 + $0x81] sm:$0xff] }
  0x41   : > { %11815 = vmatprep.subr.msk.bf16.mxu0 %vm937_vm0, %v12848_v38  ;;  %782 = vst.msk [vmem:[#allocation2 + $0x139] sm:$0xff] %vm701_vm1, %v693_v45  ;;  %783 = vst.msk [vmem:[#allocation2 + $0x141] sm:$0xff] %vm701_vm1, %v694_v46  ;;  %v851_v53 = vld [vmem:[#allocation2 + $0x91] sm:$0xff]  ;;  %v852_v54 = vld [vmem:[#allocation2 + $0x99] sm:$0xff]  ;;  %v12876_v55 = vpack.c.bf16 %v850_v52, %v849_v51 }
  0x42   : > { %784 = vst.msk [vmem:[#allocation2 + $0x151] sm:$0xff] %vm701_vm1, %v695_v47  ;;  %785 = vst.msk [vmem:[#allocation2 + $0x159] sm:$0xff] %vm701_vm1, %v696_v48  ;;  %v12878_v56 = vpack.c.bf16 %v852_v54, %v851_v53  ;;  %v853_v57 = vld [vmem:[#allocation2 + $0xa9] sm:$0xff]  ;;  %v854_v58 = vld [vmem:[#allocation2 + $0xb1] sm:$0xff] }
  0x43   : > { %786 = vst.msk [vmem:[#allocation2 + $0x169] sm:$0xff] %vm701_vm1, %v697_v49  ;;  %787 = vst.msk [vmem:[#allocation2 + $0x171] sm:$0xff] %vm701_vm1, %v698_v50  ;;  %v855_v59 = vld [vmem:[#allocation2 + $0xc1] sm:$0xff]  ;;  %v856_v60 = vld [vmem:[#allocation2 + $0xc9] sm:$0xff]  ;;  %v12884_v61 = vpack.c.bf16 %v854_v58, %v853_v57 }
  0x44   : > { %v12886_v62 = vpack.c.bf16 %v856_v60, %v855_v59  ;;  %v857_v63 = vld [vmem:[#allocation2 + $0xd9] sm:$0xff]  ;;  %v858_v0 = vld [vmem:[#allocation2 + $0xe1] sm:$0xff]  ;;  %v794_v27 = vld [vmem:[#allocation2 + $0x30] sm:$0xff]  ;;  %4072 = vst.msk [vmem:[#allocation3 + $0x10] sm:$0xff] %vm4068_vm3, %v12497_v2 }
  0x45   : > { %v859_v1 = vld [vmem:[#allocation2 + $0xf1] sm:$0xff]  ;;  %v860_v3 = vld [vmem:[#allocation2 + $0xf9] sm:$0xff]  ;;  %v12892_v4 = vpack.c.bf16 %v858_v0, %v857_v63  ;;  %v12930_v31 = vld [vmem:[%s15149_s24 + $0x6] sm:$0x3]  ;;  %4073 = vst.msk [vmem:[#allocation3 + $0x18] sm:$0x3] %vm4070_vm4, %v12497_v2 }
  0x46   : > { %v12894_v5 = vpack.c.bf16 %v860_v3, %v859_v1  ;;  %v861_v6 = vld [vmem:[#allocation2 + $0x109] sm:$0xff]  ;;  %v862_v7 = vld [vmem:[#allocation2 + $0x111] sm:$0xff]  ;;  %v793_v26 = vld [vmem:[#allocation2 + $0x20] sm:$0xff]  ;;  %4069 = vst.msk [vmem:[#allocation3] sm:$0xff] %vm4068_vm3, %v12497_v2 }
  0x47   : > { %10952 = vmatmul.mubr.msk.bf16.gmra.mrb[4].mxu0 %vm701_vm1, %v12856_v43  ;;  %v863_v8 = vld [vmem:[#allocation2 + $0x121] sm:$0xff]  ;;  %v864_v9 = vld [vmem:[#allocation2 + $0x129] sm:$0xff]  ;;  %v12900_v10 = vpack.c.bf16 %v862_v7, %v861_v6  ;;  %v792_v25 = vld [vmem:[#allocation2 + $0x18] sm:$0xff]  ;;  %4071 = vst.msk [vmem:[#allocation3 + $0x8] sm:$0x3] %vm4070_vm4, %v12497_v2 }
  0x48   : > { %10955 = vmatprep.mubr.msk.bf16.mxu0 %vm701_vm1, %v12858_v44  ;;  %v12902_v11 = vpack.c.bf16 %v864_v9, %v863_v8  ;;  %v865_v12 = vld [vmem:[#allocation2 + $0x139] sm:$0xff]  ;;  %v866_v13 = vld [vmem:[#allocation2 + $0x141] sm:$0xff]  ;;  %v12923_v29 = vpack.c.bf16 %v793_v26, %v792_v25  ;;  %v797_v34 = vld [vmem:[#allocation2 + $0x50] sm:$0xff]  ;;  %4074 = vst.msk [vmem:[#allocation3 + $0x20] sm:$0xff] %vm4068_vm3, %v12497_v2 }
  0x49   : > { %v867_v14 = vld [vmem:[#allocation2 + $0x151] sm:$0xff]  ;;  %v868_v15 = vld [vmem:[#allocation2 + $0x159] sm:$0xff]  ;;  %v12908_v16 = vpack.c.bf16 %v866_v13, %v865_v12  ;;  %v796_v33 = vld [vmem:[#allocation2 + $0x48] sm:$0xff]  ;;  %4075 = vst.msk [vmem:[#allocation3 + $0x28] sm:$0x3] %vm4070_vm4, %v12497_v2 }
  0x4a   : > { %v12910_v17 = vpack.c.bf16 %v868_v15, %v867_v14  ;;  %v869_v20 = vld [vmem:[#allocation2 + $0x169] sm:$0xff]  ;;  %v870_v21 = vld [vmem:[#allocation2 + $0x171] sm:$0xff]  ;;  %v798_v35 = vld [vmem:[#allocation2 + $0x60] sm:$0xff]  ;;  %v12938_v38 = vpack.c.bf16 %v797_v34, %v796_v33  ;;  %4076 = vst.msk [vmem:[#allocation3 + $0x30] sm:$0xff] %vm4068_vm3, %v12497_v2 }
  0x4b   : > { %v12918_v23 = vpack.c.bf16 %v870_v21, %v869_v20  ;;  %v795_v28 = vld [vmem:[#allocation2 + $0x38] sm:$0xff]  ;;  %v799_v36 = vld [vmem:[#allocation2 + $0x68] sm:$0xff]  ;;  %v801_v41 = vld [vmem:[#allocation2 + $0x80] sm:$0xff]  ;;  %4077 = vst.msk [vmem:[#allocation3 + $0x38] sm:$0x3] %vm4070_vm4, %v12497_v2 }
  0x4c   : > { %v12925_v30 = vpack.c.bf16 %v795_v28, %v794_v27  ;;  %v12940_v39 = vpack.c.bf16 %v799_v36, %v798_v35  ;;  %v800_v40 = vld [vmem:[#allocation2 + $0x78] sm:$0xff]  ;;  %v802_v42 = vld [vmem:[#allocation2 + $0x90] sm:$0xff]  ;;  %v804_v48 = vld [vmem:[#allocation2 + $0xa8] sm:$0xff]  ;;  %4078 = vst.msk [vmem:[#allocation3 + $0x40] sm:$0xff] %vm4068_vm3, %v12497_v2 }
  0x4d   : > { %v803_v45 = vld [vmem:[#allocation2 + $0x98] sm:$0xff]  ;;  %v12946_v46 = vpack.c.bf16 %v801_v41, %v800_v40  ;;  %v805_v49 = vld [vmem:[#allocation2 + $0xb0] sm:$0xff]  ;;  %v806_v50 = vld [vmem:[#allocation2 + $0xc0] sm:$0xff]  ;;  %4079 = vst.msk [vmem:[#allocation3 + $0x48] sm:$0x3] %vm4070_vm4, %v12497_v2 }
  0x4e   : > { %v12948_v47 = vpack.c.bf16 %v803_v45, %v802_v42  ;;  %v807_v51 = vld [vmem:[#allocation2 + $0xc8] sm:$0xff]  ;;  %v12954_v52 = vpack.c.bf16 %v805_v49, %v804_v48  ;;  %v808_v54 = vld [vmem:[#allocation2 + $0xd8] sm:$0xff]  ;;  %v809_v57 = vld [vmem:[#allocation2 + $0xe0] sm:$0xff]  ;;  %v1707_v42 = vsel %vm937_vm0, %v12930_v31, 0  ;;  %4080 = vst.msk [vmem:[#allocation3 + $0x50] sm:$0xff] %vm4068_vm3, %v12497_v2 }
  0x4f   : > { %10956 = vmatmul.mubr.msk.bf16.gmra.mrb[8].mxu0 %vm701_vm1, %v12876_v55  ;;  %v12956_v53 = vpack.c.bf16 %v807_v51, %v806_v50  ;;  %v810_v58 = vld [vmem:[#allocation2 + $0xf0] sm:$0xff]  ;;  %v811_v59 = vld [vmem:[#allocation2 + $0xf8] sm:$0xff]  ;;  %v12962_v60 = vpack.c.bf16 %v809_v57, %v808_v54  ;;  %v812_v0 = vld [vmem:[#allocation2 + $0x108] sm:$0xff]  ;;  %4081 = vst.msk [vmem:[#allocation3 + $0x58] sm:$0x3] %vm4070_vm4, %v12497_v2 }
  0x50   : > { %10959 = vmatprep.mubr.msk.bf16.mxu0 %vm701_vm1, %v12878_v56  ;;  %v12964_v63 = vpack.c.bf16 %v811_v59, %v810_v58  ;;  %v813_v1 = vld [vmem:[#allocation2 + $0x110] sm:$0xff]  ;;  %v814_v3 = vld [vmem:[#allocation2 + $0x120] sm:$0xff]  ;;  %v815_v6 = vld [vmem:[#allocation2 + $0x128] sm:$0xff]  ;;  %4082 = vst.msk [vmem:[#allocation3 + $0x60] sm:$0xff] %vm4068_vm3, %v12497_v2 }
  0x51   : > { %v12970_v7 = vpack.c.bf16 %v813_v1, %v812_v0  ;;  %v12972_v8 = vpack.c.bf16 %v815_v6, %v814_v3  ;;  %v816_v9 = vld [vmem:[#allocation2 + $0x138] sm:$0xff]  ;;  %v817_v12 = vld [vmem:[#allocation2 + $0x140] sm:$0xff]  ;;  %v818_v13 = vld [vmem:[#allocation2 + $0x150] sm:$0xff]  ;;  %4083 = vst.msk [vmem:[#allocation3 + $0x68] sm:$0x3] %vm4070_vm4, %v12497_v2 }
  0x52   : > { %v819_v14 = vld [vmem:[#allocation2 + $0x158] sm:$0xff]  ;;  %v12978_v15 = vpack.c.bf16 %v817_v12, %v816_v9  ;;  %v699_v19 = vld [vmem:[%s12789_s29 + $0xf0] sm:$0xff]  ;;  %v820_v21 = vld [vmem:[#allocation2 + $0x168] sm:$0xff]  ;;  %4084 = vst.msk [vmem:[#allocation3 + $0x70] sm:$0xff] %vm4068_vm3, %v12497_v2 }
  0x53   : > { %v12980_v18 = vpack.c.bf16 %v819_v14, %v818_v13  ;;  %v700_v20 = vld [vmem:[%s12789_s29 + $0xf8] sm:$0xff]  ;;  %788 = vst.msk [vmem:[#allocation2 + $0x181] sm:$0xff] %vm701_vm1, %v699_v19  ;;  %v1315_v25 = vld [vmem:[#allocation2 + $0xa] sm:$0xff]  ;;  %v1317_v33 = vld [vmem:[#allocation2 + $0x22] sm:$0xff]  ;;  %s10659_s29 = sshll.u32 %s12633_s3, 4 }
  0x54   : > { %789 = vst.msk [vmem:[#allocation2 + $0x189] sm:$0xff] %vm701_vm1, %v700_v20  ;;  %v1316_v28 = vld [vmem:[#allocation2 + $0x1a] sm:$0xff]  ;;  %v1318_v34 = vld [vmem:[#allocation2 + $0x32] sm:$0xff]  ;;  %v9836_v41 = vld [vmem:[%s15149_s24 + $0x8] sm:$0x3] }
  0x55   : > { %v1319_v35 = vld [vmem:[#allocation2 + $0x3a] sm:$0xff]  ;;  %v12995_v36 = vpack.c.bf16 %v1317_v33, %v1316_v28  ;;  %v1320_v45 = vld [vmem:[#allocation2 + $0x4a] sm:$0xff]  ;;  %v1321_v48 = vld [vmem:[#allocation2 + $0x52] sm:$0xff]  ;;  %4085 = vst.msk [vmem:[#allocation3 + $0x78] sm:$0x3] %vm4070_vm4, %v12497_v2 }
  0x56   : > { %v12997_v40 = vpack.c.bf16 %v1319_v35, %v1318_v34  ;;  %v1322_v49 = vld [vmem:[#allocation2 + $0x62] sm:$0xff]  ;;  %v1323_v50 = vld [vmem:[#allocation2 + $0x6a] sm:$0xff]  ;;  %v13009_v51 = vpack.c.bf16 %v1321_v48, %v1320_v45  ;;  %v1324_v57 = vld [vmem:[#allocation2 + $0x7a] sm:$0xff]  ;;  %4086 = vst.msk [vmem:[#allocation3 + $0x80] sm:$0xff] %vm4068_vm3, %v12497_v2 }
  0x57   : > { %10960 = vmatmul.mubr.msk.bf16.gmra.mrb[12].mxu0 %vm701_vm1, %v12884_v61  ;;  %v13011_v54 = vpack.c.bf16 %v1323_v50, %v1322_v49  ;;  %v1325_v58 = vld [vmem:[#allocation2 + $0x82] sm:$0xff]  ;;  %v1327_v59 = vld [vmem:[#allocation2 + $0x9a] sm:$0xff]  ;;  %v1328_v3 = vld [vmem:[#allocation2 + $0xaa] sm:$0xff]  ;;  %4087 = vst.msk [vmem:[#allocation3 + $0x88] sm:$0x3] %vm4070_vm4, %v12497_v2 }
  0x58   : > { %10963 = vmatprep.mubr.msk.bf16.mxu0 %vm701_vm1, %v12886_v62  ;;  %v13017_v0 = vpack.c.bf16 %v1325_v58, %v1324_v57  ;;  %v1329_v6 = vld [vmem:[#allocation2 + $0xb2] sm:$0xff]  ;;  %v1330_v9 = vld [vmem:[#allocation2 + $0xc2] sm:$0xff]  ;;  %v1331_v12 = vld [vmem:[#allocation2 + $0xca] sm:$0xff]  ;;  %4088 = vst.msk [vmem:[#allocation3 + $0x90] sm:$0xff] %vm4068_vm3, %v12497_v2 }
  0x59   : > { %v13025_v13 = vpack.c.bf16 %v1329_v6, %v1328_v3  ;;  %v13027_v14 = vpack.c.bf16 %v1331_v12, %v1330_v9  ;;  %v1332_v19 = vld [vmem:[#allocation2 + $0xda] sm:$0xff]  ;;  %v1333_v20 = vld [vmem:[#allocation2 + $0xe2] sm:$0xff]  ;;  %v1337_v28 = vld [vmem:[#allocation2 + $0x112] sm:$0xff]  ;;  %v2001_v6 = vsel %vm937_vm0, %v9836_v41, 0  ;;  %4089 = vst.msk [vmem:[#allocation3 + $0x98] sm:$0x3] %vm4070_vm4, %v12497_v2 }
  0x5a   : > { %v1338_v33 = vld [vmem:[#allocation2 + $0x122] sm:$0xff]  ;;  %v1339_v34 = vld [vmem:[#allocation2 + $0x12a] sm:$0xff]  ;;  %v1340_v45 = vld [vmem:[#allocation2 + $0x13a] sm:$0xff]  ;;  %5682 = vst.msk [vmem:[#allocation4 + $0x10] sm:$0x3f] %vm5679_vm12, %v12497_v2 }
  0x5b   : > { %v1341_v48 = vld [vmem:[#allocation2 + $0x142] sm:$0xff]  ;;  %v1342_v49 = vld [vmem:[#allocation2 + $0x152] sm:$0xff]  ;;  %v1343_v50 = vld [vmem:[#allocation2 + $0x15a] sm:$0xff]  ;;  %5680 = vst.msk [vmem:[#allocation4] sm:$0x3f] %vm5679_vm12, %v12497_v2 }
  0x5c   : > { %v13049_v57 = vpack.c.bf16 %v1341_v48, %v1340_v45  ;;  %v13051_v58 = vpack.c.bf16 %v1343_v50, %v1342_v49  ;;  %v9853_v9 = vld [vmem:[%s15149_s24 + $0xa] sm:$0x3]  ;;  %5681 = vst.msk [vmem:[#allocation4 + $0x8] sm:$0x3f] %vm5679_vm12, %v12497_v2  ;;  %5683 = vst.msk [vmem:[#allocation4 + $0x18] sm:$0x3f] %vm5679_vm12, %v12497_v2 }
  0x5d   : > { %5684 = vst.msk [vmem:[#allocation4 + $0x20] sm:$0x3f] %vm5679_vm12, %v12497_v2  ;;  %5685 = vst.msk [vmem:[#allocation4 + $0x28] sm:$0x3f] %vm5679_vm12, %v12497_v2 }
  0x5f   : > { %10964 = vmatmul.mubr.msk.bf16.gmra.mrb[16].mxu0 %vm701_vm1, %v12892_v4 }
  0x60   : > { %10967 = vmatprep.mubr.msk.bf16.mxu0 %vm701_vm1, %v12894_v5 }
  0x67   : > { %10968 = vmatmul.mubr.msk.bf16.gmra.mrb[20].mxu0 %vm701_vm1, %v12900_v10 }
  0x68   : > { %10971 = vmatprep.mubr.msk.bf16.mxu0 %vm701_vm1, %v12902_v11 }
  0x6f   : > { %10972 = vmatmul.mubr.msk.bf16.gmra.mrb[24].mxu0 %vm701_vm1, %v12908_v16 }
  0x70   : > { %10975 = vmatprep.mubr.msk.bf16.mxu0 %vm701_vm1, %v12910_v17 }
  0x77   : > { %10976 = vmatmul.mubr.msk.bf16.gmra.mrb[28].mxu0 %vm701_vm1, %v12918_v23 }
  0x78   : > { %10981 = vmatprep.mubr.msk.bf16.mxu0 %vm701_vm1, %v822_v24  ;;  %v1314_v24 = vld [vmem:[#allocation2 + $0x2] sm:$0xff] }
  0x79   : > { %v1346_v27 = vpack.c.bf16 %v1315_v25, %v1314_v24  ;;  %v13033_v24 = vpack.c.bf16 %v1333_v20, %v1332_v19  ;;  %v2295_v19 = vsel %vm937_vm0, %v9853_v9, 0  ;;  %v9870_v20 = vld [vmem:[%s15149_s24 + $0xc] sm:$0x3] }
  0x7f   : > { %10982 = vmatmul.mubr.msk.bf16.vlgmr.msra.gmra.mrb[0].mxu0 %vm701_vm1, %v12923_v29 }
  0x80   : > { %11014 = vmatpush3.bf16.msra.mxu0 %v1413_v22  ;;  %10985 = vmatprep.mubr.msk.bf16.mxu0 %vm701_vm1, %v12925_v30  ;;  %v821_v22 = vld [vmem:[#allocation2 + $0x170] sm:$0xff] }
  0x81   : > { %11816 = vmatprep.subr.msk.bf16.mxu0 %vm937_vm0, %v12930_v31  ;;  %v12990_v26 = vpack.c.bf16 %v821_v22, %v820_v21  ;;  %v1326_v31 = vld [vmem:[#allocation2 + $0x92] sm:$0xff]  ;;  %v1335_v22 = vld [vmem:[#allocation2 + $0xfa] sm:$0xff] }
  0x82   : > { %v13019_v1 = vpack.c.bf16 %v1327_v59, %v1326_v31  ;;  %v1334_v21 = vld [vmem:[#allocation2 + $0xf2] sm:$0xff]  ;;  %v1344_v31 = vld [vmem:[#allocation2 + $0x16a] sm:$0xff] }
  0x83   : > { %v13035_v25 = vpack.c.bf16 %v1335_v22, %v1334_v21  ;;  %v1345_v59 = vld [vmem:[#allocation2 + $0x172] sm:$0xff]  ;;  %v9887_v21 = vld [vmem:[%s15149_s24 + $0xe] sm:$0x3] }
  0x84   : > { %v13057_v3 = vpack.c.bf16 %v1345_v59, %v1344_v31  ;;  %v2227_v22 = vld [vmem:[#allocation2 + $0x18a] sm:$0xff] }
  0x87   : > { %10986 = vmatmul.mubr.msk.bf16.gmra.mrb[4].mxu0 %vm701_vm1, %v12938_v38 }
  0x88   : > { %10989 = vmatprep.mubr.msk.bf16.mxu0 %vm701_vm1, %v12940_v39 }
  0x8f   : > { %10990 = vmatmul.mubr.msk.bf16.gmra.mrb[8].mxu0 %vm701_vm1, %v12946_v46 }
  0x90   : > { %10993 = vmatprep.mubr.msk.bf16.mxu0 %vm701_vm1, %v12948_v47 }
  0x97   : > { %10994 = vmatmul.mubr.msk.bf16.gmra.mrb[12].mxu0 %vm701_vm1, %v12954_v52 }
  0x98   : > { %10997 = vmatprep.mubr.msk.bf16.mxu0 %vm701_vm1, %v12956_v53 }
  0x9f   : > { %10998 = vmatmul.mubr.msk.bf16.gmra.mrb[16].mxu0 %vm701_vm1, %v12962_v60 }
  0xa0   : > { %11001 = vmatprep.mubr.msk.bf16.mxu0 %vm701_vm1, %v12964_v63 }
  0xa7   : > { %11002 = vmatmul.mubr.msk.bf16.gmra.mrb[20].mxu0 %vm701_vm1, %v12970_v7 }
  0xa8   : > { %11005 = vmatprep.mubr.msk.bf16.mxu0 %vm701_vm1, %v12972_v8 }
  0xaf   : > { %11006 = vmatmul.mubr.msk.bf16.gmra.mrb[24].mxu0 %vm701_vm1, %v12978_v15 }
  0xb0   : > { %11009 = vmatprep.mubr.msk.bf16.mxu0 %vm701_vm1, %v12980_v18 }
  0xb7   : > { %11010 = vmatmul.mubr.msk.bf16.gmra.mrb[28].mxu0 %vm701_vm1, %v12990_v26 }
  0xb8   : > { %11015 = vmatprep.mubr.msk.bf16.mxu0 %vm701_vm1, %v1346_v27  ;;  %v1336_v27 = vld [vmem:[#allocation2 + $0x10a] sm:$0xff] }
  0xb9   : > { %v13041_v35 = vpack.c.bf16 %v1337_v28, %v1336_v27  ;;  %v2884_v28 = vsel %vm937_vm0, %v9887_v21, 0 }
  0xbf   : > { %11016 = vmatmul.mubr.msk.bf16.vlgmr.msra.gmra.mrb[0].mxu0 %vm701_vm1, %v12995_v36 }
  0xc0   : > { %11048 = vmatpush3.bf16.msra.mxu0 %v1707_v42  ;;  %11019 = vmatprep.mubr.msk.bf16.mxu0 %vm701_vm1, %v12997_v40  ;;  %v13043_v42 = vpack.c.bf16 %v1339_v34, %v1338_v33  ;;  %v9904_v33 = vld [vmem:[%s15149_s24 + $0x10] sm:$0x3] }
  0xc1   : > { %11817 = vmatprep.subr.msk.bf16.mxu0 %vm937_vm0, %v9836_v41  ;;  %v1639_v41 = vld [vmem:[#allocation2 + $0x188] sm:$0xff] }
  0xc7   : > { %11020 = vmatmul.mubr.msk.bf16.gmra.mrb[4].mxu0 %vm701_vm1, %v13009_v51 }
  0xc8   : > { %11023 = vmatprep.mubr.msk.bf16.mxu0 %vm701_vm1, %v13011_v54 }
  0xcf   : > { %11024 = vmatmul.mubr.msk.bf16.gmra.mrb[8].mxu0 %vm701_vm1, %v13017_v0 }
  0xd0   : > { %11027 = vmatprep.mubr.msk.bf16.mxu0 %vm701_vm1, %v13019_v1 }
  0xd7   : > { %11028 = vmatmul.mubr.msk.bf16.gmra.mrb[12].mxu0 %vm701_vm1, %v13025_v13 }
  0xd8   : > { %11031 = vmatprep.mubr.msk.bf16.mxu0 %vm701_vm1, %v13027_v14 }
  0xdf   : > { %11032 = vmatmul.mubr.msk.bf16.gmra.mrb[16].mxu0 %vm701_vm1, %v13033_v24 }
  0xe0   : > { %11035 = vmatprep.mubr.msk.bf16.mxu0 %vm701_vm1, %v13035_v25 }
  0xe7   : > { %11036 = vmatmul.mubr.msk.bf16.gmra.mrb[20].mxu0 %vm701_vm1, %v13041_v35 }
  0xe8   : > { %11039 = vmatprep.mubr.msk.bf16.mxu0 %vm701_vm1, %v13043_v42 }
  0xef   : > { %11040 = vmatmul.mubr.msk.bf16.gmra.mrb[24].mxu0 %vm701_vm1, %v13049_v57 }
  0xf0   : > { %11043 = vmatprep.mubr.msk.bf16.mxu0 %vm701_vm1, %v13051_v58 }
  0xf7   : > { %11044 = vmatmul.mubr.msk.bf16.gmra.mrb[28].mxu0 %vm701_vm1, %v13057_v3 }
  0xf8   : > { %11049 = vmatprep.mubr.msk.bf16.mxu0 %vm701_vm1, %v12923_v29  ;;  %v1638_v29 = vld [vmem:[#allocation2 + $0x180] sm:$0xff] }
  0xf9   : > { %v13096_v12 = vpack.c.bf16 %v1639_v41, %v1638_v29 }
  0xff   : > { %11050 = vmatmul.mubr.msk.bf16.vlgmr.msra.gmra.mrb[0].mxu0 %vm701_vm1, %v12925_v30 }
 0x100   : > { %11082 = vmatpush3.bf16.msra.mxu0 %v2001_v6  ;;  %11053 = vmatprep.mubr.msk.bf16.mxu0 %vm701_vm1, %v12938_v38 }
 0x101   : > { %11818 = vmatprep.subr.msk.bf16.mxu0 %vm937_vm0, %v9853_v9 }
 0x107   : > { %11054 = vmatmul.mubr.msk.bf16.gmra.mrb[4].mxu0 %vm701_vm1, %v12940_v39 }
 0x108   : > { %11057 = vmatprep.mubr.msk.bf16.mxu0 %vm701_vm1, %v12946_v46 }
 0x10f   : > { %11058 = vmatmul.mubr.msk.bf16.gmra.mrb[8].mxu0 %vm701_vm1, %v12948_v47 }
 0x110   : > { %11061 = vmatprep.mubr.msk.bf16.mxu0 %vm701_vm1, %v12954_v52 }
 0x117   : > { %11062 = vmatmul.mubr.msk.bf16.gmra.mrb[12].mxu0 %vm701_vm1, %v12956_v53 }
 0x118   : > { %11065 = vmatprep.mubr.msk.bf16.mxu0 %vm701_vm1, %v12962_v60 }
 0x11f   : > { %11066 = vmatmul.mubr.msk.bf16.gmra.mrb[16].mxu0 %vm701_vm1, %v12964_v63 }
 0x120   : > { %11069 = vmatprep.mubr.msk.bf16.mxu0 %vm701_vm1, %v12970_v7 }
 0x127   : > { %11070 = vmatmul.mubr.msk.bf16.gmra.mrb[20].mxu0 %vm701_vm1, %v12972_v8 }
 0x128   : > { %11073 = vmatprep.mubr.msk.bf16.mxu0 %vm701_vm1, %v12978_v15 }
 0x12f   : > { %11074 = vmatmul.mubr.msk.bf16.gmra.mrb[24].mxu0 %vm701_vm1, %v12980_v18 }
 0x130   : > { %11077 = vmatprep.mubr.msk.bf16.mxu0 %vm701_vm1, %v12990_v26 }
 0x137   : > { %11078 = vmatmul.mubr.msk.bf16.gmra.mrb[28].mxu0 %vm701_vm1, %v13096_v12 }
 0x138   : > { %11083 = vmatprep.mubr.msk.bf16.mxu0 %vm701_vm1, %v12836_v32  ;;  %v1932_v32 = vld [vmem:[#allocation2 + $0x181] sm:$0xff] }
 0x13f   : > { %11084 = vmatmul.mubr.msk.bf16.vlgmr.msra.gmra.mrb[0].mxu0 %vm701_vm1, %v12841_v37  ;;  %v1933_v37 = vld [vmem:[#allocation2 + $0x189] sm:$0xff] }
 0x140   : > { %11116 = vmatpush3.bf16.msra.mxu0 %v2295_v19  ;;  %11087 = vmatprep.mubr.msk.bf16.mxu0 %vm701_vm1, %v12856_v43  ;;  %v13135_v43 = vpack.c.bf16 %v1933_v37, %v1932_v32 }
 0x141   : > { %11819 = vmatprep.subr.msk.bf16.mxu0 %vm937_vm0, %v9870_v20 }
 0x147   : > { %11088 = vmatmul.mubr.msk.bf16.gmra.mrb[4].mxu0 %vm701_vm1, %v12858_v44  ;;  %v2590_v44 = vsel %vm937_vm0, %v9870_v20, 0 }
 0x148   : > { %11091 = vmatprep.mubr.msk.bf16.mxu0 %vm701_vm1, %v12876_v55 }
 0x14f   : > { %11092 = vmatmul.mubr.msk.bf16.gmra.mrb[8].mxu0 %vm701_vm1, %v12878_v56 }
 0x150   : > { %11095 = vmatprep.mubr.msk.bf16.mxu0 %vm701_vm1, %v12884_v61 }
 0x157   : > { %11096 = vmatmul.mubr.msk.bf16.gmra.mrb[12].mxu0 %vm701_vm1, %v12886_v62 }
 0x158   : > { %11099 = vmatprep.mubr.msk.bf16.mxu0 %vm701_vm1, %v12892_v4 }
 0x15f   : > { %11100 = vmatmul.mubr.msk.bf16.gmra.mrb[16].mxu0 %vm701_vm1, %v12894_v5 }
 0x160   : > { %11103 = vmatprep.mubr.msk.bf16.mxu0 %vm701_vm1, %v12900_v10 }
 0x167   : > { %11104 = vmatmul.mubr.msk.bf16.gmra.mrb[20].mxu0 %vm701_vm1, %v12902_v11 }
 0x168   : > { %11107 = vmatprep.mubr.msk.bf16.mxu0 %vm701_vm1, %v12908_v16 }
 0x16f   : > { %11108 = vmatmul.mubr.msk.bf16.gmra.mrb[24].mxu0 %vm701_vm1, %v12910_v17 }
 0x170   : > { %11111 = vmatprep.mubr.msk.bf16.mxu0 %vm701_vm1, %v12918_v23 }
 0x177   : > { %11112 = vmatmul.mubr.msk.bf16.gmra.mrb[28].mxu0 %vm701_vm1, %v13135_v43 }
 0x178   : > { %11117 = vmatprep.mubr.msk.bf16.mxu0 %vm701_vm1, %v12995_v36  ;;  %v2226_v36 = vld [vmem:[#allocation2 + $0x182] sm:$0xff] }
 0x179   : > { %v13174_v27 = vpack.c.bf16 %v2227_v22, %v2226_v36 }
 0x17f   : > { %11118 = vmatmul.mubr.msk.bf16.vlgmr.msra.gmra.mrb[0].mxu0 %vm701_vm1, %v12997_v40 }
 0x180   : > { %11150 = vmatpush3.bf16.msra.mxu0 %v2590_v44  ;;  %11121 = vmatprep.mubr.msk.bf16.mxu0 %vm701_vm1, %v13009_v51 }
 0x181   : > { %11820 = vmatprep.subr.msk.bf16.mxu0 %vm937_vm0, %v9887_v21 }
 0x187   : > { %11122 = vmatmul.mubr.msk.bf16.gmra.mrb[4].mxu0 %vm701_vm1, %v13011_v54 }
 0x188   : > { %11125 = vmatprep.mubr.msk.bf16.mxu0 %vm701_vm1, %v13017_v0 }
 0x18f   : > { %11126 = vmatmul.mubr.msk.bf16.gmra.mrb[8].mxu0 %vm701_vm1, %v13019_v1 }
 0x190   : > { %11129 = vmatprep.mubr.msk.bf16.mxu0 %vm701_vm1, %v13025_v13 }
 0x197   : > { %11130 = vmatmul.mubr.msk.bf16.gmra.mrb[12].mxu0 %vm701_vm1, %v13027_v14 }
 0x198   : > { %11133 = vmatprep.mubr.msk.bf16.mxu0 %vm701_vm1, %v13033_v24 }
 0x19f   : > { %11134 = vmatmul.mubr.msk.bf16.gmra.mrb[16].mxu0 %vm701_vm1, %v13035_v25 }
 0x1a0   : > { %11137 = vmatprep.mubr.msk.bf16.mxu0 %vm701_vm1, %v13041_v35 }
 0x1a7   : > { %11138 = vmatmul.mubr.msk.bf16.gmra.mrb[20].mxu0 %vm701_vm1, %v13043_v42 }
 0x1a8   : > { %11141 = vmatprep.mubr.msk.bf16.mxu0 %vm701_vm1, %v13049_v57 }
 0x1af   : > { %11142 = vmatmul.mubr.msk.bf16.gmra.mrb[24].mxu0 %vm701_vm1, %v13051_v58 }
 0x1b0   : > { %11145 = vmatprep.mubr.msk.bf16.mxu0 %vm701_vm1, %v13057_v3 }
 0x1b7   : > { %11146 = vmatmul.mubr.msk.bf16.gmra.mrb[28].mxu0 %vm701_vm1, %v13174_v27 }
 0x1b8   : > { %11151 = vmatprep.mubr.msk.bf16.mxu0 %vm701_vm1, %v12925_v30  ;;  %v2521_v30 = vld [vmem:[#allocation2 + $0x198] sm:$0xff] }
 0x1bf   : > { %11152 = vmatmul.mubr.msk.bf16.vlgmr.msra.gmra.mrb[0].mxu0 %vm701_vm1, %v12938_v38  ;;  %v2522_v38 = vld [vmem:[#allocation2 + $0x1a0] sm:$0xff] }
 0x1c0   : > { %11184 = vmatpush3.bf16.msra.mxu0 %v2884_v28  ;;  %11155 = vmatprep.mubr.msk.bf16.mxu0 %vm701_vm1, %v12940_v39  ;;  %v2785_v39 = vld [vmem:[#allocation2 + $0x31] sm:$0xff] }
 0x1c1   : > { %11821 = vmatprep.subr.msk.bf16.mxu0 %vm937_vm0, %v9904_v33 }
 0x1c7   : > { %11156 = vmatmul.mubr.msk.bf16.gmra.mrb[4].mxu0 %vm701_vm1, %v12946_v46  ;;  %v2786_v46 = vld [vmem:[#allocation2 + $0x39] sm:$0xff] }
 0x1c8   : > { %11159 = vmatprep.mubr.msk.bf16.mxu0 %vm701_vm1, %v12948_v47  ;;  %v2538_v47 = vpack.c.bf16 %v2522_v38, %v2521_v30 }
 0x1cf   : > { %11160 = vmatmul.mubr.msk.bf16.gmra.mrb[8].mxu0 %vm701_vm1, %v12954_v52  ;;  %v2817_v52 = vpack.c.bf16 %v2786_v46, %v2785_v39 }
 0x1d0   : > { %11163 = vmatprep.mubr.msk.bf16.mxu0 %vm701_vm1, %v12956_v53  ;;  %v2787_v53 = vld [vmem:[#allocation2 + $0x49] sm:$0xff] }
 0x1d7   : > { %11164 = vmatmul.mubr.msk.bf16.gmra.mrb[12].mxu0 %vm701_vm1, %v12962_v60  ;;  %v2788_v60 = vld [vmem:[#allocation2 + $0x51] sm:$0xff] }
 0x1d8   : > { %11167 = vmatprep.mubr.msk.bf16.mxu0 %vm701_vm1, %v12964_v63  ;;  %v2789_v63 = vld [vmem:[#allocation2 + $0x61] sm:$0xff] }
 0x1df   : > { %11168 = vmatmul.mubr.msk.bf16.gmra.mrb[16].mxu0 %vm701_vm1, %v12970_v7  ;;  %v2790_v7 = vld [vmem:[#allocation2 + $0x69] sm:$0xff] }
 0x1e0   : > { %11171 = vmatprep.mubr.msk.bf16.mxu0 %vm701_vm1, %v12972_v8  ;;  %v2818_v8 = vpack.c.bf16 %v2788_v60, %v2787_v53 }
 0x1e7   : > { %11172 = vmatmul.mubr.msk.bf16.gmra.mrb[20].mxu0 %vm701_vm1, %v12978_v15  ;;  %v2819_v15 = vpack.c.bf16 %v2790_v7, %v2789_v63 }
 0x1e8   : > { %11175 = vmatprep.mubr.msk.bf16.mxu0 %vm701_vm1, %v12980_v18  ;;  %v3178_v18 = vsel %vm937_vm0, %v9904_v33, 0  ;;  %vm9684_vm0 = vcmask 24576  }
 0x1ef   : > { %11176 = vmatmul.mubr.msk.bf16.gmra.mrb[24].mxu0 %vm701_vm1, %v12990_v26  ;;  %v12498_v26 = vmov 1983009808  }
 0x1f0   : > { %11179 = vmatprep.mubr.msk.bf16.mxu0 %vm701_vm1, %v13096_v12 }
 0x1f7   : > { %11180 = vmatmul.mubr.msk.bf16.gmra.mrb[28].mxu0 %vm701_vm1, %v2538_v47 }
 0x1f8   : > { %11185 = vmatprep.mubr.msk.bf16.mxu0 %vm701_vm1, %v2817_v52 }
 0x1ff   : > { %11186 = vmatmul.mubr.msk.bf16.vlgmr.msra.gmra.mrb[0].mxu0 %vm701_vm1, %v2818_v8 }
 0x200   : > { %11218 = vmatpush3.bf16.msra.mxu0 %v3178_v18  ;;  %11189 = vmatprep.mubr.msk.bf16.mxu0 %vm701_vm1, %v2819_v15 }
 0x207   : > { %11190 = vmatmul.mubr.msk.bf16.gmra.mrb[4].mxu0 %vm701_vm1, %v12876_v55  ;;  %v2815_v55 = vld [vmem:[#allocation2 + $0x199] sm:$0xff] }
 0x208   : > { %11193 = vmatprep.mubr.msk.bf16.mxu0 %vm701_vm1, %v12878_v56  ;;  %v2816_v56 = vld [vmem:[#allocation2 + $0x1a1] sm:$0xff] }
 0x20f   : > { %11194 = vmatmul.mubr.msk.bf16.gmra.mrb[8].mxu0 %vm701_vm1, %v12884_v61  ;;  %v2832_v61 = vpack.c.bf16 %v2816_v56, %v2815_v55 }
 0x210   : > { %11197 = vmatprep.mubr.msk.bf16.mxu0 %vm701_vm1, %v12886_v62  ;;  %v3109_v62 = vld [vmem:[#allocation2 + $0x19a] sm:$0xff] }
 0x217   : > { %11198 = vmatmul.mubr.msk.bf16.gmra.mrb[12].mxu0 %vm701_vm1, %v12892_v4  ;;  %v3110_v4 = vld [vmem:[#allocation2 + $0x1a2] sm:$0xff] }
 0x218   : > { %11201 = vmatprep.mubr.msk.bf16.mxu0 %vm701_vm1, %v12894_v5  ;;  %v3126_v5 = vpack.c.bf16 %v3110_v4, %v3109_v62 }
 0x21f   : > { %11202 = vmatmul.mubr.msk.bf16.gmra.mrb[16].mxu0 %vm701_vm1, %v12900_v10  ;;  %v11865_v10 = vld [vmem:[%s15151_s28 + $0x10] sm:$0xff]  }
 0x220   : > { %11205 = vmatprep.mubr.msk.bf16.mxu0 %vm701_vm1, %v12902_v11  ;;  %v11866_v11 = vld [vmem:[%s15151_s28] sm:$0xff]   ;;  %11251 = vmatprep.subr.bf16.mxu0 %v11865_v10 }
 0x221   : > { %11263 = vmatprep.subr.bf16.mxu1 %v11866_v11 }
 0x222   : > { %11264 = vmatpush3.bf16.msra.mxu1 %v11866_v11 }
 0x227   : > { %11206 = vmatmul.mubr.msk.bf16.gmra.mrb[20].mxu0 %vm701_vm1, %v12908_v16  ;;  %v11867_v16 = vld [vmem:[%s15151_s28 + $0x18] sm:$0xff]  }
 0x228   : > { %11209 = vmatprep.mubr.msk.bf16.mxu0 %vm701_vm1, %v12910_v17  ;;  %v11868_v17 = vld [vmem:[%s15151_s28 + $0x8] sm:$0xff]  }
 0x229   : > { %11265 = vmatprep.subr.bf16.mxu1 %v11868_v17 }
 0x22a   : > { %11266 = vmatpush3.bf16.msra.mxu1 %v11868_v17 }
 0x22f   : > { %11210 = vmatmul.mubr.msk.bf16.gmra.mrb[24].mxu0 %vm701_vm1, %v12918_v23  ;;  %v13329_v23 = vld [vmem:[%s15151_s28 + $0x20] sm:$0xff]  }
 0x230   : > { %11213 = vmatprep.mubr.msk.bf16.mxu0 %vm701_vm1, %v13135_v43  ;;  %11275 = vmatprep.subr.bf16.mxu1 %v13329_v23 }
 0x237   : > { %11214 = vmatmul.mubr.msk.bf16.gmra.mrb[28].mxu0 %vm701_vm1, %v2832_v61 }
 0x238   : > { %11219 = vmatprep.mubr.msk.bf16.mxu0 %vm701_vm1, %v12997_v40  ;;  %v3478_v40 = vunpack.c.l.s4 %v12498_v26 }
 0x23f   : > { %11220 = vmatmul.mubr.msk.bf16.vlgmr.msra.gmra.mrb[0].mxu0 %vm701_vm1, %v13009_v51  ;;  %v3480_v51 = vlaneseq }
 0x240   : > { %11223 = vmatprep.mubr.msk.bf16.mxu0 %vm701_vm1, %v13011_v54  ;;  %11252 = vmatpush3.bf16.msra.mxu0 %v11865_v10  ;;  %v13335_v54 = vld [vmem:[%s15152_s23] ss:$0 sm:$0xff] }
 0x241   : > { %11253 = vmatprep.subr.bf16.mxu0 %v11867_v16 }
 0x244   : > { %11254 = vmatpush3.bf16.msra.mxu0 %v11867_v16 }
 0x247   : > { %11224 = vmatmul.mubr.msk.bf16.gmra.mrb[4].mxu0 %vm701_vm1, %v13017_v0 }
 0x248   : > { %11227 = vmatprep.mubr.msk.bf16.mxu0 %vm701_vm1, %v13019_v1  ;;  %v3479_v1 = vunpack.c.0.s8 %v3478_v40 }
 0x24f   : > { %11228 = vmatmul.mubr.msk.bf16.gmra.mrb[8].mxu0 %vm701_vm1, %v13025_v13  ;;  %v13337_v13 = vshrl.u32 %v3480_v51, 7 }
 0x250   : > { %11231 = vmatprep.mubr.msk.bf16.mxu0 %vm701_vm1, %v13027_v14 }
 0x251   : > { %v13343_v49 = vsub.s32 %v3479_v1, %v13337_v13  ;;  %v13348_v6 = vsub.s32 0, %v13337_v13 }
 0x257   : > { %11232 = vmatmul.mubr.msk.bf16.gmra.mrb[12].mxu0 %vm701_vm1, %v13033_v24 }
 0x258   : > { %11235 = vmatprep.mubr.msk.bf16.mxu0 %vm701_vm1, %v13035_v25 }
 0x25f   : > { %11236 = vmatmul.mubr.msk.bf16.gmra.mrb[16].mxu0 %vm701_vm1, %v13041_v35 }
 0x260   : > { %11239 = vmatprep.mubr.msk.bf16.mxu0 %vm701_vm1, %v13043_v42 }
 0x267   : > { %11240 = vmatmul.mubr.msk.bf16.gmra.mrb[20].mxu0 %vm701_vm1, %v13049_v57 }
 0x268   : > { %11243 = vmatprep.mubr.msk.bf16.mxu0 %vm701_vm1, %v13051_v58 }
 0x26f   : > { %11244 = vmatmul.mubr.msk.bf16.gmra.mrb[24].mxu0 %vm701_vm1, %v13057_v3 }
 0x270   : > { %11247 = vmatprep.mubr.msk.bf16.mxu0 %vm701_vm1, %v13174_v27 }
 0x277   : > { %11248 = vmatmul.mubr.msk.bf16.gmra.mrb[28].mxu0 %vm701_vm1, %v3126_v5 }
 0x312   : > { %v11221_v0 = vpop.f32.mrb[0].mxu0 }
 0x313   : > { %v3382_v14 = vadd.f32 %v11221_v0, %v13335_v54  ;;  %v3214_v24 = vpop.f32.mrb[1].mxu0 }
 0x314   : > { %v3380_v25 = vadd.f32 %v13335_v54, %v3214_v24  ;;  %v11222_v34 = vpop.f32.mrb[2].mxu0 }
 0x315   : > { %v3414_v35 = vmax.f32 %v3382_v14, 0.0  ;;  %v3383_v42 = vadd.f32 %v11222_v34, %v13335_v54  ;;  %v3217_v45 = vpop.f32.mrb[3].mxu0 }
 0x316   : > { %v3412_v48 = vmax.f32 %v3380_v25, 0.0  ;;  %v3381_v50 = vadd.f32 %v13335_v54, %v3217_v45 }
 0x317   : > { %v3415_v57 = vmax.f32 %v3383_v42, 0.0 }
 0x318   : > { %v3444_v58 = vmax.f32 %v3412_v48, %v3414_v35  ;;  %v3413_v31 = vmax.f32 %v3381_v50, 0.0 }
 0x31a   : > { %v3476_v59 = vcombine.high %v3444_v58, %v3444_v58  ;;  %v3483_v3 = vrot.slane %v3444_v58, %v13343_v49  ;;  %v3445_v9 = vmax.f32 %v3413_v31, %v3415_v57  ;;  %v11225_v29 = vpop.f32.mrb[4].mxu0 }
 0x31b   : > { %v3386_v41 = vadd.f32 %v11225_v29, %v13335_v54  ;;  %v3230_v12 = vpop.f32.mrb[5].mxu0 }
 0x31c   : > { %v3490_v19 = vrot.slane %v3476_v59, %v13343_v49  ;;  %v3491_v20 = vcombine.high %v3483_v3, %v3483_v3  ;;  %v9922_v32 = vrot.slane %v3483_v3, 9  ;;  %v3493_v37 = vcombine.high %v3445_v9, %v3445_v9  ;;  %v11226_v43 = vpop.f32.mrb[6].mxu0 }
 0x31d   : > { %v3500_v44 = vrot.slane %v3445_v9, %v13343_v49  ;;  %v3418_v21 = vmax.f32 %v3386_v41, 0.0  ;;  %v3384_v36 = vadd.f32 %v13335_v54, %v3230_v12  ;;  %v13355_v22 = vadd.f32 %v11226_v43, %v13335_v54  ;;  %v3233_v27 = vpop.f32.mrb[7].mxu0 }
 0x31e   : > { %v3492_v28 = vcombine.high %v3490_v19, %v3490_v19  ;;  %v9923_v33 = vrot.slane %v3491_v20, 9  ;;  %v9924_v30 = vrot.slane %v3490_v19, 9  ;;  %v4004_v38 = vmax.f32 %v3483_v3, %v9922_v32 }
 0x31f   : > { %v3507_v39 = vrot.slane %v3493_v37, %v13343_v49  ;;  %v3508_v46 = vcombine.high %v3500_v44, %v3500_v44  ;;  %v9926_v47 = vrot.slane %v3500_v44, 9  ;;  %v3416_v52 = vmax.f32 %v3384_v36, 0.0 }
 0x320   : > { %v9925_v53 = vrot.slane %v3492_v28, 9  ;;  %v4005_v60 = vmax.f32 %v3491_v20, %v9923_v33  ;;  %v4006_v63 = vmax.f32 %v3490_v19, %v9924_v30  ;;  %v4157_v7 = vrot.slane %v4004_v38, %v13348_v6 }
 0x321   : > { %v3509_v8 = vcombine.high %v3507_v39, %v3507_v39  ;;  %v9927_v15 = vrot.slane %v3508_v46, 9  ;;  %v9928_v18 = vrot.slane %v3507_v39, 9  ;;  %v4008_v55 = vmax.f32 %v3500_v44, %v9926_v47 }
 0x322   : > { %v4007_v56 = vmax.f32 %v3492_v28, %v9925_v53  ;;  %v4161_v61 = vrot.slane %v4005_v60, %v13348_v6  ;;  %v4165_v62 = vrot.slane %v4006_v63, %v13348_v6  ;;  %v3446_v4 = vmax.f32 %v3416_v52, %v3418_v21  ;;  %v11229_v5 = vpop.f32.mrb[8].mxu0 }
 0x323   : > { %v9929_v10 = vrot.slane %v3509_v8, 9  ;;  %v4009_v11 = vmax.f32 %v3508_v46, %v9927_v15  ;;  %v4010_v16 = vmax.f32 %v3507_v39, %v9928_v18  ;;  %v4173_v17 = vrot.slane %v4008_v55, %v13348_v6  ;;  %v3246_v26 = vpop.f32.mrb[9].mxu0 }
 0x324   : > { %v4169_v40 = vrot.slane %v4007_v56, %v13348_v6  ;;  %v4411_v51 = vsel %vm4410_vm5, %v4161_v61, %v4157_v7  ;;  %v3510_v0 = vcombine.high %v3446_v4, %v3446_v4  ;;  %v3517_v1 = vrot.slane %v3446_v4, %v13343_v49  ;;  %v11230_v14 = vpop.f32.mrb[10].mxu0 }
 0x325   : > { %v4413_v24 = vsel %vm4412_vm6, %v4165_v62, %v4411_v51  ;;  %v4011_v25 = vmax.f32 %v3509_v8, %v9929_v10  ;;  %v4177_v34 = vrot.slane %v4009_v11, %v13348_v6  ;;  %v4181_v35 = vrot.slane %v4010_v16, %v13348_v6  ;;  %v3249_v42 = vpop.f32.mrb[11].mxu0 }
 0x326   : > { %v4415_v45 = vsel %vm4414_vm7, %v4169_v40, %v4413_v24  ;;  %v3524_v48 = vrot.slane %v3510_v0, %v13343_v49  ;;  %v3525_v50 = vcombine.high %v3517_v1, %v3517_v1  ;;  %v9930_v57 = vrot.slane %v3517_v1, 9 }
 0x327   : > { %v4185_v58 = vrot.slane %v4011_v25, %v13348_v6  ;;  %v4417_v31 = vsel %vm4416_vm8, %v4173_v17, %v4415_v45  ;;  %v3419_v59 = vmax.f32 %v13355_v22, 0.0  ;;  %v3385_v3 = vadd.f32 %v13335_v54, %v3233_v27 }
 0x328   : > { %v4419_v9 = vsel %vm4418_vm9, %v4177_v34, %v4417_v31  ;;  %v3526_v29 = vcombine.high %v3524_v48, %v3524_v48  ;;  %v9931_v41 = vrot.slane %v3525_v50, 9  ;;  %v9932_v12 = vrot.slane %v3524_v48, 9 }
 0x329   : > { %v4421_v19 = vsel %vm4420_vm10, %v4181_v35, %v4419_v9  ;;  %v4012_v20 = vmax.f32 %v3517_v1, %v9930_v57  ;;  %v3417_v32 = vmax.f32 %v3385_v3, 0.0  ;;  %v3390_v37 = vadd.f32 %v11229_v5, %v13335_v54 }
 0x32a   : > { %v4423_v43 = vsel %vm4422_vm11, %v4185_v58, %v4421_v19  ;;  %v9933_v44 = vrot.slane %v3526_v29, 9  ;;  %v4013_v21 = vmax.f32 %v3525_v50, %v9931_v41  ;;  %v4014_v36 = vmax.f32 %v3524_v48, %v9932_v12  ;;  %v11233_v28 = vpop.f32.mrb[12].mxu0 }
 0x32b   : > { %4482 = vst.msk [vmem:[#allocation3 + $0x11] sm:$0xff] %vm4068_vm3, %v4423_v43  ;;  %v4189_v22 = vrot.slane %v4012_v20, %v13348_v6  ;;  %v3447_v27 = vmax.f32 %v3417_v32, %v3419_v59  ;;  %v3422_v33 = vmax.f32 %v3390_v37, 0.0  ;;  %v3388_v30 = vadd.f32 %v13335_v54, %v3246_v26  ;;  %v3262_v38 = vpop.f32.mrb[13].mxu0 }
 0x32c   : > { %v4015_v39 = vmax.f32 %v3526_v29, %v9933_v44  ;;  %v4193_v46 = vrot.slane %v4013_v21, %v13348_v6  ;;  %v4197_v47 = vrot.slane %v4014_v36, %v13348_v6  ;;  %v3391_v52 = vadd.f32 %v11230_v14, %v13335_v54  ;;  %v13384_v53 = vpop.f32.mrb[14].mxu0 }
 0x32d   : > { %v3527_v60 = vcombine.high %v3447_v27, %v3447_v27  ;;  %v3534_v63 = vrot.slane %v3447_v27, %v13343_v49  ;;  %v3420_v7 = vmax.f32 %v3388_v30, 0.0  ;;  %v3389_v8 = vadd.f32 %v13335_v54, %v3249_v42  ;;  %v13388_v15 = vpop.f32.mrb[15].mxu0 }
 0x32e   : > { %v4201_v18 = vrot.slane %v4015_v39, %v13348_v6  ;;  %v4424_v55 = vsel %vm4410_vm5, %v4193_v46, %v4189_v22  ;;  %v3423_v56 = vmax.f32 %v3391_v52, 0.0  ;;  %v13393_v61 = vadd.f32 %v11233_v28, %v13335_v54 }
 0x32f   : > { %v4425_v62 = vsel %vm4412_vm6, %v4197_v47, %v4424_v55  ;;  %v3541_v4 = vrot.slane %v3527_v60, %v13343_v49  ;;  %v3542_v5 = vcombine.high %v3534_v63, %v3534_v63  ;;  %v9934_v10 = vrot.slane %v3534_v63, 9 }
 0x330   : > { %v4426_v11 = vsel %vm4414_vm7, %v4201_v18, %v4425_v62  ;;  %v3448_v16 = vmax.f32 %v3420_v7, %v3422_v33  ;;  %v3421_v17 = vmax.f32 %v3389_v8, 0.0  ;;  %v3426_v26 = vmax.f32 %v13393_v61, 0.0 }
 0x331   : > { %v3543_v40 = vcombine.high %v3541_v4, %v3541_v4  ;;  %v9935_v51 = vrot.slane %v3542_v5, 9  ;;  %v9936_v0 = vrot.slane %v3541_v4, 9  ;;  %v4016_v1 = vmax.f32 %v3534_v63, %v9934_v10 }
 0x332   : > { %v3544_v14 = vcombine.high %v3448_v16, %v3448_v16  ;;  %v3551_v24 = vrot.slane %v3448_v16, %v13343_v49  ;;  %v3449_v25 = vmax.f32 %v3421_v17, %v3423_v56  ;;  %v3392_v34 = vadd.f32 %v13335_v54, %v3262_v38  ;;  %v13401_v35 = vpop.f32.mrb[16].mxu0 }
 0x333   : > { %v9937_v42 = vrot.slane %v3543_v40, 9  ;;  %v4017_v45 = vmax.f32 %v3542_v5, %v9935_v51  ;;  %v4018_v48 = vmax.f32 %v3541_v4, %v9936_v0  ;;  %v4205_v50 = vrot.slane %v4016_v1, %v13348_v6  ;;  %v3278_v57 = vpop.f32.mrb[17].mxu0 }
 0x334   : > { %v3558_v58 = vrot.slane %v3544_v14, %v13343_v49  ;;  %v3559_v31 = vcombine.high %v3551_v24, %v3551_v24  ;;  %v9938_v59 = vrot.slane %v3551_v24, 9  ;;  %v3561_v3 = vcombine.high %v3449_v25, %v3449_v25  ;;  %v11238_v9 = vpop.f32.mrb[18].mxu0 }
 0x335   : > { %v4019_v29 = vmax.f32 %v3543_v40, %v9937_v42  ;;  %v4209_v41 = vrot.slane %v4017_v45, %v13348_v6  ;;  %v4213_v12 = vrot.slane %v4018_v48, %v13348_v6  ;;  %v4427_v19 = vsel %vm4416_vm8, %v4205_v50, %v4426_v11  ;;  %v13408_v20 = vpop.f32.mrb[19].mxu0 }
 0x336   : > { %v3560_v32 = vcombine.high %v3558_v58, %v3558_v58  ;;  %v9939_v37 = vrot.slane %v3559_v31, 9  ;;  %v9940_v43 = vrot.slane %v3558_v58, 9  ;;  %v4020_v44 = vmax.f32 %v3551_v24, %v9938_v59 }
 0x337   : > { %v4217_v21 = vrot.slane %v4019_v29, %v13348_v6  ;;  %v4428_v36 = vsel %vm4418_vm9, %v4209_v41, %v4427_v19  ;;  %v3568_v28 = vrot.slane %v3449_v25, %v13343_v49  ;;  %v3575_v22 = vrot.slane %v3561_v3, %v13343_v49 }
 0x338   : > { %v4429_v27 = vsel %vm4420_vm10, %v4213_v12, %v4428_v36  ;;  %v9941_v33 = vrot.slane %v3560_v32, 9  ;;  %v4021_v30 = vmax.f32 %v3559_v31, %v9939_v37  ;;  %v4022_v38 = vmax.f32 %v3558_v58, %v9940_v43 }
 0x339   : > { %v4430_v39 = vsel %vm4422_vm11, %v4217_v21, %v4429_v27  ;;  %v4221_v46 = vrot.slane %v4020_v44, %v13348_v6  ;;  %v3576_v47 = vcombine.high %v3568_v28, %v3568_v28  ;;  %v3577_v52 = vcombine.high %v3575_v22, %v3575_v22 }
 0x33a   : > { %4483 = vst.msk [vmem:[#allocation3 + $0x21] sm:$0xff] %vm4068_vm3, %v4430_v39  ;;  %v4023_v60 = vmax.f32 %v3560_v32, %v9941_v33  ;;  %v4225_v63 = vrot.slane %v4021_v30, %v13348_v6  ;;  %v4229_v7 = vrot.slane %v4022_v38, %v13348_v6  ;;  %v9942_v8 = vrot.slane %v3568_v28, 9  ;;  %v13420_v18 = vpop.f32.mrb[20].mxu0 }
 0x33b   : > { %v9943_v55 = vrot.slane %v3576_v47, 9  ;;  %v9944_v56 = vrot.slane %v3575_v22, 9  ;;  %v9945_v62 = vrot.slane %v3577_v52, 9  ;;  %v3424_v4 = vmax.f32 %v3392_v34, 0.0  ;;  %v13422_v5 = vpop.f32.mrb[21].mxu0 }
 0x33c   : > { %v4233_v10 = vrot.slane %v4023_v60, %v13348_v6  ;;  %v4431_v11 = vsel %vm4410_vm5, %v4225_v63, %v4221_v46  ;;  %v4024_v16 = vmax.f32 %v3568_v28, %v9942_v8  ;;  %v3395_v17 = vadd.f32 %v13384_v53, %v13335_v54  ;;  %v13428_v40 = vpop.f32.mrb[22].mxu0 }
 0x33d   : > { %v4432_v51 = vsel %vm4412_vm6, %v4229_v7, %v4431_v11  ;;  %v4025_v0 = vmax.f32 %v3576_v47, %v9943_v55  ;;  %v4026_v1 = vmax.f32 %v3575_v22, %v9944_v56  ;;  %v4027_v14 = vmax.f32 %v3577_v52, %v9945_v62  ;;  %v13431_v24 = vpop.f32.mrb[23].mxu0 }
 0x33e   : > { %v4237_v25 = vrot.slane %v4024_v16, %v13348_v6  ;;  %v4433_v34 = vsel %vm4414_vm7, %v4233_v10, %v4432_v51  ;;  %v3450_v42 = vmax.f32 %v3424_v4, %v3426_v26  ;;  %v3427_v45 = vmax.f32 %v3395_v17, 0.0 }
 0x33f   : > { %v4241_v48 = vrot.slane %v4025_v0, %v13348_v6  ;;  %v4245_v53 = vrot.slane %v4026_v1, %v13348_v6  ;;  %v4249_v50 = vrot.slane %v4027_v14, %v13348_v6  ;;  %v3393_v58 = vadd.f32 %v13335_v54, %v13388_v15 }
 0x340   : > { %v4434_v31 = vsel %vm4416_vm8, %v4237_v25, %v4433_v34  ;;  %v3578_v59 = vcombine.high %v3450_v42, %v3450_v42  ;;  %v3585_v3 = vrot.slane %v3450_v42, %v13343_v49  ;;  %v3398_v29 = vadd.f32 %v13401_v35, %v13335_v54 }
 0x341   : > { %v4435_v61 = vsel %vm4418_vm9, %v4241_v48, %v4434_v31  ;;  %v3425_v26 = vmax.f32 %v3393_v58, 0.0  ;;  %v3396_v41 = vadd.f32 %v13335_v54, %v3278_v57  ;;  %v13449_v12 = vadd.f32 %v11238_v9, %v13335_v54 }
 0x342   : > { %v4436_v19 = vsel %vm4420_vm10, %v4245_v53, %v4435_v61  ;;  %v3592_v15 = vrot.slane %v3578_v59, %v13343_v49  ;;  %v3593_v32 = vcombine.high %v3585_v3, %v3585_v3  ;;  %v9946_v37 = vrot.slane %v3585_v3, 9  ;;  %v13453_v43 = vpop.f32.mrb[24].mxu0 }
 0x343   : > { %v4437_v44 = vsel %vm4422_vm11, %v4249_v50, %v4436_v19  ;;  %v3451_v21 = vmax.f32 %v3425_v26, %v3427_v45  ;;  %v3430_v35 = vmax.f32 %v3398_v29, 0.0  ;;  %v3428_v36 = vmax.f32 %v3396_v41, 0.0  ;;  %v13456_v28 = vpop.f32.mrb[25].mxu0 }
 0x344   : > { %4484 = vst.msk [vmem:[#allocation3 + $0x31] sm:$0xff] %vm4068_vm3, %v4437_v44  ;;  %v3594_v57 = vcombine.high %v3592_v15, %v3592_v15  ;;  %v9947_v9 = vrot.slane %v3593_v32, 9  ;;  %v9948_v22 = vrot.slane %v3592_v15, 9  ;;  %v4028_v27 = vmax.f32 %v3585_v3, %v9946_v37  ;;  %v13459_v33 = vpop.f32.mrb[26].mxu0 }
 0x345   : > { %v3595_v30 = vcombine.high %v3451_v21, %v3451_v21  ;;  %v3602_v38 = vrot.slane %v3451_v21, %v13343_v49  ;;  %v3452_v39 = vmax.f32 %v3428_v36, %v3430_v35  ;;  %v3431_v46 = vmax.f32 %v13449_v12, 0.0  ;;  %v13463_v47 = vpop.f32.mrb[27].mxu0 }
 0x346   : > { %v9949_v52 = vrot.slane %v3594_v57, 9  ;;  %v4029_v60 = vmax.f32 %v3593_v32, %v9947_v9  ;;  %v4030_v63 = vmax.f32 %v3592_v15, %v9948_v22  ;;  %v4253_v7 = vrot.slane %v4028_v27, %v13348_v6  ;;  %v13487_v9 = vld [vmem:[#allocation3 + $0x11] sm:$0xff] }
 0x347   : > { %v3609_v8 = vrot.slane %v3595_v30, %v13343_v49  ;;  %v3610_v55 = vcombine.high %v3602_v38, %v3602_v38  ;;  %v9950_v56 = vrot.slane %v3602_v38, 9  ;;  %v3612_v62 = vcombine.high %v3452_v39, %v3452_v39 }
 0x348   : > { %v4031_v4 = vmax.f32 %v3594_v57, %v9949_v52  ;;  %v4257_v10 = vrot.slane %v4029_v60, %v13348_v6  ;;  %v4261_v11 = vrot.slane %v4030_v63, %v13348_v6  ;;  %v3619_v16 = vrot.slane %v3452_v39, %v13343_v49  ;;  %v4506_v57 = vld [vmem:[#allocation3 + $0x1] sm:$0xff]  ;;  %v13493_v52 = vld [vmem:[#allocation3 + $0x10] sm:$0xff] }
 0x349   : > { %v3611_v17 = vcombine.high %v3609_v8, %v3609_v8  ;;  %v9951_v51 = vrot.slane %v3610_v55, 9  ;;  %v9952_v0 = vrot.slane %v3609_v8, 9  ;;  %v4032_v1 = vmax.f32 %v3602_v38, %v9950_v56  ;;  %v4490_v39 = vld [vmem:[#allocation3] sm:$0xff] }
 0x34a   : > { %v4265_v14 = vrot.slane %v4031_v4, %v13348_v6  ;;  %v4438_v25 = vsel %vm4410_vm5, %v4257_v10, %v4253_v7  ;;  %v3626_v34 = vrot.slane %v3612_v62, %v13343_v49  ;;  %v3627_v42 = vcombine.high %v3619_v16, %v3619_v16  ;;  %v13473_v45 = vpop.f32.mrb[28].mxu0 }
 0x34b   : > { %v4439_v48 = vsel %vm4412_vm6, %v4261_v11, %v4438_v25  ;;  %v9953_v53 = vrot.slane %v3611_v17, 9  ;;  %v4033_v50 = vmax.f32 %v3610_v55, %v9951_v51  ;;  %v4034_v58 = vmax.f32 %v3609_v8, %v9952_v0  ;;  %v13476_v31 = vpop.f32.mrb[29].mxu0 }
 0x34c   : > { %v4269_v59 = vrot.slane %v4032_v1, %v13348_v6  ;;  %v4440_v3 = vsel %vm4414_vm7, %v4265_v14, %v4439_v48  ;;  %v3628_v29 = vcombine.high %v3626_v34, %v3626_v34  ;;  %v9954_v61 = vrot.slane %v3619_v16, 9  ;;  %v13480_v26 = vpop.f32.mrb[30].mxu0 }
 0x34d   : > { %v4035_v41 = vmax.f32 %v3611_v17, %v9953_v53  ;;  %v4273_v19 = vrot.slane %v4033_v50, %v13348_v6  ;;  %v4277_v15 = vrot.slane %v4034_v58, %v13348_v6  ;;  %v9955_v32 = vrot.slane %v3627_v42, 9  ;;  %v13484_v37 = vpop.f32.mrb[31].mxu0 }
 0x34e   : > { %v4441_v44 = vsel %vm4416_vm8, %v4269_v59, %v4440_v3  ;;  %v9956_v21 = vrot.slane %v3626_v34, 9  ;;  %v9957_v35 = vrot.slane %v3628_v29, 9  ;;  %v4036_v36 = vmax.f32 %v3619_v16, %v9954_v61 }
 0x34f   : > { %v4281_v22 = vrot.slane %v4035_v41, %v13348_v6  ;;  %v4442_v27 = vsel %vm4418_vm9, %v4273_v19, %v4441_v44  ;;  %v4037_v30 = vmax.f32 %v3627_v42, %v9955_v32  ;;  %v3397_v38 = vadd.f32 %v13335_v54, %v13408_v20 }
 0x350   : > { %v4443_v60 = vsel %vm4420_vm10, %v4277_v15, %v4442_v27  ;;  %v4038_v63 = vmax.f32 %v3626_v34, %v9956_v21  ;;  %v4039_v7 = vmax.f32 %v3628_v29, %v9957_v35  ;;  %v4285_v8 = vrot.slane %v4036_v36, %v13348_v6 }
 0x351   : > { %v4444_v55 = vsel %vm4422_vm11, %v4281_v22, %v4443_v60  ;;  %v4289_v56 = vrot.slane %v4037_v30, %v13348_v6  ;;  %v3429_v62 = vmax.f32 %v3397_v38, 0.0  ;;  %v4514_v4 = vpack.c.bf16 %v13487_v9, %v4506_v57 }
 0x352   : > { %4485 = vst.msk [vmem:[#allocation3 + $0x41] sm:$0xff] %vm4068_vm3, %v4444_v55  ;;  %v4293_v20 = vrot.slane %v4038_v63, %v13348_v6  ;;  %v4297_v10 = vrot.slane %v4039_v7, %v13348_v6  ;;  %v4498_v11 = vpack.c.bf16 %v13493_v52, %v4490_v39  ;;  %v3402_v16 = vadd.f32 %v13420_v18, %v13335_v54 }
 0x353   : > { %v4445_v17 = vsel %vm4410_vm5, %v4289_v56, %v4285_v8  ;;  %v3453_v51 = vmax.f32 %v3429_v62, %v3431_v46  ;;  %11255 = vmatprep.mubr.msk.bf16.mxu0 %vm4068_vm3, %v4514_v4  ;;  %v3400_v0 = vadd.f32 %v13335_v54, %v13422_v5  ;;  %v3403_v1 = vadd.f32 %v13428_v40, %v13335_v54 }
 0x354   : > { %v4446_v14 = vsel %vm4412_vm6, %v4293_v20, %v4445_v17  ;;  %11267 = vmatprep.mubr.msk.bf16.mxu1 %vm4068_vm3, %v4498_v11  ;;  %v3434_v25 = vmax.f32 %v3402_v16, 0.0  ;;  %v3401_v18 = vadd.f32 %v13335_v54, %v13431_v24  ;;  %v3406_v12 = vadd.f32 %v13453_v43, %v13335_v54 }
 0x355   : > { %v3629_v46 = vcombine.high %v3453_v51, %v3453_v51  ;;  %v3636_v34 = vrot.slane %v3453_v51, %v13343_v49  ;;  %v4447_v42 = vsel %vm4414_vm7, %v4297_v10, %v4446_v14  ;;  %v3432_v5 = vmax.f32 %v3400_v0, 0.0 }
 0x356   : > { %v3435_v48 = vmax.f32 %v3403_v1, 0.0  ;;  %v3433_v53 = vmax.f32 %v3401_v18, 0.0  ;;  %v3438_v40 = vmax.f32 %v3406_v12, 0.0  ;;  %v3404_v50 = vadd.f32 %v13335_v54, %v13456_v28 }
 0x357   : > { %v3643_v58 = vrot.slane %v3629_v46, %v13343_v49  ;;  %v3644_v59 = vcombine.high %v3636_v34, %v3636_v34  ;;  %v9958_v3 = vrot.slane %v3636_v34, 9  ;;  %v3454_v24 = vmax.f32 %v3432_v5, %v3434_v25 }
 0x358   : > { %v3455_v29 = vmax.f32 %v3433_v53, %v3435_v48  ;;  %v3436_v61 = vmax.f32 %v3404_v50, 0.0  ;;  %v13527_v43 = vadd.f32 %v13459_v33, %v13335_v54  ;;  %v13531_v41 = vadd.f32 %v13335_v54, %v13463_v47 }
 0x359   : > { %v3645_v19 = vcombine.high %v3643_v58, %v3643_v58  ;;  %v9959_v15 = vrot.slane %v3644_v59, 9  ;;  %v9960_v32 = vrot.slane %v3643_v58, 9  ;;  %v4040_v44 = vmax.f32 %v3636_v34, %v9958_v3 }
 0x35a   : > { %v3646_v28 = vcombine.high %v3454_v24, %v3454_v24  ;;  %v3653_v21 = vrot.slane %v3454_v24, %v13343_v49  ;;  %v3663_v35 = vcombine.high %v3455_v29, %v3455_v29  ;;  %v3670_v36 = vrot.slane %v3455_v29, %v13343_v49 }
 0x35b   : > { %v9961_v57 = vrot.slane %v3645_v19, 9  ;;  %v4041_v22 = vmax.f32 %v3644_v59, %v9959_v15  ;;  %v4042_v27 = vmax.f32 %v3643_v58, %v9960_v32  ;;  %v4301_v33 = vrot.slane %v4040_v44, %v13348_v6 }
 0x35c   : > { %v3660_v30 = vrot.slane %v3646_v28, %v13343_v49  ;;  %v3661_v38 = vcombine.high %v3653_v21, %v3653_v21  ;;  %v9962_v47 = vrot.slane %v3653_v21, 9  ;;  %v3677_v39 = vrot.slane %v3663_v35, %v13343_v49 }
 0x35d   : > { %v4043_v60 = vmax.f32 %v3645_v19, %v9961_v57  ;;  %v4305_v63 = vrot.slane %v4041_v22, %v13348_v6  ;;  %v4309_v7 = vrot.slane %v4042_v27, %v13348_v6  ;;  %v4448_v8 = vsel %vm4416_vm8, %v4301_v33, %v4447_v42  ;;  %v13552_v19 = vld [vmem:[#allocation3 + $0x31] sm:$0xff] }
 0x35e   : > { %v3662_v55 = vcombine.high %v3660_v30, %v3660_v30  ;;  %v9963_v56 = vrot.slane %v3661_v38, 9  ;;  %v9964_v62 = vrot.slane %v3660_v30, 9  ;;  %v4044_v4 = vmax.f32 %v3653_v21, %v9962_v47  ;;  %v13562_v57 = vld [vmem:[#allocation3 + $0x30] sm:$0xff] }
 0x35f   : > { %v4313_v20 = vrot.slane %v4043_v60, %v13348_v6  ;;  %v4449_v10 = vsel %vm4418_vm9, %v4305_v63, %v4448_v8  ;;  %v3678_v11 = vcombine.high %v3670_v36, %v3670_v36  ;;  %v3679_v16 = vcombine.high %v3677_v39, %v3677_v39  ;;  %v13573_v60 = vld [vmem:[#allocation3 + $0x20] sm:$0xff] }
 0x360   : > { %v4450_v17 = vsel %vm4420_vm10, %v4309_v7, %v4449_v10  ;;  %v9965_v51 = vrot.slane %v3662_v55, 9  ;;  %v4045_v0 = vmax.f32 %v3661_v38, %v9963_v56  ;;  %v4046_v1 = vmax.f32 %v3660_v30, %v9964_v62 }
 0x361   : > { %v4451_v14 = vsel %vm4422_vm11, %v4313_v20, %v4450_v17  ;;  %v4317_v25 = vrot.slane %v4044_v4, %v13348_v6  ;;  %v9966_v18 = vrot.slane %v3670_v36, 9  ;;  %v9967_v12 = vrot.slane %v3678_v11, 9 }
 0x362   : > { %4486 = vst.msk [vmem:[#allocation3 + $0x51] sm:$0xff] %vm4068_vm3, %v4451_v14  ;;  %v4047_v46 = vmax.f32 %v3662_v55, %v9965_v51  ;;  %v4321_v34 = vrot.slane %v4045_v0, %v13348_v6  ;;  %v4325_v42 = vrot.slane %v4046_v1, %v13348_v6  ;;  %v9968_v5 = vrot.slane %v3677_v39, 9  ;;  %v11870_v55 = vld [vmem:[%s15151_s28 + $0x28] sm:$0xff]  }
 0x363   : > { %v9969_v48 = vrot.slane %v3679_v16, 9  ;;  %v4048_v53 = vmax.f32 %v3670_v36, %v9966_v18  ;;  %v4049_v50 = vmax.f32 %v3678_v11, %v9967_v12  ;;  %v3456_v58 = vmax.f32 %v3436_v61, %v3438_v40  ;;  %v13560_v36 = vld [vmem:[#allocation3 + $0x21] sm:$0xff] }
 0x364   : > { %v4329_v59 = vrot.slane %v4047_v46, %v13348_v6  ;;  %v4452_v3 = vsel %vm4410_vm5, %v4321_v34, %v4317_v25  ;;  %v4050_v24 = vmax.f32 %v3677_v39, %v9968_v5  ;;  %v3439_v29 = vmax.f32 %v13527_v43, 0.0  ;;  %v13600_v46 = vld [vmem:[%s15151_s28 + $0x30] sm:$0xff]  }
 0x365   : > { %v4453_v15 = vsel %vm4412_vm6, %v4325_v42, %v4452_v3  ;;  %v4051_v32 = vmax.f32 %v3679_v16, %v9969_v48  ;;  %v4333_v44 = vrot.slane %v4048_v53, %v13348_v6  ;;  %v4337_v28 = vrot.slane %v4049_v50, %v13348_v6 }
 0x366   : > { %v4341_v21 = vrot.slane %v4050_v24, %v13348_v6  ;;  %v4454_v40 = vsel %vm4414_vm7, %v4329_v59, %v4453_v15  ;;  %v3680_v61 = vcombine.high %v3456_v58, %v3456_v58  ;;  %v3687_v35 = vrot.slane %v3456_v58, %v13343_v49 }
 0x367   : > { %v4345_v43 = vrot.slane %v4051_v32, %v13348_v6  ;;  %v4455_v22 = vsel %vm4416_vm8, %v4333_v44, %v4454_v40  ;;  %v3437_v27 = vmax.f32 %v13531_v41, 0.0  ;;  %v13569_v33 = vpack.c.bf16 %v13552_v19, %v13560_v36 }
 0x368   : > { %v4456_v30 = vsel %vm4418_vm9, %v4337_v28, %v4455_v22  ;;  %v3694_v38 = vrot.slane %v3680_v61, %v13343_v49  ;;  %v3695_v47 = vcombine.high %v3687_v35, %v3687_v35  ;;  %v9970_v39 = vrot.slane %v3687_v35, 9 }
 0x369   : > { %v4457_v63 = vsel %vm4420_vm10, %v4341_v21, %v4456_v30  ;;  %v3457_v7 = vmax.f32 %v3437_v27, %v3439_v29  ;;  %11256 = vmatmul.mubr.msk.bf16.vlgmr.msra.gmra.mrb[32].mxu0 %vm4068_vm3, %v13569_v33  ;;  %v13580_v41 = vpack.c.bf16 %v13562_v57, %v13573_v60  ;;  %v3410_v8 = vadd.f32 %v13473_v45, %v13335_v54 }
 0x36a   : > { %v4458_v56 = vsel %vm4422_vm11, %v4345_v43, %v4457_v63  ;;  %v3696_v62 = vcombine.high %v3694_v38, %v3694_v38  ;;  %v9971_v4 = vrot.slane %v3695_v47, 9  ;;  %v9972_v20 = vrot.slane %v3694_v38, 9  ;;  %v13619_v63 = vld [vmem:[#allocation3 + $0x41] sm:$0xff] }
 0x36b   : > { %4487 = vst.msk [vmem:[#allocation3 + $0x61] sm:$0xff] %vm4068_vm3, %v4458_v56  ;;  %v4052_v10 = vmax.f32 %v3687_v35, %v9970_v39  ;;  %v3697_v11 = vcombine.high %v3457_v7, %v3457_v7  ;;  %v3704_v16 = vrot.slane %v3457_v7, %v13343_v49  ;;  %11268 = vmatmul.mubr.msk.bf16.vlgmr.msra.gmra.mrb[0].mxu1 %vm4068_vm3, %v13580_v41  ;;  %v3442_v17 = vmax.f32 %v3410_v8, 0.0  ;;  %v13613_v35 = vld [vmem:[#allocation3 + $0x51] sm:$0xff] }
 0x36c   : > { %v9973_v45 = vrot.slane %v3696_v62, 9  ;;  %v4053_v51 = vmax.f32 %v3695_v47, %v9971_v4  ;;  %v4054_v0 = vmax.f32 %v3694_v38, %v9972_v20  ;;  %v3408_v1 = vadd.f32 %v13335_v54, %v13476_v31  ;;  %11276 = vmatpush3.bf16.msra.mxu1 %v13329_v23  ;;  %v13621_v7 = vld [vmem:[#allocation3 + $0x50] sm:$0xff] }
 0x36d   : > { %v4349_v14 = vrot.slane %v4052_v10, %v13348_v6  ;;  %v3711_v25 = vrot.slane %v3697_v11, %v13343_v49  ;;  %v3712_v18 = vcombine.high %v3704_v16, %v3704_v16  ;;  %v9974_v12 = vrot.slane %v3704_v16, 9  ;;  %11277 = vmatprep.subr.bf16.mxu1 %v11870_v55 }
 0x36e   : > { %v4055_v34 = vmax.f32 %v3696_v62, %v9973_v45  ;;  %v4353_v42 = vrot.slane %v4053_v51, %v13348_v6  ;;  %v4357_v5 = vrot.slane %v4054_v0, %v13348_v6  ;;  %v3440_v31 = vmax.f32 %v3408_v1, 0.0 }
 0x36f   : > { %v3713_v48 = vcombine.high %v3711_v25, %v3711_v25  ;;  %v9975_v23 = vrot.slane %v3712_v18, 9  ;;  %v9976_v53 = vrot.slane %v3711_v25, 9  ;;  %v4056_v50 = vmax.f32 %v3704_v16, %v9974_v12  ;;  %v13632_v16 = vld [vmem:[#allocation3 + $0x40] sm:$0xff] }
 0x370   : > { %v4361_v58 = vrot.slane %v4055_v34, %v13348_v6  ;;  %v4459_v59 = vsel %vm4410_vm5, %v4353_v42, %v4349_v14  ;;  %v3458_v3 = vmax.f32 %v3440_v31, %v3442_v17  ;;  %v3411_v24 = vadd.f32 %v13480_v26, %v13335_v54  ;;  %11278 = vmatpush3.bf16.msra.mxu1 %v11870_v55 }
 0x371   : > { %v4460_v29 = vsel %vm4412_vm6, %v4357_v5, %v4459_v59  ;;  %v9977_v15 = vrot.slane %v3713_v48, 9  ;;  %v4057_v32 = vmax.f32 %v3712_v18, %v9975_v23  ;;  %v4058_v44 = vmax.f32 %v3711_v25, %v9976_v53  ;;  %11287 = vmatprep.subr.bf16.mxu1 %v13600_v46  ;;  %v4701_v59 = vld [vmem:[#allocation3 + $0x2] sm:$0xff] }
 0x372   : > { %v4365_v28 = vrot.slane %v4056_v50, %v13348_v6  ;;  %v4461_v21 = vsel %vm4414_vm7, %v4361_v58, %v4460_v29  ;;  %v3714_v40 = vcombine.high %v3458_v3, %v3458_v3  ;;  %v3721_v61 = vrot.slane %v3458_v3, %v13343_v49  ;;  %v13652_v3 = vld [vmem:[#allocation3 + $0x12] sm:$0xff] }
 0x373   : > { %v4059_v43 = vmax.f32 %v3713_v48, %v9977_v15  ;;  %v4369_v26 = vrot.slane %v4057_v32, %v13348_v6  ;;  %v4373_v22 = vrot.slane %v4058_v44, %v13348_v6  ;;  %v3443_v27 = vmax.f32 %v3411_v24, 0.0  ;;  %v13654_v24 = vld [vmem:[#allocation3 + $0x61] sm:$0xff] }
 0x374   : > { %v4462_v30 = vsel %vm4416_vm8, %v4365_v28, %v4461_v21  ;;  %v3728_v38 = vrot.slane %v3714_v40, %v13343_v49  ;;  %v3729_v47 = vcombine.high %v3721_v61, %v3721_v61  ;;  %v9978_v39 = vrot.slane %v3721_v61, 9  ;;  %v4496_v21 = vld [vmem:[#allocation3 + $0x60] sm:$0xff] }
 0x375   : > { %v4377_v8 = vrot.slane %v4059_v43, %v13348_v6  ;;  %v4463_v55 = vsel %vm4418_vm9, %v4369_v26, %v4462_v30  ;;  %v3409_v56 = vadd.f32 %v13335_v54, %v13484_v37  ;;  %v13629_v62 = vpack.c.bf16 %v13613_v35, %v13619_v63 }
 0x376   : > { %v4464_v4 = vsel %vm4420_vm10, %v4373_v22, %v4463_v55  ;;  %v3730_v20 = vcombine.high %v3728_v38, %v3728_v38  ;;  %v9979_v10 = vrot.slane %v3729_v47, 9  ;;  %v9980_v11 = vrot.slane %v3728_v38, 9 }
 0x377   : > { %v4465_v17 = vsel %vm4422_vm11, %v4377_v8, %v4464_v4  ;;  %v4060_v45 = vmax.f32 %v3721_v61, %v9978_v39  ;;  %v3441_v51 = vmax.f32 %v3409_v56, 0.0  ;;  %11259 = vmatprep.mubr.msk.bf16.mxu0 %vm4068_vm3, %v13629_v62  ;;  %v13639_v54 = vpack.c.bf16 %v13621_v7, %v13632_v16 }
 0x378   : > { %4488 = vst.msk [vmem:[#allocation3 + $0x71] sm:$0xff] %vm4068_vm3, %v4465_v17  ;;  %v9981_v37 = vrot.slane %v3730_v20, 9  ;;  %v4061_v0 = vmax.f32 %v3729_v47, %v9979_v10  ;;  %v4062_v1 = vmax.f32 %v3728_v38, %v9980_v11  ;;  %v4709_v22 = vpack.c.bf16 %v13652_v3, %v4701_v59  ;;  %v4704_v10 = vld [vmem:[#allocation3 + $0x32] sm:$0xff] }
 0x379   : > { %v3459_v14 = vmax.f32 %v3441_v51, %v3443_v27  ;;  %11271 = vmatprep.mubr.msk.bf16.mxu1 %vm4068_vm3, %v13639_v54  ;;  %v4381_v18 = vrot.slane %v4060_v45, %v13348_v6  ;;  %v4706_v17 = vld [vmem:[#allocation3 + $0x52] sm:$0xff]  ;;  %v4703_v51 = vld [vmem:[#allocation3 + $0x22] sm:$0xff] }
 0x37a   : > { %v4063_v25 = vmax.f32 %v3730_v20, %v9981_v37  ;;  %v4385_v12 = vrot.slane %v4061_v0, %v13348_v6  ;;  %v4389_v34 = vrot.slane %v4062_v1, %v13348_v6  ;;  %v13680_v37 = vpack.c.bf16 %v4704_v10, %v4703_v51  ;;  %v4705_v0 = vld [vmem:[#allocation3 + $0x42] sm:$0xff] }
 0x37b   : > { %v3731_v42 = vcombine.high %v3459_v14, %v3459_v14  ;;  %v3738_v5 = vrot.slane %v3459_v14, %v13343_v49  ;;  %v11872_v1 = vld [vmem:[%s15151_s28 + $0x38] sm:$0xff]   ;;  %v13685_v14 = vpack.c.bf16 %v4706_v17, %v4705_v0 }
 0x37c   : > { %v4393_v31 = vrot.slane %v4063_v25, %v13348_v6  ;;  %v4466_v48 = vsel %vm4410_vm5, %v4385_v12, %v4381_v18  ;;  %v11873_v25 = vld [vmem:[%s15151_s28 + $0x40] sm:$0xff]   ;;  %v4707_v12 = vld [vmem:[#allocation3 + $0x62] sm:$0xff] }
 0x37d   : > { %v4467_v23 = vsel %vm4412_vm6, %v4389_v34, %v4466_v48  ;;  %v3745_v53 = vrot.slane %v3731_v42, %v13343_v49  ;;  %v3746_v50 = vcombine.high %v3738_v5, %v3738_v5  ;;  %v9982_v58 = vrot.slane %v3738_v5, 9 }
 0x37e   : > { %v4468_v61 = vsel %vm4414_vm7, %v4393_v31, %v4467_v23  ;;  %v4823_v42 = vpack.c.bf16 %v13573_v60, %v13493_v52  ;;  %v4825_v31 = vpack.c.bf16 %v4496_v21, %v13621_v7  ;;  %v11875_v52 = vld [vmem:[%s15151_s28 + $0x50] sm:$0xff]   ;;  %v4938_v7 = vpack.c.bf16 %v13619_v63, %v13552_v19 }
 0x37f   : > { %v3747_v29 = vcombine.high %v3745_v53, %v3745_v53  ;;  %v9983_v15 = vrot.slane %v3746_v50, 9  ;;  %v9984_v32 = vrot.slane %v3745_v53, 9  ;;  %v4064_v44 = vmax.f32 %v3738_v5, %v9982_v58  ;;  %v13656_v28 = vld [vmem:[#allocation3 + $0x71] sm:$0xff]  ;;  %v11879_v58 = vld [vmem:[%s15151_s28 + $0x70] sm:$0xff]  }
 0x380   : > { %v4497_v40 = vld [vmem:[#allocation3 + $0x70] sm:$0xff]  ;;  %v13661_v43 = vpack.c.bf16 %v13656_v28, %v13654_v24  ;;  %v11874_v5 = vld [vmem:[%s15151_s28 + $0x48] sm:$0xff]   ;;  %v4939_v23 = vpack.c.bf16 %v13654_v24, %v13613_v35  ;;  %v5051_v63 = vpack.c.bf16 %v4703_v51, %v13652_v3  ;;  %v5052_v35 = vpack.c.bf16 %v4705_v0, %v4704_v10  ;;  %v11880_v24 = vld [vmem:[%s15151_s28 + $0x78] sm:$0xff]  }
 0x381   : > { %v13663_v26 = vpack.c.bf16 %v4497_v40, %v4496_v21  ;;  %v9985_v27 = vrot.slane %v3747_v29, 9  ;;  %v4065_v30 = vmax.f32 %v3746_v50, %v9983_v15  ;;  %v4066_v38 = vmax.f32 %v3745_v53, %v9984_v32  ;;  %v4708_v18 = vld [vmem:[#allocation3 + $0x72] sm:$0xff] }
 0x382   : > { %v4397_v47 = vrot.slane %v4064_v44, %v13348_v6  ;;  %11260 = vmatmul.mubr.msk.bf16.gmra.mrb[36].mxu0 %vm4068_vm3, %v13661_v43  ;;  %v13695_v34 = vpack.c.bf16 %v4708_v18, %v4707_v12  ;;  %v11878_v53 = vld [vmem:[%s15151_s28 + $0x68] sm:$0xff]   ;;  %v5053_v50 = vpack.c.bf16 %v4707_v12, %v4706_v17  ;;  %v5165_v15 = vld [vmem:[#allocation3 + $0x90] sm:$0xff] }
 0x383   : > { %11272 = vmatmul.mubr.msk.bf16.gmra.mrb[4].mxu1 %vm4068_vm3, %v13663_v26  ;;  %v4067_v39 = vmax.f32 %v3747_v29, %v9985_v27  ;;  %v4401_v8 = vrot.slane %v4065_v30, %v13348_v6  ;;  %v4405_v56 = vrot.slane %v4066_v38, %v13348_v6  ;;  %v11881_v29 = vld [vmem:[%s15151_s28 + $0x80] sm:$0xff]   ;;  %v11884_v38 = vld [vmem:[%s15153_s6 + $0x28] sm:$0xff]  }
 0x384   : > { %v4469_v55 = vsel %vm4416_vm8, %v4397_v47, %v4468_v61  ;;  %11279 = vmatprep.mubr.msk.bf16.mxu1 %vm4068_vm3, %v4709_v22  ;;  %v11883_v30 = vld [vmem:[%s15153_s6 + $0x20] sm:$0xff]   ;;  %v11885_v47 = vld [vmem:[%s15153_s6 + $0x30] sm:$0xff]  }
 0x385   : > { %v4409_v4 = vrot.slane %v4067_v39, %v13348_v6  ;;  %v4470_v20 = vsel %vm4418_vm9, %v4401_v8, %v4469_v55  ;;  %v11886_v39 = vld [vmem:[%s15153_s6 + $0x38] sm:$0xff]   ;;  %v13800_v55 = vld [vmem:[%s15154_s30] ss:$0 sm:$0xff]  ;;  %s658_s30 = sand.u32 1, %s12487_s25  }
 0x386   : > { %v4471_v11 = vsel %vm4420_vm10, %v4405_v56, %v4470_v20  ;;  %s659_s23 = scalar_lea.vmem [#allocation6], %s658_s30 }
 0x387   : > { %v4472_v45 = vsel %vm4422_vm11, %v4409_v4, %v4471_v11  ;;  %s9699_s22 = sshll.u32 %s659_s23, 4  ;;  %s15064_s22 = int_to_ptr.vmem [resolvable:$true] %s9699_s22 }
 0x388   : > { %4489 = vst.msk [vmem:[#allocation3 + $0x81] sm:$0xff] %vm4068_vm3, %v4472_v45  ;;  %s12433_s3 = scalar_lea.vmem %s15064_s22, 16 }
 0x389   : > { %p12434_p11 = scmp.ne.s32.totalorder %s15064_s22, %s12433_s3 }
 0x38b   : > { %11280 = vmatmul.mubr.msk.bf16.vlgmr.msra.gmra.mrb[0].mxu1 %vm4068_vm3, %v13680_v37  ;;  %p12435_p12 = pnand %p12434_p11, %p12650_p5 }
 0x38c   : > { %11283 = vmatprep.mubr.msk.bf16.mxu1 %vm4068_vm3, %v13685_v14  ;;  %11288 = vmatpush3.bf16.msra.mxu1 %v13600_v46  ;;  %v4824_v46 = vpack.c.bf16 %v13632_v16, %v13562_v57  ;;  %v4937_v57 = vpack.c.bf16 %v13560_v36, %v13487_v9  ;;  %v11876_v16 = vld [vmem:[%s15151_s28 + $0x58] sm:$0xff]   ;;  %v11877_v9 = vld [vmem:[%s15151_s28 + $0x60] sm:$0xff]  }
 0x38d   : > { %11289 = vmatprep.subr.bf16.mxu1 %v11872_v1  ;;  %p12436_p13 = pneg %p12435_p12 }
 0x38f   : > { %v4822_v60 = vld [vmem:[#allocation3 + $0x80] sm:$0xff] }
 0x390   : > { %11290 = vmatpush3.bf16.msra.mxu1 %v11872_v1  ;;  %v4826_v48 = vpack.c.bf16 %v4822_v60, %v4497_v40  ;;  %v4936_v36 = vld [vmem:[#allocation3 + $0x81] sm:$0xff]  ;;  %v5169_v32 = vpack.c.bf16 %v5165_v15, %v4822_v60 }
 0x391   : > { %11299 = vmatprep.subr.bf16.mxu1 %v11873_v25  ;;  %v4940_v19 = vpack.c.bf16 %v4936_v36, %v13656_v28  ;;  %v5050_v59 = vld [vmem:[#allocation3 + $0x82] sm:$0xff] }
 0x392   : > { %v5054_v3 = vpack.c.bf16 %v5050_v59, %v4708_v18 }
 0x393   : > { %11284 = vmatmul.mubr.msk.bf16.gmra.mrb[4].mxu1 %vm4068_vm3, %v13695_v34 }
 0x394   : > { %11291 = vmatprep.mubr.msk.bf16.mxu1 %vm4068_vm3, %v4823_v42 }
 0x39b   : > { %11292 = vmatmul.mubr.msk.bf16.vlgmr.msra.gmra.mrb[0].mxu1 %vm4068_vm3, %v4824_v46 }
 0x39c   : > { %11295 = vmatprep.mubr.msk.bf16.mxu1 %vm4068_vm3, %v4825_v31  ;;  %11300 = vmatpush3.bf16.msra.mxu1 %v11873_v25 }
 0x39d   : > { %11301 = vmatprep.subr.bf16.mxu1 %v11874_v5 }
 0x3a0   : > { %11302 = vmatpush3.bf16.msra.mxu1 %v11874_v5 }
 0x3a1   : > { %11311 = vmatprep.subr.bf16.mxu1 %v11875_v52 }
 0x3a3   : > { %11296 = vmatmul.mubr.msk.bf16.gmra.mrb[4].mxu1 %vm4068_vm3, %v4826_v48 }
 0x3a4   : > { %11303 = vmatprep.mubr.msk.bf16.mxu1 %vm4068_vm3, %v4937_v57 }
 0x3ab   : > { %11304 = vmatmul.mubr.msk.bf16.vlgmr.msra.gmra.mrb[0].mxu1 %vm4068_vm3, %v4938_v7 }
 0x3ac   : > { %11307 = vmatprep.mubr.msk.bf16.mxu1 %vm4068_vm3, %v4939_v23  ;;  %11312 = vmatpush3.bf16.msra.mxu1 %v11875_v52 }
 0x3ad   : > { %11313 = vmatprep.subr.bf16.mxu1 %v11876_v16 }
 0x3b0   : > { %11314 = vmatpush3.bf16.msra.mxu1 %v11876_v16 }
 0x3b1   : > { %11323 = vmatprep.subr.bf16.mxu1 %v11877_v9 }
 0x3b3   : > { %11308 = vmatmul.mubr.msk.bf16.gmra.mrb[4].mxu1 %vm4068_vm3, %v4940_v19 }
 0x3b4   : > { %11315 = vmatprep.mubr.msk.bf16.mxu1 %vm4068_vm3, %v5051_v63 }
 0x3bb   : > { %11316 = vmatmul.mubr.msk.bf16.vlgmr.msra.gmra.mrb[0].mxu1 %vm4068_vm3, %v5052_v35 }
 0x3bc   : > { %11319 = vmatprep.mubr.msk.bf16.mxu1 %vm4068_vm3, %v5053_v50  ;;  %11324 = vmatpush3.bf16.msra.mxu1 %v11877_v9 }
 0x3bd   : > { %11325 = vmatprep.subr.bf16.mxu1 %v11878_v53 }
 0x3c0   : > { %11326 = vmatpush3.bf16.msra.mxu1 %v11878_v53 }
 0x3c1   : > { %11335 = vmatprep.subr.bf16.mxu1 %v11879_v58 }
 0x3c3   : > { %11320 = vmatmul.mubr.msk.bf16.gmra.mrb[4].mxu1 %vm4068_vm3, %v5054_v3 }
 0x3c4   : > { %11327 = vmatprep.mubr.msk.bf16.mxu1 %vm4068_vm3, %v13580_v41  ;;  %v11882_v41 = vld [vmem:[%s15151_s28 + $0x88] sm:$0xff]   ;;  %s9687_s28 = scalar_lea.sflag [#allocation7], %s658_s30 }
 0x3cb   : > { %11328 = vmatmul.mubr.msk.bf16.vlgmr.msra.gmra.mrb[0].mxu1 %vm4068_vm3, %v13639_v54  ;;  %v5279_v54 = vld [vmem:[#allocation3 + $0x91] sm:$0xff] }
 0x3cc   : > { %11331 = vmatprep.mubr.msk.bf16.mxu1 %vm4068_vm3, %v13663_v26  ;;  %11336 = vmatpush3.bf16.msra.mxu1 %v11879_v58  ;;  %v5283_v44 = vpack.c.bf16 %v5279_v54, %v4936_v36 }
 0x3cd   : > { %11337 = vmatprep.subr.bf16.mxu1 %v11880_v24 }
 0x3d0   : > { %11338 = vmatpush3.bf16.msra.mxu1 %v11880_v24 }
 0x3d1   : > { %11347 = vmatprep.subr.bf16.mxu1 %v11881_v29 }
 0x3d3   : > { %11332 = vmatmul.mubr.msk.bf16.gmra.mrb[4].mxu1 %vm4068_vm3, %v5169_v32 }
 0x3d4   : > { %11339 = vmatprep.mubr.msk.bf16.mxu1 %vm4068_vm3, %v13569_v33  ;;  %v5393_v33 = vld [vmem:[#allocation3 + $0x92] sm:$0xff] }
 0x3db   : > { %11340 = vmatmul.mubr.msk.bf16.vlgmr.msra.gmra.mrb[0].mxu1 %vm4068_vm3, %v13629_v62  ;;  %v5397_v62 = vpack.c.bf16 %v5393_v33, %v5050_v59 }
 0x3dc   : > { %11343 = vmatprep.mubr.msk.bf16.mxu1 %vm4068_vm3, %v13661_v43  ;;  %11348 = vmatpush3.bf16.msra.mxu1 %v11881_v29 }
 0x3dd   : > { %11349 = vmatprep.subr.bf16.mxu1 %v11882_v41 }
 0x3e0   : > { %11350 = vmatpush3.bf16.msra.mxu1 %v11882_v41 }
 0x3e1   : > { %11359 = vmatprep.subr.bf16.mxu1 %v12497_v2 }
 0x3e3   : > { %11344 = vmatmul.mubr.msk.bf16.gmra.mrb[4].mxu1 %vm4068_vm3, %v5283_v44 }
 0x3e4   : > { %11351 = vmatprep.mubr.msk.bf16.mxu1 %vm4068_vm3, %v13680_v37 }
 0x3eb   : > { %11352 = vmatmul.mubr.msk.bf16.vlgmr.msra.gmra.mrb[0].mxu1 %vm4068_vm3, %v13685_v14 }
 0x3ec   : > { %11355 = vmatprep.mubr.msk.bf16.mxu1 %vm4068_vm3, %v13695_v34  ;;  %11360 = vmatpush3.bf16.msra.mxu1 %v11883_v30 }
 0x3ed   : > { %11361 = vmatprep.subr.bf16.mxu1 %v12497_v2 }
 0x3f0   : > { %11362 = vmatpush3.bf16.msra.mxu1 %v11884_v38 }
 0x3f1   : > { %11363 = vmatprep.subr.bf16.mxu1 %v12497_v2 }
 0x3f3   : > { %11356 = vmatmul.mubr.msk.bf16.gmra.mrb[4].mxu1 %vm4068_vm3, %v5397_v62 }
 0x3f4   : > { %11367 = vmatprep.mubr.msk.bf16.mxu1 %vm12499_vm13, %v12497_v2  ;;  %11364 = vmatpush3.bf16.msra.mxu1 %v11885_v47 }
 0x3f5   : > { %11365 = vmatprep.subr.bf16.mxu1 %v12497_v2 }
 0x3f8   : > { %11366 = vmatpush3.bf16.msra.mxu1 %v11886_v39 }
 0x3f9   : > { %11371 = vmatprep.subr.bf16.mxu1 %v12497_v2 }
 0x43c   : > { %v11257_v28 = vpop.f32.mrb[32].mxu0 }
 0x43d   : > { %v4581_v21 = vpop.f32.mrb[33].mxu0 }
 0x43e   : > { %v11258_v40 = vpop.f32.mrb[34].mxu0 }
 0x43f   : > { %v4584_v61 = vpop.f32.mrb[35].mxu0 }
 0x455   : > { %v11261_v43 = vpop.f32.mrb[36].mxu0 }
 0x456   : > { %v4597_v26 = vpop.f32.mrb[37].mxu0 }
 0x457   : > { %v11262_v22 = vpop.f32.mrb[38].mxu0 }
 0x458   : > { %v4600_v27 = vpop.f32.mrb[39].mxu0 }
 0x4be   : > { %v11353_v8 = vpop.f32.mrb[0].mxu1 }
 0x4bf   : > { %v11487_v56 = vadd.f32 %v11353_v8, %v11257_v28  ;;  %v5461_v4 = vpop.f32.mrb[1].mxu1 }
 0x4c0   : > { %v11488_v20 = vadd.f32 %v5461_v4, %v4581_v21  ;;  %v11354_v10 = vpop.f32.mrb[2].mxu1 }
 0x4c1   : > { %v5509_v11 = vadd.f32 %v11487_v56, %v13800_v55  ;;  %v11489_v17 = vadd.f32 %v11354_v10, %v11258_v40  ;;  %v5464_v45 = vpop.f32.mrb[3].mxu1 }
 0x4c2   : > { %v5507_v51 = vadd.f32 %v11488_v20, %v13800_v55  ;;  %v11490_v37 = vadd.f32 %v5464_v45, %v4584_v61 }
 0x4c3   : > { %v5510_v0 = vadd.f32 %v11489_v17, %v13800_v55  ;;  %v5517_v14 = vmax.f32 %v5509_v11, 0.0 }
 0x4c4   : > { %v5508_v1 = vadd.f32 %v11490_v37, %v13800_v55  ;;  %v5515_v18 = vmax.f32 %v5507_v51, 0.0 }
 0x4c5   : > { %v5518_v25 = vmax.f32 %v5510_v0, 0.0 }
 0x4c6   : > { %v5516_v12 = vmax.f32 %v5508_v1, 0.0  ;;  %v11357_v34 = vpop.f32.mrb[4].mxu1 }
 0x4c7   : > { %v5524_v42 = vmax.f32 %v5517_v14, %v5518_v25  ;;  %v11491_v46 = vadd.f32 %v11357_v34, %v11261_v43  ;;  %v5477_v5 = vpop.f32.mrb[5].mxu1 }
 0x4c8   : > { %v5523_v31 = vmax.f32 %v5515_v18, %v5516_v12  ;;  %v11492_v52 = vadd.f32 %v5477_v5, %v4597_v26  ;;  %v11358_v60 = vpop.f32.mrb[6].mxu1 }
 0x4c9   : > { %v5548_v48 = vcombine.high %v5524_v42, %v5524_v42  ;;  %v5555_v57 = vrot.slane %v5524_v42, %v13343_v49  ;;  %v5513_v7 = vadd.f32 %v11491_v46, %v13800_v55  ;;  %v11493_v16 = vadd.f32 %v11358_v60, %v11262_v22  ;;  %v5480_v23 = vpop.f32.mrb[7].mxu1 }
 0x4ca   : > { %v5531_v9 = vcombine.high %v5523_v31, %v5523_v31  ;;  %v5538_v36 = vrot.slane %v5523_v31, %v13343_v49  ;;  %v11494_v19 = vadd.f32 %v5480_v23, %v4600_v27  ;;  %v5511_v50 = vadd.f32 %v11492_v52, %v13800_v55 }
 0x4cb   : > { %v5562_v63 = vrot.slane %v5548_v48, %v13343_v49  ;;  %v5563_v35 = vcombine.high %v5555_v57, %v5555_v57  ;;  %v10077_v53 = vrot.slane %v5555_v57, 9  ;;  %v5521_v24 = vmax.f32 %v5513_v7, 0.0 }
 0x4cc   : > { %v5545_v58 = vrot.slane %v5531_v9, %v13343_v49  ;;  %v5546_v59 = vcombine.high %v5538_v36, %v5538_v36  ;;  %v10073_v3 = vrot.slane %v5538_v36, 9  ;;  %v5514_v39 = vadd.f32 %v11493_v16, %v13800_v55 }
 0x4cd   : > { %v5564_v29 = vcombine.high %v5562_v63, %v5562_v63  ;;  %v10078_v15 = vrot.slane %v5563_v35, 9  ;;  %v10079_v32 = vrot.slane %v5562_v63, 9  ;;  %v5667_v41 = vmax.f32 %v5555_v57, %v10077_v53 }
 0x4ce   : > { %v5547_v54 = vcombine.high %v5545_v58, %v5545_v58  ;;  %v10074_v44 = vrot.slane %v5546_v59, 9  ;;  %v10075_v33 = vrot.slane %v5545_v58, 9  ;;  %v5663_v62 = vmax.f32 %v5538_v36, %v10073_v3 }
 0x4cf   : > { %v10080_v28 = vrot.slane %v5564_v29, 9  ;;  %v5668_v21 = vmax.f32 %v5563_v35, %v10078_v15  ;;  %v5669_v40 = vmax.f32 %v5562_v63, %v10079_v32  ;;  %v5721_v61 = vrot.slane %v5667_v41, %v13348_v6 }
 0x4d0   : > { %v10076_v43 = vrot.slane %v5547_v54, 9  ;;  %v5664_v26 = vmax.f32 %v5546_v59, %v10074_v44  ;;  %v5665_v22 = vmax.f32 %v5545_v58, %v10075_v33  ;;  %v5705_v27 = vrot.slane %v5663_v62, %v13348_v6 }
 0x4d1   : > { %v5670_v30 = vmax.f32 %v5564_v29, %v10080_v28  ;;  %v5725_v38 = vrot.slane %v5668_v21, %v13348_v6  ;;  %v5729_v47 = vrot.slane %v5669_v40, %v13348_v6  ;;  %v5512_v20 = vadd.f32 %v11494_v19, %v13800_v55 }
 0x4d2   : > { %v5666_v8 = vmax.f32 %v5547_v54, %v10076_v43  ;;  %v5709_v56 = vrot.slane %v5664_v26, %v13348_v6  ;;  %v5713_v4 = vrot.slane %v5665_v22, %v13348_v6  ;;  %v5519_v17 = vmax.f32 %v5511_v50, 0.0 }
 0x4d3   : > { %v5733_v10 = vrot.slane %v5670_v30, %v13348_v6  ;;  %v5769_v11 = vsel %vm4410_vm5, %v5725_v38, %v5721_v61  ;;  %v5522_v45 = vmax.f32 %v5514_v39, 0.0  ;;  %v5520_v1 = vmax.f32 %v5512_v20, 0.0  ;;  %v11889_v39 = vld [vmem:[%s15153_s6] sm:$0xff]   ;;  %v11892_v20 = vld [vmem:[%s15153_s6 + $0x18] sm:$0xff]  }
 0x4d4   : > { %v5770_v51 = vsel %vm4412_vm6, %v5729_v47, %v5769_v11  ;;  %v5717_v37 = vrot.slane %v5666_v8, %v13348_v6  ;;  %v5766_v0 = vsel %vm4410_vm5, %v5709_v56, %v5705_v27  ;;  %v11890_v56 = vld [vmem:[%s15153_s6 + $0x8] sm:$0xff]  }
 0x4d5   : > { %v5771_v14 = vsel %vm4414_vm7, %v5733_v10, %v5770_v51  ;;  %v5767_v25 = vsel %vm4412_vm6, %v5713_v4, %v5766_v0  ;;  %v5526_v18 = vmax.f32 %v5521_v24, %v5522_v45  ;;  %v5525_v12 = vmax.f32 %v5519_v17, %v5520_v1  ;;  %v11891_v4 = vld [vmem:[%s15153_s6 + $0x10] sm:$0xff]   ;;  %v11895_v17 = vld [vmem:[%s15153_s6 + $0x40] sm:$0xff]   ;;  %v11896_v51 = vld [vmem:[%s15153_s6 + $0x48] sm:$0xff]  }
 0x4d6   : > { %5785 = vst.msk [vmem:[#allocation4 + $0x11] sm:$0xf] %vm5783_vm14, %v5771_v14  ;;  %v5768_v55 = vsel %vm4414_vm7, %v5717_v37, %v5767_v25  ;;  %v11897_v37 = vld [vmem:[%s15153_s6 + $0x50] sm:$0xff]   ;;  %v11898_v0 = vld [vmem:[%s15153_s6 + $0x58] sm:$0xff]   ;;  %v11901_v25 = vld [vmem:[%s15153_s6 + $0x60] sm:$0xff]  }
 0x4d7   : > { %5784 = vst.msk [vmem:[#allocation4 + $0x9] sm:$0xf] %vm5783_vm14, %v5768_v55  ;;  %v5582_v34 = vcombine.high %v5526_v18, %v5526_v18  ;;  %v5589_v42 = vrot.slane %v5526_v18, %v13343_v49  ;;  %v5565_v46 = vcombine.high %v5525_v12, %v5525_v12  ;;  %v5572_v5 = vrot.slane %v5525_v12, %v13343_v49  ;;  %v11902_v55 = vld [vmem:[%s15153_s6 + $0x68] sm:$0xff]   ;;  %v11903_v12 = vld [vmem:[%s15153_s6 + $0x70] sm:$0xff]  }
 0x4d9   : > { %v5596_v31 = vrot.slane %v5582_v34, %v13343_v49  ;;  %v5597_v52 = vcombine.high %v5589_v42, %v5589_v42  ;;  %v10085_v60 = vrot.slane %v5589_v42, 9  ;;  %v5579_v48 = vrot.slane %v5565_v46, %v13343_v49  ;;  %v11904_v34 = vld [vmem:[%s15153_s6 + $0x78] sm:$0xff]  }
 0x4da   : > { %v5580_v57 = vcombine.high %v5572_v5, %v5572_v5  ;;  %v10081_v7 = vrot.slane %v5572_v5, 9 }
 0x4db   : > { %v5598_v16 = vcombine.high %v5596_v31, %v5596_v31  ;;  %v10086_v23 = vrot.slane %v5597_v52, 9  ;;  %v10087_v9 = vrot.slane %v5596_v31, 9  ;;  %v5675_v36 = vmax.f32 %v5589_v42, %v10085_v60  ;;  %v11909_v60 = vld [vmem:[%s15153_s6 + $0x90] sm:$0xff]  }
 0x4dc   : > { %v5581_v19 = vcombine.high %v5579_v48, %v5579_v48  ;;  %v10082_v63 = vrot.slane %v5580_v57, 9  ;;  %v10083_v35 = vrot.slane %v5579_v48, 9  ;;  %v5671_v53 = vmax.f32 %v5572_v5, %v10081_v7  ;;  %v11907_v5 = vld [vmem:[%s15153_s6 + $0x80] sm:$0xff]  }
 0x4dd   : > { %v10088_v50 = vrot.slane %v5598_v16, 9  ;;  %v5676_v58 = vmax.f32 %v5597_v52, %v10086_v23  ;;  %v5677_v59 = vmax.f32 %v5596_v31, %v10087_v9  ;;  %v5753_v32 = vrot.slane %v5675_v36, %v13348_v6  ;;  %v11908_v52 = vld [vmem:[%s15153_s6 + $0x88] sm:$0xff]   ;;  %v11915_v36 = vld [vmem:[%s15153_s6 + $0xb0] sm:$0xff]  }
 0x4de   : > { %v10084_v3 = vrot.slane %v5581_v19, 9  ;;  %v5672_v24 = vmax.f32 %v5580_v57, %v10082_v63  ;;  %v5673_v29 = vmax.f32 %v5579_v48, %v10083_v35  ;;  %v5737_v33 = vrot.slane %v5671_v53, %v13348_v6  ;;  %v11887_v38 = vld [vmem:[#allocation4 + $0x1] ss:$8 sps:$4 sm:$0xff]   ;;  %v11914_v9 = vld [vmem:[%s15153_s6 + $0xa8] sm:$0xff]   ;;  %v11919_v53 = vld [vmem:[%s15153_s6 + $0xc0] sm:$0xff]  }
 0x4df   : > { %v5678_v15 = vmax.f32 %v5598_v16, %v10088_v50  ;;  %v5757_v41 = vrot.slane %v5676_v58, %v13348_v6  ;;  %v5761_v54 = vrot.slane %v5677_v59, %v13348_v6  ;;  %v11893_v11 = vld [vmem:[#allocation4] ss:$8 sps:$4 sm:$0xff]   ;;  %v11913_v16 = vld [vmem:[%s15153_s6 + $0xa0] sm:$0xff]   ;;  %v11920_v58 = vld [vmem:[%s15153_s6 + $0xc8] sm:$0xff]  }
 0x4e0   : > { %v5674_v44 = vmax.f32 %v5581_v19, %v10084_v3  ;;  %v5741_v62 = vrot.slane %v5672_v24, %v13348_v6  ;;  %v5745_v28 = vrot.slane %v5673_v29, %v13348_v6  ;;  %v11899_v14 = vld [vmem:[#allocation4 + $0x2] ss:$8 sps:$4 sm:$0xff]  }
 0x4e1   : > { %v5765_v21 = vrot.slane %v5678_v15, %v13348_v6  ;;  %v5775_v40 = vsel %vm4410_vm5, %v5757_v41, %v5753_v32  ;;  %v11905_v46 = vld [vmem:[#allocation4 + $0x8] ss:$8 sps:$4 sm:$0xff]   ;;  %v11921_v59 = vld [vmem:[%s15153_s6 + $0xd0] sm:$0xff]   ;;  %v11926_v41 = vld [vmem:[%s15153_s6 + $0xe8] sm:$0xff]  }
 0x4e2   : > { %v5776_v61 = vsel %vm4412_vm6, %v5761_v54, %v5775_v40  ;;  %v5749_v43 = vrot.slane %v5674_v44, %v13348_v6  ;;  %v5772_v26 = vsel %vm4410_vm5, %v5741_v62, %v5737_v33  ;;  %v11910_v48 = vld [vmem:[%s15153_s6 + $0x98] sm:$0xff]   ;;  %v11925_v15 = vld [vmem:[%s15153_s6 + $0xe0] sm:$0xff]   ;;  %v11927_v54 = vld [vmem:[%s15153_s6 + $0xf0] sm:$0xff]  }
 0x4e3   : > { %v5777_v22 = vsel %vm4414_vm7, %v5765_v21, %v5776_v61  ;;  %v5773_v27 = vsel %vm4412_vm6, %v5745_v28, %v5772_v26  ;;  %v11911_v7 = vld [vmem:[#allocation4 + $0x9] ss:$8 sps:$4 sm:$0xff]   ;;  %v11932_v40 = vld [vmem:[%s15153_s6 + $0x108] sm:$0xff]   ;;  %v11933_v61 = vld [vmem:[%s15153_s6 + $0x110] sm:$0xff]  }
 0x4e4   : > { %5787 = vst.msk [vmem:[#allocation4 + $0x21] sm:$0xf] %vm5783_vm14, %v5777_v22  ;;  %v5774_v30 = vsel %vm4414_vm7, %v5749_v43, %v5773_v27  ;;  %v11916_v19 = vld [vmem:[%s15153_s6 + $0xb8] sm:$0xff]   ;;  %v11931_v28 = vld [vmem:[%s15153_s6 + $0x100] sm:$0xff]  }
 0x4e5   : > { %5786 = vst.msk [vmem:[#allocation4 + $0x19] sm:$0xf] %vm5783_vm14, %v5774_v30  ;;  %v11917_v35 = vld [vmem:[#allocation4 + $0xa] ss:$8 sps:$4 sm:$0xff]  }
 0x4e6   : > { %v11922_v3 = vld [vmem:[%s15153_s6 + $0xd8] sm:$0xff]  }
 0x4e7   : > { %v11928_v44 = vld [vmem:[%s15153_s6 + $0xf8] sm:$0xff]  }
 0x4e8   : > { %v11934_v43 = vld [vmem:[%s15153_s6 + $0x118] sm:$0xff]   ;;  %s15062_s6 = scalar_lea.hbm %s15125_s21, %s10659_s29 }
 0x4eb   : > { %v11924_v29 = vld [vmem:[#allocation4 + $0x20] ss:$8 sps:$4 sm:$0xff]  }
 0x4ec   : > { %v11888_v47 = vld [vmem:[#allocation4 + $0x11] ss:$8 sps:$4 sm:$0xff]   ;;  %v11930_v62 = vld [vmem:[#allocation4 + $0x21] ss:$8 sps:$4 sm:$0xff]  }
 0x4ed   : > { %v5821_v8 = vpack.c.bf16 %v11888_v47, %v11887_v38  ;;  %v11894_v10 = vld [vmem:[#allocation4 + $0x10] ss:$8 sps:$4 sm:$0xff]   ;;  %v11936_v22 = vld [vmem:[#allocation4 + $0x22] ss:$8 sps:$4 sm:$0xff]  }
 0x4ee   : > { %v5800_v45 = vpack.c.bf16 %v11894_v10, %v11893_v11  ;;  %v11900_v1 = vld [vmem:[#allocation4 + $0x12] ss:$8 sps:$4 sm:$0xff]  }
 0x4ef   : > { %11368 = vmatmul.mubr.msk.bf16.vlgmr.msra.gmra.mrb[8].mxu1 %vm5855_vm15, %v5821_v8  ;;  %v5980_v18 = vpack.c.bf16 %v11900_v1, %v11899_v14  ;;  %v11906_v42 = vld [vmem:[#allocation4 + $0x18] ss:$8 sps:$4 sm:$0xff]   ;;  %v11948_v1 = vld [vmem:[%s15112_s8 + $0x94] ss:$8 sps:$4 sm:$0xff]  }
 0x4f0   : > { %11372 = vmatpush3.bf16.msra.mxu1 %v11889_v39  ;;  %11379 = vmatprep.mubr.msk.bf16.mxu1 %vm12499_vm13, %v12497_v2  ;;  %v6072_v31 = vpack.c.bf16 %v11906_v42, %v11905_v46  ;;  %v11912_v57 = vld [vmem:[#allocation4 + $0x19] ss:$8 sps:$4 sm:$0xff]  }
 0x4f1   : > { %11373 = vmatprep.subr.bf16.mxu1 %v12497_v2  ;;  %v6164_v23 = vpack.c.bf16 %v11912_v57, %v11911_v7  ;;  %v11918_v63 = vld [vmem:[#allocation4 + $0x1a] ss:$8 sps:$4 sm:$0xff]  }
 0x4f2   : > { %v6256_v50 = vpack.c.bf16 %v11918_v63, %v11917_v35  ;;  %v11923_v24 = vld [vmem:[#allocation4 + $0x10] ss:$8 sps:$4 sm:$0xff]   ;;  %v11943_v14 = vld [vmem:[%s15112_s8 + $0x10] ss:$8 sps:$4 sm:$0xff]   ;;  %v11957_v46 = vld [vmem:[%s15112_s8 + $0x34] ss:$8 sps:$4 sm:$0xff]  }
 0x4f3   : > { %v6349_v32 = vpack.c.bf16 %v11924_v29, %v11923_v24  ;;  %v11929_v33 = vld [vmem:[#allocation4 + $0x11] ss:$8 sps:$4 sm:$0xff]   ;;  %v11969_v35 = vld [vmem:[%s15112_s8 + $0x54] ss:$8 sps:$4 sm:$0xff]  }
 0x4f4   : > { %11374 = vmatpush3.bf16.msra.mxu1 %v11890_v56  ;;  %v6441_v21 = vpack.c.bf16 %v11930_v62, %v11929_v33  ;;  %v11935_v26 = vld [vmem:[#allocation4 + $0x12] ss:$8 sps:$4 sm:$0xff]  }
 0x4f5   : > { %11375 = vmatprep.subr.bf16.mxu1 %v12497_v2  ;;  %v6533_v27 = vpack.c.bf16 %v11936_v22, %v11935_v26  ;;  %v11952_v42 = vld [vmem:[%s15112_s8 + $0xa0] ss:$8 sps:$4 sm:$0xff]  }
 0x4f6   : > { %v11964_v63 = vld [vmem:[%s15112_s8 + $0xc0] ss:$8 sps:$4 sm:$0xff]  }
 0x4f7   : > { %v11973_v24 = vld [vmem:[%s15112_s8 + $0x60] ss:$8 sps:$4 sm:$0xff]  }
 0x4f8   : > { %11376 = vmatpush3.bf16.msra.mxu1 %v11891_v4 }
 0x4f9   : > { %11377 = vmatprep.subr.bf16.mxu1 %v12497_v2 }
 0x4fc   : > { %11378 = vmatpush3.bf16.msra.mxu1 %v11892_v20 }
 0x4fd   : > { %11383 = vmatprep.subr.bf16.mxu1 %v12497_v2 }
 0x4ff   : > { %11380 = vmatmul.mubr.msk.bf16.vlgmr.msra.gmra.mrb[12].mxu1 %vm5855_vm15, %v5800_v45  ;;  %v11939_v45 = vld [vmem:[%s15112_s8 + $0x4] ss:$8 sps:$4 sm:$0xff]  }
 0x500   : > { %11384 = vmatpush3.bf16.msra.mxu1 %v11895_v17  ;;  %11391 = vmatprep.mubr.msk.bf16.mxu1 %vm12499_vm13, %v12497_v2  ;;  %v11937_v17 = vld [vmem:[%s15112_s8] ss:$8 sps:$4 sm:$0xff]  }
 0x501   : > { %11385 = vmatprep.subr.bf16.mxu1 %v12497_v2 }
 0x504   : > { %11386 = vmatpush3.bf16.msra.mxu1 %v11896_v51  ;;  %v11940_v51 = vld [vmem:[%s15112_s8 + $0x80] ss:$8 sps:$4 sm:$0xff]  }
 0x505   : > { %11387 = vmatprep.subr.bf16.mxu1 %v12497_v2 }
 0x508   : > { %11388 = vmatpush3.bf16.msra.mxu1 %v11897_v37  ;;  %v11942_v37 = vld [vmem:[%s15112_s8 + $0x84] ss:$8 sps:$4 sm:$0xff]  }
 0x509   : > { %11389 = vmatprep.subr.bf16.mxu1 %v12497_v2  ;;  %6842 = vmatprep.subr.bf16.mxu0 %v11942_v37 }
 0x50a   : > { %6843 = vmatpush1.bf16.msra.mxu0 %v11940_v51 }
 0x50b   : > { %6844 = vmatprep.subr.bf16.mxu0 %v11948_v1 }
 0x50c   : > { %11390 = vmatpush3.bf16.msra.mxu1 %v11898_v0  ;;  %v11945_v0 = vld [vmem:[%s15112_s8 + $0x14] ss:$8 sps:$4 sm:$0xff]  }
 0x50d   : > { %11395 = vmatprep.subr.bf16.mxu1 %v12497_v2 }
 0x50f   : > { %11392 = vmatmul.mubr.msk.bf16.vlgmr.msra.gmra.mrb[16].mxu1 %vm5855_vm15, %v5980_v18  ;;  %v11951_v18 = vld [vmem:[%s15112_s8 + $0x24] ss:$8 sps:$4 sm:$0xff]  }
 0x510   : > { %11396 = vmatpush3.bf16.msra.mxu1 %v11901_v25  ;;  %11403 = vmatprep.mubr.msk.bf16.mxu1 %vm12499_vm13, %v12497_v2  ;;  %v11946_v25 = vld [vmem:[%s15112_s8 + $0x90] ss:$8 sps:$4 sm:$0xff]  }
 0x511   : > { %11397 = vmatprep.subr.bf16.mxu1 %v12497_v2  ;;  %6845 = vmatpush1.bf16.msra.mxu0 %v11946_v25 }
 0x514   : > { %11398 = vmatpush3.bf16.msra.mxu1 %v11902_v55  ;;  %v11954_v55 = vld [vmem:[%s15112_s8 + $0xa4] ss:$8 sps:$4 sm:$0xff]  }
 0x515   : > { %11399 = vmatprep.subr.bf16.mxu1 %v12497_v2  ;;  %6846 = vmatprep.subr.bf16.mxu0 %v11954_v55 }
 0x516   : > { %6847 = vmatpush1.bf16.msra.mxu0 %v11952_v42 }
 0x518   : > { %11400 = vmatpush3.bf16.msra.mxu1 %v11903_v12  ;;  %v11949_v12 = vld [vmem:[%s15112_s8 + $0x20] ss:$8 sps:$4 sm:$0xff]  }
 0x519   : > { %11401 = vmatprep.subr.bf16.mxu1 %v12497_v2 }
 0x51c   : > { %11402 = vmatpush3.bf16.msra.mxu1 %v11904_v34 }
 0x51d   : > { %11407 = vmatprep.subr.bf16.mxu1 %v12497_v2 }
 0x51f   : > { %11404 = vmatmul.mubr.msk.bf16.vlgmr.msra.gmra.mrb[20].mxu1 %vm5855_vm15, %v6072_v31 }
 0x520   : > { %11408 = vmatpush3.bf16.msra.mxu1 %v11907_v5  ;;  %11415 = vmatprep.mubr.msk.bf16.mxu1 %vm12499_vm13, %v12497_v2 }
 0x521   : > { %11409 = vmatprep.subr.bf16.mxu1 %v12497_v2 }
 0x524   : > { %11410 = vmatpush3.bf16.msra.mxu1 %v11908_v52  ;;  %v11960_v52 = vld [vmem:[%s15112_s8 + $0xb4] ss:$8 sps:$4 sm:$0xff]  }
 0x525   : > { %11411 = vmatprep.subr.bf16.mxu1 %v12497_v2  ;;  %6848 = vmatprep.subr.bf16.mxu0 %v11960_v52 }
 0x528   : > { %11412 = vmatpush3.bf16.msra.mxu1 %v11909_v60  ;;  %v12500_v60 = vmov 0  }
 0x529   : > { %11413 = vmatprep.subr.bf16.mxu1 %v12497_v2  ;;  %6874 = vmatprep.mubr.bf16.mxu0 %v12500_v60 }
 0x52c   : > { %11414 = vmatpush3.bf16.msra.mxu1 %v11910_v48 }
 0x52d   : > { %11419 = vmatprep.subr.bf16.mxu1 %v12497_v2 }
 0x52f   : > { %11416 = vmatmul.mubr.msk.bf16.vlgmr.msra.gmra.mrb[24].mxu1 %vm5855_vm15, %v6164_v23  ;;  %v11958_v23 = vld [vmem:[%s15112_s8 + $0xb0] ss:$8 sps:$4 sm:$0xff]  }
 0x530   : > { %11420 = vmatpush3.bf16.msra.mxu1 %v11913_v16  ;;  %11427 = vmatprep.mubr.msk.bf16.mxu1 %vm12499_vm13, %v12497_v2  ;;  %v11955_v16 = vld [vmem:[%s15112_s8 + $0x30] ss:$8 sps:$4 sm:$0xff]  }
 0x531   : > { %11421 = vmatprep.subr.bf16.mxu1 %v12497_v2  ;;  %6849 = vmatpush1.bf16.msra.mxu0 %v11958_v23 }
 0x534   : > { %11422 = vmatpush3.bf16.msra.mxu1 %v11914_v9  ;;  %v11963_v9 = vld [vmem:[%s15112_s8 + $0x44] ss:$8 sps:$4 sm:$0xff]  }
 0x535   : > { %11423 = vmatprep.subr.bf16.mxu1 %v12497_v2 }
 0x538   : > { %11424 = vmatpush3.bf16.msra.mxu1 %v11915_v36  ;;  %v11966_v36 = vld [vmem:[%s15112_s8 + $0xc4] ss:$8 sps:$4 sm:$0xff]  }
 0x539   : > { %11425 = vmatprep.subr.bf16.mxu1 %v12497_v2  ;;  %6850 = vmatprep.subr.bf16.mxu0 %v11966_v36 }
 0x53a   : > { %6851 = vmatpush1.bf16.msra.mxu0 %v11964_v63 }
 0x53c   : > { %11426 = vmatpush3.bf16.msra.mxu1 %v11916_v19  ;;  %v11961_v19 = vld [vmem:[%s15112_s8 + $0x40] ss:$8 sps:$4 sm:$0xff]  }
 0x53d   : > { %11431 = vmatprep.subr.bf16.mxu1 %v12497_v2 }
 0x53f   : > { %11428 = vmatmul.mubr.msk.bf16.vlgmr.msra.gmra.mrb[28].mxu1 %vm5855_vm15, %v6256_v50  ;;  %v11967_v50 = vld [vmem:[%s15112_s8 + $0x50] ss:$8 sps:$4 sm:$0xff]  }
 0x540   : > { %11432 = vmatpush3.bf16.msra.mxu1 %v11919_v53  ;;  %11439 = vmatprep.mubr.msk.bf16.mxu1 %vm12499_vm13, %v12497_v2  ;;  %v11972_v53 = vld [vmem:[%s15112_s8 + $0xd4] ss:$8 sps:$4 sm:$0xff]  }
 0x541   : > { %11433 = vmatprep.subr.bf16.mxu1 %v12497_v2  ;;  %6852 = vmatprep.subr.bf16.mxu0 %v11972_v53 }
 0x544   : > { %11434 = vmatpush3.bf16.msra.mxu1 %v11920_v58  ;;  %v11970_v58 = vld [vmem:[%s15112_s8 + $0xd0] ss:$8 sps:$4 sm:$0xff]  }
 0x545   : > { %11435 = vmatprep.subr.bf16.mxu1 %v12497_v2  ;;  %6853 = vmatpush1.bf16.msra.mxu0 %v11970_v58 }
 0x548   : > { %11436 = vmatpush3.bf16.msra.mxu1 %v11921_v59  ;;  %v11975_v59 = vld [vmem:[%s15112_s8 + $0x64] ss:$8 sps:$4 sm:$0xff]  }
 0x549   : > { %11437 = vmatprep.subr.bf16.mxu1 %v12497_v2 }
 0x54c   : > { %11438 = vmatpush3.bf16.msra.mxu1 %v11922_v3  ;;  %v11978_v3 = vld [vmem:[%s15112_s8 + $0xe4] ss:$8 sps:$4 sm:$0xff]  }
 0x54d   : > { %11443 = vmatprep.subr.bf16.mxu1 %v12497_v2  ;;  %6854 = vmatprep.subr.bf16.mxu0 %v11978_v3 }
 0x54f   : > { %11440 = vmatmul.mubr.msk.bf16.vlgmr.msra.gmra.mrb[32].mxu1 %vm5855_vm15, %v6349_v32  ;;  %v11981_v32 = vld [vmem:[%s15112_s8 + $0x74] ss:$8 sps:$4 sm:$0xff]  }
 0x550   : > { %11444 = vmatpush3.bf16.msra.mxu1 %v11925_v15  ;;  %11451 = vmatprep.mubr.msk.bf16.mxu1 %vm12499_vm13, %v12497_v2  ;;  %v11976_v15 = vld [vmem:[%s15112_s8 + $0xe0] ss:$8 sps:$4 sm:$0xff]  }
 0x551   : > { %11445 = vmatprep.subr.bf16.mxu1 %v12497_v2  ;;  %6855 = vmatpush1.bf16.msra.mxu0 %v11976_v15 }
 0x554   : > { %11446 = vmatpush3.bf16.msra.mxu1 %v11926_v41 }
 0x555   : > { %11447 = vmatprep.subr.bf16.mxu1 %v12497_v2 }
 0x558   : > { %11448 = vmatpush3.bf16.msra.mxu1 %v11927_v54 }
 0x559   : > { %11449 = vmatprep.subr.bf16.mxu1 %v12497_v2 }
 0x55c   : > { %11450 = vmatpush3.bf16.msra.mxu1 %v11928_v44  ;;  %v11984_v44 = vld [vmem:[%s15112_s8 + $0xf4] ss:$8 sps:$4 sm:$0xff]  }
 0x55d   : > { %11455 = vmatprep.subr.bf16.mxu1 %v12497_v2  ;;  %6856 = vmatprep.subr.bf16.mxu0 %v11984_v44 }
 0x55f   : > { %11452 = vmatmul.mubr.msk.bf16.vlgmr.msra.gmra.mrb[36].mxu1 %vm5855_vm15, %v6441_v21  ;;  %v11979_v21 = vld [vmem:[%s15112_s8 + $0x70] ss:$8 sps:$4 sm:$0xff]  }
 0x560   : > { %11456 = vmatpush3.bf16.msra.mxu1 %v11931_v28  ;;  %11463 = vmatprep.mubr.msk.bf16.mxu1 %vm12499_vm13, %v12497_v2 }
 0x561   : > { %11457 = vmatprep.subr.bf16.mxu1 %v12497_v2 }
 0x564   : > { %11458 = vmatpush3.bf16.msra.mxu1 %v11932_v40  ;;  %v11982_v40 = vld [vmem:[%s15112_s8 + $0xf0] ss:$8 sps:$4 sm:$0xff]  }
 0x565   : > { %11459 = vmatprep.subr.bf16.mxu1 %v12497_v2  ;;  %6857 = vmatpush1.bf16.msra.mxu0 %v11982_v40 }
 0x566   : > { %11475 = vmatprep.subr.bf16.mxu0 %v12497_v2 }
 0x568   : > { %11460 = vmatpush3.bf16.msra.mxu1 %v11933_v61  ;;  %v11987_v61 = vld [vmem:[%s15112_s8 + $0x104] ss:$8 sps:$4 sm:$0xff]  }
 0x569   : > { %11461 = vmatprep.subr.bf16.mxu1 %v12497_v2 }
 0x56c   : > { %11462 = vmatpush3.bf16.msra.mxu1 %v11934_v43 }
 0x56d   : > { %6963 = vmatprep.subr.bf16.mxu1 %v11939_v45 }
 0x56f   : > { %11464 = vmatmul.mubr.msk.bf16.vlgmr.msra.gmra.mrb[40].mxu1 %vm5855_vm15, %v6533_v27 }
 0x570   : > { %6964 = vmatpush1.bf16.msra.mxu1 %v11937_v17  ;;  %6995 = vmatprep.mubr.bf16.mxu1 %v12500_v60 }
 0x571   : > { %6965 = vmatprep.subr.bf16.mxu1 %v11945_v0 }
 0x574   : > { %6966 = vmatpush1.bf16.msra.mxu1 %v11943_v14 }
 0x575   : > { %6967 = vmatprep.subr.bf16.mxu1 %v11951_v18 }
 0x578   : > { %6968 = vmatpush1.bf16.msra.mxu1 %v11949_v12 }
 0x579   : > { %6969 = vmatprep.subr.bf16.mxu1 %v11957_v46 }
 0x57c   : > { %6970 = vmatpush1.bf16.msra.mxu1 %v11955_v16 }
 0x57d   : > { %6971 = vmatprep.subr.bf16.mxu1 %v11963_v9 }
 0x580   : > { %6972 = vmatpush1.bf16.msra.mxu1 %v11961_v19 }
 0x581   : > { %6973 = vmatprep.subr.bf16.mxu1 %v11969_v35 }
 0x584   : > { %6974 = vmatpush1.bf16.msra.mxu1 %v11967_v50 }
 0x585   : > { %6975 = vmatprep.subr.bf16.mxu1 %v11975_v59 }
 0x588   : > { %6976 = vmatpush1.bf16.msra.mxu1 %v11973_v24 }
 0x589   : > { %6977 = vmatprep.subr.bf16.mxu1 %v11981_v32 }
 0x58c   : > { %6978 = vmatpush1.bf16.msra.mxu1 %v11979_v21 }
 0x58d   : > { %7115 = vmatprep.subr.bf16.mxu1 %v11987_v61  ;;  %v11985_v61 = vld [vmem:[%s15112_s8 + $0x100] ss:$8 sps:$4 sm:$0xff]  }
 0x5c2   : > { %v5893_v30 = vpop.f32.mrb[8].mxu1 }
 0x5c3   : > { %v11369_v38 = vpop.f32.mrb[9].mxu1 }
 0x5c4   : > { %v5896_v47 = vpop.f32.mrb[10].mxu1 }
 0x5c5   : > { %v11370_v39 = vpop.f32.mrb[11].mxu1 }
 0x5d2   : > { %v5961_v8 = vpop.f32.mrb[12].mxu1 }
 0x5d3   : > { %v5962_v56 = vadd.f32 %v5961_v8, %v5893_v30  ;;  %v11381_v4 = vpop.f32.mrb[13].mxu1 }
 0x5d4   : > { %v5964_v20 = vpop.f32.mrb[14].mxu1 }
 0x5d5   : > { %v5965_v10 = vadd.f32 %v5964_v20, %v5896_v47  ;;  %v11382_v11 = vpop.f32.mrb[15].mxu1 }
 0x5e2   : > { %v6051_v34 = vpop.f32.mrb[16].mxu1 }
 0x5e3   : > { %v6058_v5 = vadd.f32 %v6051_v34, %v5962_v56  ;;  %v11393_v31 = vpop.f32.mrb[17].mxu1  ;;  %v10198_v34 = vld [vmem:[%s15111_s7] ss:$0 sm:$0xff] }
 0x5e4   : > { %v6054_v48 = vpop.f32.mrb[18].mxu1 }
 0x5e5   : > { %v6059_v57 = vadd.f32 %v6054_v48, %v5965_v10  ;;  %v11394_v7 = vpop.f32.mrb[19].mxu1 }
 0x5f2   : > { %v6143_v29 = vpop.f32.mrb[20].mxu1 }
 0x5f3   : > { %v6150_v41 = vadd.f32 %v6143_v29, %v6058_v5  ;;  %v11405_v54 = vpop.f32.mrb[21].mxu1 }
 0x5f4   : > { %v6146_v33 = vpop.f32.mrb[22].mxu1 }
 0x5f5   : > { %v6151_v62 = vadd.f32 %v6146_v33, %v6059_v57  ;;  %v11406_v28 = vpop.f32.mrb[23].mxu1 }
 0x602   : > { %v6235_v43 = vpop.f32.mrb[24].mxu1 }
 0x603   : > { %v6242_v26 = vadd.f32 %v6235_v43, %v6150_v41  ;;  %v11417_v22 = vpop.f32.mrb[25].mxu1 }
 0x604   : > { %v6238_v27 = vpop.f32.mrb[26].mxu1  ;;  %v11992_v22 = vld [vmem:[%s15112_s8 + $0x114] ss:$8 sps:$4 sm:$0xff]  }
 0x605   : > { %v6243_v30 = vadd.f32 %v6238_v27, %v6151_v62  ;;  %v11418_v38 = vpop.f32.mrb[27].mxu1  ;;  %v11990_v27 = vld [vmem:[%s15112_s8 + $0x110] ss:$8 sps:$4 sm:$0xff]  }
 0x606   : > { %v11993_v38 = vld [vmem:[%s15112_s8 + $0x120] ss:$8 sps:$4 sm:$0xff]  }
 0x612   : > { %v6327_v47 = vpop.f32.mrb[28].mxu1 }
 0x613   : > { %v6334_v39 = vadd.f32 %v6327_v47, %v6242_v26  ;;  %v11429_v8 = vpop.f32.mrb[29].mxu1  ;;  %v11998_v47 = vld [vmem:[%s15112_s8 + $0x134] ss:$8 sps:$4 sm:$0xff]  }
 0x614   : > { %v6330_v56 = vpop.f32.mrb[30].mxu1  ;;  %v12001_v8 = vld [vmem:[%s15112_s8 + $0x144] ss:$8 sps:$4 sm:$0xff]  }
 0x615   : > { %v6335_v4 = vadd.f32 %v6330_v56, %v6243_v30  ;;  %v11430_v20 = vpop.f32.mrb[31].mxu1  ;;  %v11995_v30 = vld [vmem:[%s15112_s8 + $0x124] ss:$8 sps:$4 sm:$0xff]   ;;  %v11999_v56 = vld [vmem:[%s15112_s8 + $0x140] ss:$8 sps:$4 sm:$0xff]  }
 0x616   : > { %v12002_v20 = vld [vmem:[%s15112_s8 + $0x150] ss:$8 sps:$4 sm:$0xff]  }
 0x622   : > { %v6420_v10 = vpop.f32.mrb[32].mxu1 }
 0x623   : > { %v6427_v11 = vadd.f32 %v6420_v10, %v6334_v39  ;;  %v11441_v17 = vpop.f32.mrb[33].mxu1  ;;  %v11996_v39 = vld [vmem:[%s15112_s8 + $0x130] ss:$8 sps:$4 sm:$0xff]   ;;  %v12007_v10 = vld [vmem:[%s15112_s8 + $0x164] ss:$8 sps:$4 sm:$0xff]  }
 0x624   : > { %v6423_v45 = vpop.f32.mrb[34].mxu1  ;;  %v12010_v17 = vld [vmem:[%s15112_s8 + $0x174] ss:$8 sps:$4 sm:$0xff]  }
 0x625   : > { %v6428_v51 = vadd.f32 %v6423_v45, %v6335_v4  ;;  %v11442_v37 = vpop.f32.mrb[35].mxu1  ;;  %v12004_v4 = vld [vmem:[%s15112_s8 + $0x154] ss:$8 sps:$4 sm:$0xff]  }
 0x626   : > { %v12014_v37 = vld [vmem:[%s15112_s8 + $0x184] ss:$8 sps:$4 sm:$0xff]  }
 0x632   : > { %v6512_v0 = vpop.f32.mrb[36].mxu1 }
 0x633   : > { %v6519_v1 = vadd.f32 %v6512_v0, %v6427_v11  ;;  %v11453_v14 = vpop.f32.mrb[37].mxu1  ;;  %v12005_v11 = vld [vmem:[%s15112_s8 + $0x160] ss:$8 sps:$4 sm:$0xff]  }
 0x634   : > { %v6515_v25 = vpop.f32.mrb[38].mxu1  ;;  %v12012_v0 = vld [vmem:[%s15112_s8 + $0x180] ss:$8 sps:$4 sm:$0xff]   ;;  %v12017_v14 = vld [vmem:[%s15112_s8 + $0x194] ss:$8 sps:$4 sm:$0xff]  }
 0x635   : > { %v6520_v18 = vadd.f32 %v6515_v25, %v6428_v51  ;;  %v11454_v55 = vpop.f32.mrb[39].mxu1  ;;  %v12008_v51 = vld [vmem:[%s15112_s8 + $0x170] ss:$8 sps:$4 sm:$0xff]  }
 0x636   : > { %v12015_v25 = vld [vmem:[%s15112_s8 + $0x190] ss:$8 sps:$4 sm:$0xff]   ;;  %v12018_v55 = vld [vmem:[%s15112_s8 + $0x1a0] ss:$8 sps:$4 sm:$0xff]  }
 0x642   : > { %v6604_v12 = vpop.f32.mrb[40].mxu1 }
 0x643   : > { %v6611_v42 = vadd.f32 %v6604_v12, %v6519_v1  ;;  %v11465_v46 = vpop.f32.mrb[41].mxu1  ;;  %v12023_v12 = vld [vmem:[%s15112_s8 + $0x1b4] ss:$8 sps:$4 sm:$0xff]  }
 0x644   : > { %v6607_v5 = vpop.f32.mrb[42].mxu1  ;;  %v12024_v46 = vld [vmem:[%s15112_s8 + $0x1c0] ss:$8 sps:$4 sm:$0xff]  }
 0x645   : > { %v6620_v31 = vadd.f32 %v10198_v34, %v6611_v42  ;;  %v6612_v52 = vadd.f32 %v6607_v5, %v6520_v18  ;;  %v11466_v48 = vpop.f32.mrb[43].mxu1  ;;  %v12020_v18 = vld [vmem:[%s15112_s8 + $0x1a4] ss:$8 sps:$4 sm:$0xff]   ;;  %v12029_v5 = vld [vmem:[%s15112_s8 + $0x1d4] ss:$8 sps:$4 sm:$0xff]  }
 0x646   : > { %v12026_v42 = vld [vmem:[%s15112_s8 + $0x1c4] ss:$8 sps:$4 sm:$0xff]   ;;  %v12030_v48 = vld [vmem:[%s15112_s8 + $0x1e0] ss:$8 sps:$4 sm:$0xff]  }
 0x647   : > { %v6622_v57 = vmax.f32 %v6620_v31, 0.0  ;;  %v6621_v7 = vadd.f32 %v10198_v34, %v6612_v52  ;;  %v12021_v34 = vld [vmem:[%s15112_s8 + $0x1b0] ss:$8 sps:$4 sm:$0xff]   ;;  %v12032_v52 = vld [vmem:[%s15112_s8 + $0x1e4] ss:$8 sps:$4 sm:$0xff]  }
 0x648   : > { %v12027_v31 = vld [vmem:[%s15112_s8 + $0x1d0] ss:$8 sps:$4 sm:$0xff]  }
 0x649   : > { %v6626_v16 = vrot.slane %v6622_v57, 4  ;;  %v6623_v23 = vmax.f32 %v6621_v7, 0.0 }
 0x64b   : > { %v6630_v9 = vmax.f32 %v6622_v57, %v6626_v16  ;;  %v6627_v36 = vrot.slane %v6623_v23, 4  ;;  %v12035_v57 = vld [vmem:[%s15112_s8 + $0x1f4] ss:$8 sps:$4 sm:$0xff]   ;;  %v12033_v16 = vld [vmem:[%s15112_s8 + $0x1f0] ss:$8 sps:$4 sm:$0xff]  }
 0x64d   : > { %v6640_v19 = vrot.slane %v6630_v9, %v13343_v49  ;;  %v6631_v63 = vmax.f32 %v6623_v23, %v6627_v36  ;;  %v12039_v23 = vld [vmem:[%s15112_s8 + $0x204] ss:$8 sps:$4 sm:$0xff]   ;;  %v12037_v9 = vld [vmem:[%s15112_s8 + $0x200] ss:$8 sps:$4 sm:$0xff]  }
 0x64f   : > { %v6641_v35 = vcombine.high %v6640_v19, %v6640_v19  ;;  %v10199_v53 = vrot.slane %v6640_v19, 9  ;;  %v6648_v50 = vrot.slane %v6631_v63, %v13343_v49  ;;  %v12040_v63 = vld [vmem:[%s15112_s8 + $0x210] ss:$8 sps:$4 sm:$0xff]  }
 0x651   : > { %v10200_v58 = vrot.slane %v6641_v35, 9  ;;  %v6666_v59 = vmax.f32 %v6640_v19, %v10199_v53  ;;  %v6649_v3 = vcombine.high %v6648_v50, %v6648_v50  ;;  %v10201_v24 = vrot.slane %v6648_v50, 9  ;;  %v12042_v19 = vld [vmem:[%s15112_s8 + $0x214] ss:$8 sps:$4 sm:$0xff]   ;;  %v12043_v53 = vld [vmem:[%s15112_s8 + $0x220] ss:$8 sps:$4 sm:$0xff]  }
 0x653   : > { %v6667_v29 = vmax.f32 %v6641_v35, %v10200_v58  ;;  %v10202_v15 = vrot.slane %v6649_v3, 9  ;;  %v6668_v32 = vmax.f32 %v6648_v50, %v10201_v24  ;;  %v6681_v41 = vrot.slane %v6666_v59, %v13348_v6  ;;  %v12045_v35 = vld [vmem:[%s15112_s8 + $0x224] ss:$8 sps:$4 sm:$0xff]   ;;  %v12048_v50 = vld [vmem:[%s15112_s8 + $0x234] ss:$8 sps:$4 sm:$0xff]  }
 0x654   : > { %v12046_v58 = vld [vmem:[%s15112_s8 + $0x230] ss:$8 sps:$4 sm:$0xff]   ;;  %v12051_v59 = vld [vmem:[%s15112_s8 + $0x244] ss:$8 sps:$4 sm:$0xff]   ;;  %v12054_v24 = vld [vmem:[%s15112_s8 + $0x254] ss:$8 sps:$4 sm:$0xff]  }
 0x655   : > { %v6685_v54 = vrot.slane %v6667_v29, %v13348_v6  ;;  %v6669_v44 = vmax.f32 %v6649_v3, %v10202_v15  ;;  %v6689_v62 = vrot.slane %v6668_v32, %v13348_v6  ;;  %v12049_v3 = vld [vmem:[%s15112_s8 + $0x240] ss:$8 sps:$4 sm:$0xff]   ;;  %v12052_v29 = vld [vmem:[%s15112_s8 + $0x250] ss:$8 sps:$4 sm:$0xff]   ;;  %v12057_v15 = vld [vmem:[%s15112_s8 + $0x264] ss:$8 sps:$4 sm:$0xff]  }
 0x656   : > { %v12055_v32 = vld [vmem:[%s15112_s8 + $0x260] ss:$8 sps:$4 sm:$0xff]  }
 0x657   : > { %v6694_v33 = vsel %vm4410_vm5, %v6685_v54, %v6681_v41  ;;  %v6693_v28 = vrot.slane %v6669_v44, %v13348_v6  ;;  %v12060_v41 = vld [vmem:[%s15112_s8 + $0x274] ss:$8 sps:$4 sm:$0xff]   ;;  %v12058_v44 = vld [vmem:[%s15112_s8 + $0x270] ss:$8 sps:$4 sm:$0xff]  }
 0x658   : > { %6699 = vst [vmem:[#allocation5 + $0x5] sm:$0x3] %v6694_v33  ;;  %v12064_v33 = vld [vmem:[%s15112_s8 + $0x284] ss:$8 sps:$4 sm:$0xff]  }
 0x659   : > { %v6695_v49 = vsel %vm4410_vm5, %v6693_v28, %v6689_v62  ;;  %v12062_v62 = vld [vmem:[%s15112_s8 + $0x280] ss:$8 sps:$4 sm:$0xff]  }
 0x65a   : > { %6700 = vst [vmem:[#allocation5 + $0x9] sm:$0x3] %v6695_v49  ;;  %v12067_v49 = vld [vmem:[%s15112_s8 + $0x294] ss:$8 sps:$4 sm:$0xff]  }
 0x65f   : > { %v12424_v21 = vld.sshfl [vmem:[#allocation5 + $0x1] sm:$0xf pattern:$0x76325410] }
 0x660   : > { %v12425_v40 = vld.sshfl [vmem:[#allocation5] sm:$0xf pattern:$0x76325410]  ;;  %v6744_v43 = vpack.c.bf16 %v12424_v21, %v12424_v21  ;;  %v12065_v21 = vld [vmem:[%s15112_s8 + $0x290] ss:$8 sps:$4 sm:$0xff]  }
 0x661   : > { %v6714_v26 = vpack.c.bf16 %v12425_v40, %v12425_v40  ;;  %v12426_v45 = vld.sshfl [vmem:[#allocation5 + $0x2] sm:$0xf pattern:$0x76325410] }
 0x662   : > { %6875 = vmatmul.mubr.bf16.vlgmr.msra.gmra.mrb[40].mxu0 %v6744_v43  ;;  %v7017_v1 = vpack.c.bf16 %v12426_v45, %v12426_v45  ;;  %v12427_v7 = vld.sshfl [vmem:[#allocation5 + $0x4] sm:$0xf pattern:$0x76325410]  ;;  %v12073_v43 = vld [vmem:[%s15112_s8 + $0x2b4] ss:$8 sps:$4 sm:$0xff]  }
 0x663   : > { %6996 = vmatmul.mubr.bf16.vlgmr.msra.gmra.mrb[44].mxu1 %v6714_v26  ;;  %11483 = vmatprep.mubr.msk.bf16.mxu0 %vm12499_vm13, %v12497_v2  ;;  %v7171_v36 = vpack.c.bf16 %v12427_v7, %v12427_v7  ;;  %v12428_v54 = vld.sshfl [vmem:[#allocation5 + $0x5] sm:$0xf pattern:$0x76325410]  ;;  %v12071_v26 = vld [vmem:[%s15112_s8 + $0x2b0] ss:$8 sps:$4 sm:$0xff]  }
 0x664   : > { %7116 = vmatpush1.bf16.msra.mxu1 %v11985_v61  ;;  %7147 = vmatprep.mubr.bf16.mxu1 %v12500_v60  ;;  %v7325_v28 = vpack.c.bf16 %v12428_v54, %v12428_v54  ;;  %v12070_v40 = vld [vmem:[%s15112_s8 + $0x2a4] ss:$8 sps:$4 sm:$0xff]   ;;  %v12068_v61 = vld [vmem:[%s15112_s8 + $0x2a0] ss:$8 sps:$4 sm:$0xff]   ;;  %v12090_v45 = vld [vmem:[%s15112_s8 + $0x310] ss:$8 sps:$4 sm:$0xff]  }
 0x665   : > { %7117 = vmatprep.subr.bf16.mxu1 %v11992_v22  ;;  %v12076_v22 = vld [vmem:[%s15112_s8 + $0x2c4] ss:$8 sps:$4 sm:$0xff]   ;;  %v12115_v7 = vld [vmem:[%s15112_s8 + $0x390] ss:$8 sps:$4 sm:$0xff]  }
 0x666   : > { %v12140_v54 = vld [vmem:[%s15112_s8 + $0x410] ss:$8 sps:$4 sm:$0xff]  }
 0x668   : > { %7118 = vmatpush1.bf16.msra.mxu1 %v11990_v27  ;;  %v12074_v27 = vld [vmem:[%s15112_s8 + $0x2c0] ss:$8 sps:$4 sm:$0xff]  }
 0x669   : > { %7119 = vmatprep.subr.bf16.mxu1 %v11995_v30  ;;  %v12079_v30 = vld [vmem:[%s15112_s8 + $0x2d4] ss:$8 sps:$4 sm:$0xff]  }
 0x66c   : > { %7120 = vmatpush1.bf16.msra.mxu1 %v11993_v38  ;;  %v12077_v38 = vld [vmem:[%s15112_s8 + $0x2d0] ss:$8 sps:$4 sm:$0xff]  }
 0x66d   : > { %7121 = vmatprep.subr.bf16.mxu1 %v11998_v47  ;;  %v12082_v47 = vld [vmem:[%s15112_s8 + $0x2e4] ss:$8 sps:$4 sm:$0xff]  }
 0x670   : > { %7122 = vmatpush1.bf16.msra.mxu1 %v11996_v39  ;;  %v12080_v39 = vld [vmem:[%s15112_s8 + $0x2e0] ss:$8 sps:$4 sm:$0xff]  }
 0x671   : > { %7123 = vmatprep.subr.bf16.mxu1 %v12001_v8  ;;  %v12085_v8 = vld [vmem:[%s15112_s8 + $0x2f4] ss:$8 sps:$4 sm:$0xff]  }
 0x674   : > { %7124 = vmatpush1.bf16.msra.mxu1 %v11999_v56  ;;  %v12429_v56 = vld.sshfl [vmem:[#allocation5 + $0x6] sm:$0xf pattern:$0x76325410] }
 0x675   : > { %7125 = vmatprep.subr.bf16.mxu1 %v12004_v4  ;;  %v12083_v4 = vld [vmem:[%s15112_s8 + $0x2f0] ss:$8 sps:$4 sm:$0xff]  }
 0x678   : > { %7126 = vmatpush1.bf16.msra.mxu1 %v12002_v20  ;;  %v12089_v20 = vld [vmem:[%s15112_s8 + $0x304] ss:$8 sps:$4 sm:$0xff]  }
 0x679   : > { %7127 = vmatprep.subr.bf16.mxu1 %v12007_v10  ;;  %v12087_v10 = vld [vmem:[%s15112_s8 + $0x300] ss:$8 sps:$4 sm:$0xff]  }
 0x67c   : > { %7128 = vmatpush1.bf16.msra.mxu1 %v12005_v11  ;;  %v7479_v11 = vpack.c.bf16 %v12429_v56, %v12429_v56 }
 0x67d   : > { %7129 = vmatprep.subr.bf16.mxu1 %v12010_v17  ;;  %v12092_v17 = vld [vmem:[%s15112_s8 + $0x314] ss:$8 sps:$4 sm:$0xff]  }
 0x680   : > { %7130 = vmatpush1.bf16.msra.mxu1 %v12008_v51  ;;  %v12095_v51 = vld [vmem:[%s15112_s8 + $0x324] ss:$8 sps:$4 sm:$0xff]  }
 0x681   : > { %7269 = vmatprep.subr.bf16.mxu1 %v12014_v37  ;;  %v12093_v37 = vld [vmem:[%s15112_s8 + $0x320] ss:$8 sps:$4 sm:$0xff]  }
 0x683   : > { %7148 = vmatmul.mubr.bf16.vlgmr.msra.gmra.mrb[48].mxu1 %v7017_v1  ;;  %v12096_v1 = vld [vmem:[%s15112_s8 + $0x330] ss:$8 sps:$4 sm:$0xff]  }
 0x684   : > { %7270 = vmatpush1.bf16.msra.mxu1 %v12012_v0  ;;  %7301 = vmatprep.mubr.bf16.mxu1 %v12500_v60  ;;  %v12098_v0 = vld [vmem:[%s15112_s8 + $0x334] ss:$8 sps:$4 sm:$0xff]  }
 0x685   : > { %7271 = vmatprep.subr.bf16.mxu1 %v12017_v14  ;;  %v12101_v14 = vld [vmem:[%s15112_s8 + $0x344] ss:$8 sps:$4 sm:$0xff]  }
 0x688   : > { %7272 = vmatpush1.bf16.msra.mxu1 %v12015_v25  ;;  %v12099_v25 = vld [vmem:[%s15112_s8 + $0x340] ss:$8 sps:$4 sm:$0xff]  }
 0x689   : > { %7273 = vmatprep.subr.bf16.mxu1 %v12020_v18  ;;  %v12104_v18 = vld [vmem:[%s15112_s8 + $0x354] ss:$8 sps:$4 sm:$0xff]  }
 0x68c   : > { %7274 = vmatpush1.bf16.msra.mxu1 %v12018_v55  ;;  %v12102_v55 = vld [vmem:[%s15112_s8 + $0x350] ss:$8 sps:$4 sm:$0xff]  }
 0x68d   : > { %7275 = vmatprep.subr.bf16.mxu1 %v12023_v12  ;;  %v12107_v12 = vld [vmem:[%s15112_s8 + $0x364] ss:$8 sps:$4 sm:$0xff]  }
 0x690   : > { %7276 = vmatpush1.bf16.msra.mxu1 %v12021_v34  ;;  %v12105_v34 = vld [vmem:[%s15112_s8 + $0x360] ss:$8 sps:$4 sm:$0xff]  }
 0x691   : > { %7277 = vmatprep.subr.bf16.mxu1 %v12026_v42  ;;  %v12110_v42 = vld [vmem:[%s15112_s8 + $0x374] ss:$8 sps:$4 sm:$0xff]  }
 0x694   : > { %7278 = vmatpush1.bf16.msra.mxu1 %v12024_v46  ;;  %v12430_v46 = vld.sshfl [vmem:[#allocation5 + $0x8] sm:$0xf pattern:$0x76325410] }
 0x695   : > { %7279 = vmatprep.subr.bf16.mxu1 %v12029_v5  ;;  %v12108_v5 = vld [vmem:[%s15112_s8 + $0x370] ss:$8 sps:$4 sm:$0xff]  }
 0x698   : > { %7280 = vmatpush1.bf16.msra.mxu1 %v12027_v31  ;;  %v12114_v31 = vld [vmem:[%s15112_s8 + $0x384] ss:$8 sps:$4 sm:$0xff]  }
 0x699   : > { %7281 = vmatprep.subr.bf16.mxu1 %v12032_v52  ;;  %v12112_v52 = vld [vmem:[%s15112_s8 + $0x380] ss:$8 sps:$4 sm:$0xff]  }
 0x69c   : > { %7282 = vmatpush1.bf16.msra.mxu1 %v12030_v48  ;;  %v7634_v48 = vpack.c.bf16 %v12430_v46, %v12430_v46 }
 0x69d   : > { %7283 = vmatprep.subr.bf16.mxu1 %v12035_v57  ;;  %v12117_v57 = vld [vmem:[%s15112_s8 + $0x394] ss:$8 sps:$4 sm:$0xff]  }
 0x6a0   : > { %7284 = vmatpush1.bf16.msra.mxu1 %v12033_v16  ;;  %v12120_v16 = vld [vmem:[%s15112_s8 + $0x3a4] ss:$8 sps:$4 sm:$0xff]  }
 0x6a1   : > { %7423 = vmatprep.subr.bf16.mxu1 %v12039_v23  ;;  %v12118_v23 = vld [vmem:[%s15112_s8 + $0x3a0] ss:$8 sps:$4 sm:$0xff]  }
 0x6a3   : > { %7302 = vmatmul.mubr.bf16.vlgmr.msra.gmra.mrb[52].mxu1 %v7171_v36  ;;  %v12121_v36 = vld [vmem:[%s15112_s8 + $0x3b0] ss:$8 sps:$4 sm:$0xff]  }
 0x6a4   : > { %7424 = vmatpush1.bf16.msra.mxu1 %v12037_v9  ;;  %7455 = vmatprep.mubr.bf16.mxu1 %v12500_v60  ;;  %v12123_v9 = vld [vmem:[%s15112_s8 + $0x3b4] ss:$8 sps:$4 sm:$0xff]  }
 0x6a5   : > { %7425 = vmatprep.subr.bf16.mxu1 %v12042_v19  ;;  %v12126_v19 = vld [vmem:[%s15112_s8 + $0x3c4] ss:$8 sps:$4 sm:$0xff]  }
 0x6a8   : > { %7426 = vmatpush1.bf16.msra.mxu1 %v12040_v63  ;;  %v12124_v63 = vld [vmem:[%s15112_s8 + $0x3c0] ss:$8 sps:$4 sm:$0xff]  }
 0x6a9   : > { %7427 = vmatprep.subr.bf16.mxu1 %v12045_v35  ;;  %v12129_v35 = vld [vmem:[%s15112_s8 + $0x3d4] ss:$8 sps:$4 sm:$0xff]  }
 0x6ac   : > { %7428 = vmatpush1.bf16.msra.mxu1 %v12043_v53  ;;  %v12127_v53 = vld [vmem:[%s15112_s8 + $0x3d0] ss:$8 sps:$4 sm:$0xff]  }
 0x6ad   : > { %7429 = vmatprep.subr.bf16.mxu1 %v12048_v50  ;;  %v12132_v50 = vld [vmem:[%s15112_s8 + $0x3e4] ss:$8 sps:$4 sm:$0xff]  }
 0x6b0   : > { %7430 = vmatpush1.bf16.msra.mxu1 %v12046_v58  ;;  %v12130_v58 = vld [vmem:[%s15112_s8 + $0x3e0] ss:$8 sps:$4 sm:$0xff]  }
 0x6b1   : > { %7431 = vmatprep.subr.bf16.mxu1 %v12051_v59  ;;  %v12135_v59 = vld [vmem:[%s15112_s8 + $0x3f4] ss:$8 sps:$4 sm:$0xff]  }
 0x6b4   : > { %7432 = vmatpush1.bf16.msra.mxu1 %v12049_v3  ;;  %v12431_v3 = vld.sshfl [vmem:[#allocation5 + $0x9] sm:$0xf pattern:$0x76325410] }
 0x6b5   : > { %7433 = vmatprep.subr.bf16.mxu1 %v12054_v24  ;;  %v12133_v24 = vld [vmem:[%s15112_s8 + $0x3f0] ss:$8 sps:$4 sm:$0xff]  }
 0x6b8   : > { %7434 = vmatpush1.bf16.msra.mxu1 %v12052_v29  ;;  %v12139_v29 = vld [vmem:[%s15112_s8 + $0x404] ss:$8 sps:$4 sm:$0xff]  }
 0x6b9   : > { %7435 = vmatprep.subr.bf16.mxu1 %v12057_v15  ;;  %v12137_v15 = vld [vmem:[%s15112_s8 + $0x400] ss:$8 sps:$4 sm:$0xff]  }
 0x6bc   : > { %7436 = vmatpush1.bf16.msra.mxu1 %v12055_v32  ;;  %v7788_v32 = vpack.c.bf16 %v12431_v3, %v12431_v3  ;;  %v12182_v3 = vld [vmem:[%s15119_s15 + $0x44] ss:$16 sps:$4 sm:$0xff]  }
 0x6bd   : > { %7437 = vmatprep.subr.bf16.mxu1 %v12060_v41  ;;  %v12142_v41 = vld [vmem:[%s15112_s8 + $0x414] ss:$8 sps:$4 sm:$0xff]  }
 0x6c0   : > { %7438 = vmatpush1.bf16.msra.mxu1 %v12058_v44  ;;  %v12145_v44 = vld [vmem:[%s15112_s8 + $0x424] ss:$8 sps:$4 sm:$0xff]  }
 0x6c1   : > { %7577 = vmatprep.subr.bf16.mxu1 %v12064_v33  ;;  %v12143_v33 = vld [vmem:[%s15112_s8 + $0x420] ss:$8 sps:$4 sm:$0xff]  }
 0x6c3   : > { %7456 = vmatmul.mubr.bf16.vlgmr.msra.gmra.mrb[56].mxu1 %v7325_v28  ;;  %v12146_v28 = vld [vmem:[%s15112_s8 + $0x430] ss:$8 sps:$4 sm:$0xff]  }
 0x6c4   : > { %7578 = vmatpush1.bf16.msra.mxu1 %v12062_v62  ;;  %7609 = vmatprep.mubr.bf16.mxu1 %v12500_v60  ;;  %v12148_v62 = vld [vmem:[%s15112_s8 + $0x434] ss:$8 sps:$4 sm:$0xff]  }
 0x6c5   : > { %7579 = vmatprep.subr.bf16.mxu1 %v12067_v49  ;;  %v12151_v49 = vld [vmem:[%s15112_s8 + $0x444] ss:$8 sps:$4 sm:$0xff]  }
 0x6c8   : > { %7580 = vmatpush1.bf16.msra.mxu1 %v12065_v21  ;;  %v12149_v21 = vld [vmem:[%s15112_s8 + $0x440] ss:$8 sps:$4 sm:$0xff]  }
 0x6c9   : > { %7581 = vmatprep.subr.bf16.mxu1 %v12070_v40  ;;  %v12154_v40 = vld [vmem:[%s15112_s8 + $0x454] ss:$8 sps:$4 sm:$0xff]  }
 0x6cc   : > { %7582 = vmatpush1.bf16.msra.mxu1 %v12068_v61  ;;  %v12152_v61 = vld [vmem:[%s15112_s8 + $0x450] ss:$8 sps:$4 sm:$0xff]  }
 0x6cd   : > { %7583 = vmatprep.subr.bf16.mxu1 %v12073_v43 }
 0x6d0   : > { %7584 = vmatpush1.bf16.msra.mxu1 %v12071_v26  ;;  %v12157_v26 = vld [vmem:[%s15112_s8 + $0x464] ss:$8 sps:$4 sm:$0xff]  }
 0x6d1   : > { %7585 = vmatprep.subr.bf16.mxu1 %v12076_v22 }
 0x6d4   : > { %7586 = vmatpush1.bf16.msra.mxu1 %v12074_v27 }
 0x6d5   : > { %7587 = vmatprep.subr.bf16.mxu1 %v12079_v30 }
 0x6d8   : > { %7588 = vmatpush1.bf16.msra.mxu1 %v12077_v38 }
 0x6d9   : > { %7589 = vmatprep.subr.bf16.mxu1 %v12082_v47 }
 0x6dc   : > { %7590 = vmatpush1.bf16.msra.mxu1 %v12080_v39 }
 0x6dd   : > { %7591 = vmatprep.subr.bf16.mxu1 %v12085_v8 }
 0x6e0   : > { %7592 = vmatpush1.bf16.msra.mxu1 %v12083_v4  ;;  %v12155_v4 = vld [vmem:[%s15112_s8 + $0x460] ss:$8 sps:$4 sm:$0xff]  }
 0x6e1   : > { %7732 = vmatprep.subr.bf16.mxu1 %v12089_v20 }
 0x6e3   : > { %7610 = vmatmul.mubr.bf16.vlgmr.msra.gmra.mrb[60].mxu1 %v7479_v11  ;;  %v12432_v11 = vld.sshfl [vmem:[#allocation5 + $0xa] sm:$0xf pattern:$0x76325410] }
 0x6e4   : > { %7733 = vmatpush1.bf16.msra.mxu1 %v12087_v10  ;;  %7764 = vmatprep.mubr.bf16.mxu1 %v12500_v60  ;;  %v12160_v10 = vld [vmem:[%s15112_s8 + $0x474] ss:$8 sps:$4 sm:$0xff]  }
 0x6e5   : > { %7734 = vmatprep.subr.bf16.mxu1 %v12092_v17  ;;  %v12158_v17 = vld [vmem:[%s15112_s8 + $0x470] ss:$8 sps:$4 sm:$0xff]  }
 0x6e8   : > { %7735 = vmatpush1.bf16.msra.mxu1 %v12090_v45  ;;  %v12162_v45 = vld [vmem:[%s15114_s10] sm:$0xff]  }
 0x6e9   : > { %7736 = vmatprep.subr.bf16.mxu1 %v12095_v51  ;;  %v7942_v51 = vpack.c.bf16 %v12432_v11, %v12432_v11 }
 0x6ec   : > { %7737 = vmatpush1.bf16.msra.mxu1 %v12093_v37  ;;  %v12163_v37 = vld [vmem:[%s15114_s10 + $0x8] sm:$0xff]  }
 0x6ed   : > { %7738 = vmatprep.subr.bf16.mxu1 %v12098_v0  ;;  %v8115_v0 = vld [vmem:[%s667_s26] sm:$0x1]  ;;  %s12437_s26 = sshll.u32 %s12501_s2, 4  ;;  %s12438_s26 = int_to_ptr.vmem [resolvable:$false] %s12437_s26 }
 0x6ee   : > { %s12439_s0 = scalar_lea.vmem %s12438_s26, 32  ;;  %p12440_p0 = scmp.lt.s32.totalorder %s15064_s22, %s12438_s26 }
 0x6ef   : > { %p12441_p1 = scmp.lt.s32.totalorder %s12439_s0, %s12433_s3 }
 0x6f0   : > { %7739 = vmatpush1.bf16.msra.mxu1 %v12096_v1  ;;  %v8116_v1 = vpack.c.bf16 %v8115_v0, %v8115_v0 }
 0x6f1   : > { %7740 = vmatprep.subr.bf16.mxu1 %v12101_v14  ;;  %p12442_p2 = por %p12441_p1, %p12440_p0 }
 0x6f3   : > { %p12443_p3 = pnand %p12442_p2, %p12436_p13 }
 0x6f4   : > { %7741 = vmatpush1.bf16.msra.mxu1 %v12099_v25 }
 0x6f5   : > { %7742 = vmatprep.subr.bf16.mxu1 %v12104_v18 }
 0x6f8   : > { %7743 = vmatpush1.bf16.msra.mxu1 %v12102_v55 }
 0x6f9   : > { %7744 = vmatprep.subr.bf16.mxu1 %v12107_v12 }
 0x6fc   : > { %7745 = vmatpush1.bf16.msra.mxu1 %v12105_v34 }
 0x6fd   : > { %7746 = vmatprep.subr.bf16.mxu1 %v12110_v42 }
 0x700   : > { %7747 = vmatpush1.bf16.msra.mxu1 %v12108_v5 }
 0x701   : > { %7886 = vmatprep.subr.bf16.mxu1 %v12114_v31 }
 0x703   : > { %7765 = vmatmul.mubr.bf16.vlgmr.msra.gmra.mrb[64].mxu1 %v7634_v48 }
 0x704   : > { %7887 = vmatpush1.bf16.msra.mxu1 %v12112_v52  ;;  %7918 = vmatprep.mubr.bf16.mxu1 %v12500_v60 }
 0x705   : > { %7888 = vmatprep.subr.bf16.mxu1 %v12117_v57 }
 0x708   : > { %7889 = vmatpush1.bf16.msra.mxu1 %v12115_v7 }
 0x709   : > { %7890 = vmatprep.subr.bf16.mxu1 %v12120_v16 }
 0x70c   : > { %7891 = vmatpush1.bf16.msra.mxu1 %v12118_v23 }
 0x70d   : > { %7892 = vmatprep.subr.bf16.mxu1 %v12123_v9 }
 0x710   : > { %7893 = vmatpush1.bf16.msra.mxu1 %v12121_v36 }
 0x711   : > { %7894 = vmatprep.subr.bf16.mxu1 %v12126_v19  ;;  %v12164_v19 = vld [vmem:[%s15116_s12] sm:$0xff]  }
 0x712   : > { %11476 = vmatpush3.bf16.msra.mxu0 %v12164_v19  ;;  %v12209_v19 = vld [vmem:[%s15119_s15 + $0xcc] ss:$16 sps:$4 sm:$0xff]  }
 0x713   : > { %11477 = vmatprep.subr.bf16.mxu0 %v12497_v2 }
 0x714   : > { %7895 = vmatpush1.bf16.msra.mxu1 %v12124_v63  ;;  %v12165_v63 = vld [vmem:[%s15116_s12 + $0x8] sm:$0xff]  }
 0x715   : > { %7896 = vmatprep.subr.bf16.mxu1 %v12129_v35  ;;  %v12168_v35 = vld [vmem:[%s15119_s15] ss:$16 sps:$4 sm:$0xff]  }
 0x716   : > { %11478 = vmatpush3.bf16.msra.mxu0 %v12165_v63  ;;  %v12207_v63 = vld [vmem:[%s15119_s15 + $0xc8] ss:$16 sps:$4 sm:$0xff]  }
 0x717   : > { %11479 = vmatprep.subr.bf16.mxu0 %v12497_v2 }
 0x718   : > { %7897 = vmatpush1.bf16.msra.mxu1 %v12127_v53  ;;  %v12170_v53 = vld [vmem:[%s15119_s15 + $0x4] ss:$16 sps:$4 sm:$0xff]  }
 0x719   : > { %7898 = vmatprep.subr.bf16.mxu1 %v12132_v50  ;;  %v12176_v50 = vld [vmem:[%s15119_s15 + $0x24] ss:$16 sps:$4 sm:$0xff]  }
 0x71c   : > { %7899 = vmatpush1.bf16.msra.mxu1 %v12130_v58  ;;  %v12174_v58 = vld [vmem:[%s15119_s15 + $0x20] ss:$16 sps:$4 sm:$0xff]  }
 0x71d   : > { %7900 = vmatprep.subr.bf16.mxu1 %v12135_v59  ;;  %v12166_v59 = vld [vmem:[%s15116_s12 + $0x10] sm:$0xff]  }
 0x71e   : > { %11480 = vmatpush3.bf16.msra.mxu0 %v12166_v59  ;;  %v12218_v59 = vld [vmem:[%s15118_s14 + $0x4] ss:$16 sps:$4 sm:$0xff]  }
 0x71f   : > { %11481 = vmatprep.subr.bf16.mxu0 %v12497_v2 }
 0x720   : > { %7901 = vmatpush1.bf16.msra.mxu1 %v12133_v24  ;;  %v12180_v24 = vld [vmem:[%s15119_s15 + $0x40] ss:$16 sps:$4 sm:$0xff]  }
 0x721   : > { %8040 = vmatprep.subr.bf16.mxu1 %v12139_v29  ;;  %v12167_v29 = vld [vmem:[%s15116_s12 + $0x18] sm:$0xff]  }
 0x722   : > { %11482 = vmatpush3.bf16.msra.mxu0 %v12167_v29  ;;  %v14603_v29 = vld [vmem:[%s15113_s9] sm:$0x3] }
 0x723   : > { %7919 = vmatmul.mubr.bf16.vlgmr.msra.gmra.mrb[68].mxu1 %v7788_v32  ;;  %v12188_v32 = vld [vmem:[%s15119_s15 + $0x64] ss:$16 sps:$4 sm:$0xff]  }
 0x724   : > { %8041 = vmatpush1.bf16.msra.mxu1 %v12137_v15  ;;  %8072 = vmatprep.mubr.bf16.mxu1 %v12500_v60  ;;  %v12173_v15 = vld [vmem:[%s15119_s15 + $0xc] ss:$16 sps:$4 sm:$0xff]  }
 0x725   : > { %8042 = vmatprep.subr.bf16.mxu1 %v12142_v41  ;;  %v12186_v41 = vld [vmem:[%s15119_s15 + $0x60] ss:$16 sps:$4 sm:$0xff]   ;;  %8556 = vmatprep.subr.bf16.mxu0 %v12173_v15 }
 0x728   : > { %8043 = vmatpush1.bf16.msra.mxu1 %v12140_v54  ;;  %v12192_v54 = vld [vmem:[%s15119_s15 + $0x80] ss:$16 sps:$4 sm:$0xff]  }
 0x729   : > { %8044 = vmatprep.subr.bf16.mxu1 %v12145_v44 }
 0x72c   : > { %8045 = vmatpush1.bf16.msra.mxu1 %v12143_v33  ;;  %v12200_v33 = vld [vmem:[%s15119_s15 + $0xa4] ss:$16 sps:$4 sm:$0xff]  }
 0x72d   : > { %8046 = vmatprep.subr.bf16.mxu1 %v12148_v62 }
 0x730   : > { %8047 = vmatpush1.bf16.msra.mxu1 %v12146_v28 }
 0x731   : > { %8048 = vmatprep.subr.bf16.mxu1 %v12151_v49 }
 0x734   : > { %8049 = vmatpush1.bf16.msra.mxu1 %v12149_v21 }
 0x735   : > { %v6876_v43 = vpop.f32.mrb[40].mxu0  ;;  %8050 = vmatprep.subr.bf16.mxu1 %v12154_v40  ;;  %v12198_v40 = vld [vmem:[%s15119_s15 + $0xa0] ss:$16 sps:$4 sm:$0xff]  }
 0x736   : > { %v6997_v22 = vpop.f32.mrb[44].mxu1  ;;  %v6878_v27 = vpop.f32.mrb[41].mxu0 }
 0x737   : > { %v6998_v30 = vadd.f32 %v6997_v22, %v6876_v43  ;;  %v6999_v38 = vpop.f32.mrb[45].mxu1  ;;  %v6880_v47 = vpop.f32.mrb[42].mxu0  ;;  %v12206_v43 = vld [vmem:[%s15119_s15 + $0xc4] ss:$16 sps:$4 sm:$0xff]  }
 0x738   : > { %v7000_v39 = vadd.f32 %v6999_v38, %v6878_v27  ;;  %8051 = vmatpush1.bf16.msra.mxu1 %v12152_v61  ;;  %v7001_v8 = vpop.f32.mrb[46].mxu1  ;;  %v6881_v56 = vpop.f32.mrb[43].mxu0 }
 0x739   : > { %v7002_v20 = vpop.f32.mrb[47].mxu1  ;;  %8052 = vmatprep.subr.bf16.mxu1 %v12157_v26  ;;  %v12204_v26 = vld [vmem:[%s15119_s15 + $0xc0] ss:$16 sps:$4 sm:$0xff]  }
 0x73c   : > { %8053 = vmatpush1.bf16.msra.mxu1 %v12155_v4 }
 0x73d   : > { %8054 = vmatprep.subr.bf16.mxu1 %v12160_v10 }
 0x740   : > { %8055 = vmatpush1.bf16.msra.mxu1 %v12158_v17 }
 0x741   : > { %11467 = vmatprep.subr.bf16.mxu1 %v12497_v2 }
 0x743   : > { %8073 = vmatmul.mubr.bf16.vlgmr.msra.gmra.mrb[72].mxu1 %v7942_v51 }
 0x744   : > { %11468 = vmatpush3.bf16.msra.mxu1 %v12162_v45  ;;  %11471 = vmatprep.mubr.msk.bf16.mxu1 %vm12499_vm13, %v12497_v2 }
 0x745   : > { %11469 = vmatprep.subr.bf16.mxu1 %v12497_v2  ;;  %v12194_v2 = vld [vmem:[%s15119_s15 + $0x84] ss:$16 sps:$4 sm:$0xff]  }
 0x748   : > { %11470 = vmatpush3.bf16.msra.mxu1 %v12163_v37 }
 0x749   : > { %8515 = vmatprep.subr.bf16.mxu1 %v12170_v53  ;;  %v12212_v53 = vld [vmem:[%s15119_s15 + $0xe4] ss:$16 sps:$4 sm:$0xff]  }
 0x74b   : > { %11472 = vmatmul.mubr.msk.bf16.vlgmr.msra.gmra.mrb[76].mxu1 %vm4068_vm3, %v8116_v1 }
 0x74c   : > { %8547 = vmatprep.mubr.bf16.mxu1 %v12500_v60  ;;  %8516 = vmatpush1.bf16.msra.mxu1 %v12168_v35  ;;  %v12210_v35 = vld [vmem:[%s15119_s15 + $0xe0] ss:$16 sps:$4 sm:$0xff]  }
 0x74d   : > { %8517 = vmatprep.subr.bf16.mxu1 %v12176_v50  ;;  %v12213_v50 = vld [vmem:[%s15119_s15 + $0xe8] ss:$16 sps:$4 sm:$0xff]  }
 0x750   : > { %8518 = vmatpush1.bf16.msra.mxu1 %v12174_v58  ;;  %v12215_v58 = vld [vmem:[%s15119_s15 + $0xec] ss:$16 sps:$4 sm:$0xff]  }
 0x751   : > { %8519 = vmatprep.subr.bf16.mxu1 %v12182_v3  ;;  %v12221_v3 = vld [vmem:[%s15118_s14 + $0xc] ss:$16 sps:$4 sm:$0xff]  }
 0x754   : > { %8520 = vmatpush1.bf16.msra.mxu1 %v12180_v24  ;;  %v14598_v24 = vsub.s32 1, %v13337_v13 }
 0x755   : > { %8521 = vmatprep.subr.bf16.mxu1 %v12188_v32 }
 0x756   : > { %v7149_v14 = vpop.f32.mrb[48].mxu1  ;;  %v8092_v15 = vrot.slane %v14603_v29, %v14598_v24 }
 0x757   : > { %v7156_v25 = vadd.f32 %v7149_v14, %v6998_v30  ;;  %v7151_v18 = vpop.f32.mrb[49].mxu1  ;;  %v8121_v14 = vld [vmem:[%s15115_s11] sm:$0x1] }
 0x758   : > { %v7157_v55 = vadd.f32 %v7151_v18, %v7000_v39  ;;  %v7153_v12 = vpop.f32.mrb[50].mxu1  ;;  %8522 = vmatpush1.bf16.msra.mxu1 %v12186_v41 }
 0x759   : > { %v7154_v34 = vpop.f32.mrb[51].mxu1  ;;  %8523 = vmatprep.subr.bf16.mxu1 %v12194_v2 }
 0x75c   : > { %8524 = vmatpush1.bf16.msra.mxu1 %v12192_v54 }
 0x75d   : > { %8525 = vmatprep.subr.bf16.mxu1 %v12200_v33 }
 0x760   : > { %8526 = vmatpush1.bf16.msra.mxu1 %v12198_v40 }
 0x761   : > { %8527 = vmatprep.subr.bf16.mxu1 %v12206_v43 }
 0x764   : > { %8528 = vmatpush1.bf16.msra.mxu1 %v12204_v26  ;;  %v12216_v26 = vld [vmem:[%s15118_s14] ss:$16 sps:$4 sm:$0xff]  }
 0x765   : > { %8529 = vmatprep.subr.bf16.mxu1 %v12212_v53  ;;  %v8088_v53 = vrot.slane %v14603_v29, %v13348_v6 }
 0x768   : > { %8530 = vmatpush1.bf16.msra.mxu1 %v12210_v35  ;;  %v12273_v35 = vld [vmem:[%s15118_s14 + $0x128] ss:$16 sps:$4 sm:$0xff]  }
 0x769   : > { %8917 = vmatprep.subr.bf16.mxu1 %v12218_v59  ;;  %v12276_v59 = vld [vmem:[%s15118_s14 + $0x140] ss:$16 sps:$4 sm:$0xff]  }
 0x776   : > { %v7303_v42 = vpop.f32.mrb[52].mxu1 }
 0x777   : > { %v7310_v46 = vadd.f32 %v7303_v42, %v7156_v25  ;;  %v7305_v5 = vpop.f32.mrb[53].mxu1 }
 0x778   : > { %v7311_v31 = vadd.f32 %v7305_v5, %v7157_v55  ;;  %v7307_v52 = vpop.f32.mrb[54].mxu1 }
 0x779   : > { %v7308_v48 = vpop.f32.mrb[55].mxu1  ;;  %v12177_v52 = vld [vmem:[%s15119_s15 + $0x28] ss:$16 sps:$4 sm:$0xff]  }
 0x77a   : > { %v12185_v48 = vld [vmem:[%s15119_s15 + $0x4c] ss:$16 sps:$4 sm:$0xff]  }
 0x796   : > { %v7457_v57 = vpop.f32.mrb[56].mxu1 }
 0x797   : > { %v7464_v7 = vadd.f32 %v7457_v57, %v7310_v46  ;;  %v7459_v16 = vpop.f32.mrb[57].mxu1  ;;  %v12171_v46 = vld [vmem:[%s15119_s15 + $0x8] ss:$16 sps:$4 sm:$0xff]  }
 0x798   : > { %v7465_v23 = vadd.f32 %v7459_v16, %v7311_v31  ;;  %v7461_v9 = vpop.f32.mrb[58].mxu1  ;;  %v12179_v31 = vld [vmem:[%s15119_s15 + $0x2c] ss:$16 sps:$4 sm:$0xff]   ;;  %v12183_v57 = vld [vmem:[%s15119_s15 + $0x48] ss:$16 sps:$4 sm:$0xff]  }
 0x799   : > { %v7462_v36 = vpop.f32.mrb[59].mxu1  ;;  %v12197_v16 = vld [vmem:[%s15119_s15 + $0x8c] ss:$16 sps:$4 sm:$0xff]  }
 0x79a   : > { %v12203_v9 = vld [vmem:[%s15119_s15 + $0xac] ss:$16 sps:$4 sm:$0xff]   ;;  %v12201_v36 = vld [vmem:[%s15119_s15 + $0xa8] ss:$16 sps:$4 sm:$0xff]  }
 0x7b6   : > { %v7611_v44 = vpop.f32.mrb[60].mxu1 }
 0x7b7   : > { %v7618_v62 = vadd.f32 %v7611_v44, %v7464_v7  ;;  %v7613_v28 = vpop.f32.mrb[61].mxu1  ;;  %v12191_v7 = vld [vmem:[%s15119_s15 + $0x6c] ss:$16 sps:$4 sm:$0xff]   ;;  %v8187_v44 = vld [vmem:[%s15117_s13] sm:$0x1] }
 0x7b8   : > { %v7619_v49 = vadd.f32 %v7613_v28, %v7465_v23  ;;  %v7615_v21 = vpop.f32.mrb[62].mxu1  ;;  %v12195_v23 = vld [vmem:[%s15119_s15 + $0x88] ss:$16 sps:$4 sm:$0xff]  }
 0x7b9   : > { %v7616_v61 = vpop.f32.mrb[63].mxu1 }
 0x7d6   : > { %v7766_v22 = vpop.f32.mrb[64].mxu1 }
 0x7d7   : > { %v7773_v27 = vadd.f32 %v7766_v22, %v7618_v62  ;;  %v7768_v30 = vpop.f32.mrb[65].mxu1  ;;  %v12219_v22 = vld [vmem:[%s15118_s14 + $0x8] ss:$16 sps:$4 sm:$0xff]  }
 0x7d8   : > { %v7774_v38 = vadd.f32 %v7768_v30, %v7619_v49  ;;  %v7770_v47 = vpop.f32.mrb[66].mxu1  ;;  %v12224_v30 = vld [vmem:[%s15118_s14 + $0x24] ss:$16 sps:$4 sm:$0xff]  }
 0x7d9   : > { %v7771_v39 = vpop.f32.mrb[67].mxu1 }
 0x7da   : > { %v12222_v39 = vld [vmem:[%s15118_s14 + $0x20] ss:$16 sps:$4 sm:$0xff]  }
 0x7f6   : > { %v7920_v8 = vpop.f32.mrb[68].mxu1 }
 0x7f7   : > { %v7927_v56 = vadd.f32 %v7920_v8, %v7773_v27  ;;  %v7922_v4 = vpop.f32.mrb[69].mxu1  ;;  %v12225_v8 = vld [vmem:[%s15118_s14 + $0x28] ss:$16 sps:$4 sm:$0xff]  }
 0x7f8   : > { %v7928_v20 = vadd.f32 %v7922_v4, %v7774_v38  ;;  %v7924_v10 = vpop.f32.mrb[70].mxu1  ;;  %v12227_v38 = vld [vmem:[%s15118_s14 + $0x2c] ss:$16 sps:$4 sm:$0xff]  }
 0x7f9   : > { %v7925_v11 = vpop.f32.mrb[71].mxu1  ;;  %v12233_v4 = vld [vmem:[%s15118_s14 + $0x4c] ss:$16 sps:$4 sm:$0xff]   ;;  %v12231_v10 = vld [vmem:[%s15118_s14 + $0x48] ss:$16 sps:$4 sm:$0xff]  }
 0x7fa   : > { %v12236_v11 = vld [vmem:[%s15118_s14 + $0x64] ss:$16 sps:$4 sm:$0xff]  }
 0x816   : > { %v8074_v17 = vpop.f32.mrb[72].mxu1 }
 0x817   : > { %v14533_v45 = vadd.f32 %v8074_v17, %v7927_v56  ;;  %v8076_v51 = vpop.f32.mrb[73].mxu1  ;;  %v12230_v56 = vld [vmem:[%s15118_s14 + $0x44] ss:$16 sps:$4 sm:$0xff]   ;;  %v12239_v17 = vld [vmem:[%s15118_s14 + $0x6c] ss:$16 sps:$4 sm:$0xff]  }
 0x818   : > { %v8082_v37 = vadd.f32 %v8076_v51, %v7928_v20  ;;  %v8078_v0 = vpop.f32.mrb[74].mxu1  ;;  %v12228_v20 = vld [vmem:[%s15118_s14 + $0x40] ss:$16 sps:$4 sm:$0xff]  }
 0x819   : > { %v8079_v1 = vpop.f32.mrb[75].mxu1  ;;  %v12234_v51 = vld [vmem:[%s15118_s14 + $0x60] ss:$16 sps:$4 sm:$0xff]   ;;  %v12242_v0 = vld [vmem:[%s15118_s14 + $0x84] ss:$16 sps:$4 sm:$0xff]   ;;  %v8095_v29 = vadd.f32 %v8088_v53, %v14533_v45 }
 0x81a   : > { %v8096_v32 = vadd.f32 %v8092_v15, %v8082_v37  ;;  %v12237_v37 = vld [vmem:[%s15118_s14 + $0x68] ss:$16 sps:$4 sm:$0xff]   ;;  %v12245_v1 = vld [vmem:[%s15118_s14 + $0x8c] ss:$16 sps:$4 sm:$0xff]   ;;  %v12284_v15 = vld [vmem:[%s15118_s14 + $0x164] ss:$16 sps:$4 sm:$0xff]  }
 0x81b   : > { %v12285_v45 = vld [vmem:[%s15118_s14 + $0x168] ss:$16 sps:$4 sm:$0xff]   ;;  %v12356_v53 = vld [vmem:[%s15121_s17 + $0xe4] ss:$8 sps:$4 sm:$0xff]  }
 0x81c   : > { %v8098_v41 = vmax.f32 %v8096_v32, 0.0  ;;  %v12287_v32 = vld [vmem:[%s15118_s14 + $0x16c] ss:$16 sps:$4 sm:$0xff]  }
 0x81e   : > { %v8171_v25 = vpop.f32.mrb[76].mxu1  ;;  %v8102_v2 = vrot.slane %v8098_v41, 2 }
 0x81f   : > { %v8172_v18 = vadd.f32 %v8171_v25, %v8121_v14  ;;  %v11473_v55 = vpop.f32.mrb[77].mxu1  ;;  %v12240_v14 = vld [vmem:[%s15118_s14 + $0x80] ss:$16 sps:$4 sm:$0xff]   ;;  %v12243_v25 = vld [vmem:[%s15118_s14 + $0x88] ss:$16 sps:$4 sm:$0xff]  }
 0x820   : > { %v8174_v12 = vpop.f32.mrb[78].mxu1  ;;  %v8106_v54 = vmax.f32 %v8098_v41, %v8102_v2  ;;  %v12251_v55 = vld [vmem:[%s15118_s14 + $0xac] ss:$16 sps:$4 sm:$0xff]   ;;  %v12282_v41 = vld [vmem:[%s15118_s14 + $0x160] ss:$16 sps:$4 sm:$0xff]   ;;  %v8097_v2 = vmax.f32 %v8095_v29, 0.0 }
 0x821   : > { %v8177_v34 = vmax.f32 %v8172_v18, 0.0  ;;  %v11474_v42 = vpop.f32.mrb[79].mxu1  ;;  %v12248_v18 = vld [vmem:[%s15118_s14 + $0xa4] ss:$16 sps:$4 sm:$0xff]   ;;  %v12246_v12 = vld [vmem:[%s15118_s14 + $0xa0] ss:$16 sps:$4 sm:$0xff]  }
 0x822   : > { %v8110_v33 = vrot.slane %v8106_v54, 1  ;;  %v12254_v42 = vld [vmem:[%s15118_s14 + $0xc4] ss:$16 sps:$4 sm:$0xff]  }
 0x823   : > { %v8178_v5 = vpack.c.bf16 %v8177_v34, %v8177_v34  ;;  %v12249_v34 = vld [vmem:[%s15118_s14 + $0xa8] ss:$16 sps:$4 sm:$0xff]  }
 0x824   : > { %v8114_v43 = vmax.f32 %v8106_v54, %v8110_v33  ;;  %v12290_v54 = vld [vmem:[%s15118_s14 + $0x184] ss:$16 sps:$4 sm:$0xff]   ;;  %v12288_v33 = vld [vmem:[%s15118_s14 + $0x180] ss:$16 sps:$4 sm:$0xff]  }
 0x825   : > { %11484 = vmatmul.mubr.msk.bf16.vlgmr.msra.gmra.mrb[44].mxu0 %vm5855_vm15, %v8178_v5  ;;  %v12252_v5 = vld [vmem:[%s15118_s14 + $0xc0] ss:$16 sps:$4 sm:$0xff]  }
 0x826   : > { %8557 = vmatpush1.bf16.msra.mxu0 %v12171_v46  ;;  %8588 = vmatprep.mubr.bf16.mxu0 %v12500_v60  ;;  %v12189_v60 = vld [vmem:[%s15119_s15 + $0x68] ss:$16 sps:$4 sm:$0xff]   ;;  %v8257_v47 = vpack.c.bf16 %v8114_v43, %v8114_v43  ;;  %v12257_v46 = vld [vmem:[%s15118_s14 + $0xcc] ss:$16 sps:$4 sm:$0xff]  }
 0x827   : > { %8558 = vmatprep.subr.bf16.mxu0 %v12179_v31  ;;  %v12255_v31 = vld [vmem:[%s15118_s14 + $0xc8] ss:$16 sps:$4 sm:$0xff]  }
 0x82a   : > { %8559 = vmatpush1.bf16.msra.mxu0 %v12177_v52  ;;  %v12260_v52 = vld [vmem:[%s15118_s14 + $0xe4] ss:$16 sps:$4 sm:$0xff]  }
 0x82b   : > { %8560 = vmatprep.subr.bf16.mxu0 %v12185_v48  ;;  %v12263_v48 = vld [vmem:[%s15118_s14 + $0xec] ss:$16 sps:$4 sm:$0xff]  }
 0x82e   : > { %8561 = vmatpush1.bf16.msra.mxu0 %v12183_v57  ;;  %v12258_v57 = vld [vmem:[%s15118_s14 + $0xe0] ss:$16 sps:$4 sm:$0xff]  }
 0x82f   : > { %8562 = vmatprep.subr.bf16.mxu0 %v12191_v7  ;;  %v12261_v7 = vld [vmem:[%s15118_s14 + $0xe8] ss:$16 sps:$4 sm:$0xff]  }
 0x832   : > { %8563 = vmatpush1.bf16.msra.mxu0 %v12189_v60  ;;  %v12266_v60 = vld [vmem:[%s15118_s14 + $0x104] ss:$16 sps:$4 sm:$0xff]  }
 0x833   : > { %8564 = vmatprep.subr.bf16.mxu0 %v12197_v16  ;;  %v12269_v16 = vld [vmem:[%s15118_s14 + $0x10c] ss:$16 sps:$4 sm:$0xff]  }
 0x836   : > { %8565 = vmatpush1.bf16.msra.mxu0 %v12195_v23  ;;  %v12264_v23 = vld [vmem:[%s15118_s14 + $0x100] ss:$16 sps:$4 sm:$0xff]  }
 0x837   : > { %8566 = vmatprep.subr.bf16.mxu0 %v12203_v9  ;;  %v12267_v9 = vld [vmem:[%s15118_s14 + $0x108] ss:$16 sps:$4 sm:$0xff]  }
 0x83a   : > { %8567 = vmatpush1.bf16.msra.mxu0 %v12201_v36  ;;  %v12272_v36 = vld [vmem:[%s15118_s14 + $0x124] ss:$16 sps:$4 sm:$0xff]  }
 0x83b   : > { %8568 = vmatprep.subr.bf16.mxu0 %v12209_v19  ;;  %v12275_v19 = vld [vmem:[%s15118_s14 + $0x12c] ss:$16 sps:$4 sm:$0xff]  }
 0x83e   : > { %8569 = vmatpush1.bf16.msra.mxu0 %v12207_v63  ;;  %v12270_v63 = vld [vmem:[%s15118_s14 + $0x120] ss:$16 sps:$4 sm:$0xff]  }
 0x83f   : > { %8570 = vmatprep.subr.bf16.mxu0 %v12215_v58  ;;  %v12281_v58 = vld [vmem:[%s15118_s14 + $0x14c] ss:$16 sps:$4 sm:$0xff]  }
 0x842   : > { %8571 = vmatpush1.bf16.msra.mxu0 %v12213_v50  ;;  %v12278_v50 = vld [vmem:[%s15118_s14 + $0x144] ss:$16 sps:$4 sm:$0xff]  }
 0x843   : > { %8958 = vmatprep.subr.bf16.mxu0 %v12221_v3  ;;  %v12279_v3 = vld [vmem:[%s15118_s14 + $0x148] ss:$16 sps:$4 sm:$0xff]  }
 0x8f8   : > { %v8249_v62 = vpop.f32.mrb[44].mxu0 }
 0x8f9   : > { %v8250_v28 = vadd.f32 %v8249_v62, %v8187_v44  ;;  %v11485_v49 = vpop.f32.mrb[45].mxu0  ;;  %v12293_v44 = vld [vmem:[%s15118_s14 + $0x18c] ss:$16 sps:$4 sm:$0xff]   ;;  %v12291_v62 = vld [vmem:[%s15118_s14 + $0x188] ss:$16 sps:$4 sm:$0xff]  }
 0x8fa   : > { %v8252_v21 = vpop.f32.mrb[46].mxu0  ;;  %v12296_v49 = vld [vmem:[%s15118_s14 + $0x1a4] ss:$16 sps:$4 sm:$0xff]  }
 0x8fb   : > { %v8255_v40 = vmax.f32 %v8250_v28, 0.0  ;;  %v11486_v61 = vpop.f32.mrb[47].mxu0  ;;  %v8101_v28 = vrot.slane %v8097_v2, 2  ;;  %v12299_v21 = vld [vmem:[%s15118_s14 + $0x1ac] ss:$16 sps:$4 sm:$0xff]  }
 0x8fc   : > { %v12297_v61 = vld [vmem:[%s15118_s14 + $0x1a8] ss:$16 sps:$4 sm:$0xff]  }
 0x8fd   : > { %v8322_v27 = vpack.c.bf16 %v8255_v40, %v8255_v40  ;;  %v12294_v40 = vld [vmem:[%s15118_s14 + $0x1a0] ss:$16 sps:$4 sm:$0xff]   ;;  %v8105_v43 = vmax.f32 %v8097_v2, %v8101_v28  ;;  %v12411_v28 = vld [vmem:[%s15123_s19 + $0x8] sm:$0xff]  }
 0x8ff   : > { %8548 = vmatmul.mubr.bf16.vlgmr.msra.gmra.mrb[80].mxu1 %v8322_v27  ;;  %8589 = vmatmul.mubr.bf16.vlgmr.msra.gmra.mrb[48].mxu0 %v8322_v27  ;;  %v12300_v27 = vld [vmem:[%s15118_s14 + $0x1c0] ss:$16 sps:$4 sm:$0xff]  }
 0x900   : > { %8918 = vmatpush1.bf16.msra.mxu1 %v12216_v26  ;;  %8959 = vmatpush1.bf16.msra.mxu0 %v12219_v22  ;;  %v12302_v26 = vld [vmem:[%s15118_s14 + $0x1c4] ss:$16 sps:$4 sm:$0xff]   ;;  %v12305_v22 = vld [vmem:[%s15118_s14 + $0x1cc] ss:$16 sps:$4 sm:$0xff]  }
 0x901   : > { %8949 = vmatprep.mubr.bf16.mxu1 %v8257_v47  ;;  %8990 = vmatprep.mubr.bf16.mxu0 %v8257_v47  ;;  %v12308_v47 = vld [vmem:[%s15118_s14 + $0x1e4] ss:$16 sps:$4 sm:$0xff]  }
 0x902   : > { %8919 = vmatprep.subr.bf16.mxu1 %v12224_v30  ;;  %8960 = vmatprep.subr.bf16.mxu0 %v12227_v38  ;;  %v12303_v30 = vld [vmem:[%s15118_s14 + $0x1c8] ss:$16 sps:$4 sm:$0xff]   ;;  %v8109_v38 = vrot.slane %v8105_v43, 1 }
 0x904   : > { %8920 = vmatpush1.bf16.msra.mxu1 %v12222_v39  ;;  %8961 = vmatpush1.bf16.msra.mxu0 %v12225_v8  ;;  %v12311_v39 = vld [vmem:[%s15118_s14 + $0x1ec] ss:$16 sps:$4 sm:$0xff]   ;;  %v12306_v8 = vld [vmem:[%s15118_s14 + $0x1e0] ss:$16 sps:$4 sm:$0xff]  }
 0x905   : > { %8921 = vmatprep.subr.bf16.mxu1 %v12230_v56  ;;  %8962 = vmatprep.subr.bf16.mxu0 %v12233_v4  ;;  %v12309_v56 = vld [vmem:[%s15118_s14 + $0x1e8] ss:$16 sps:$4 sm:$0xff]   ;;  %v8113_v4 = vmax.f32 %v8105_v43, %v8109_v38  ;;  %v12416_v43 = vld [vmem:[%s15123_s19 + $0x60] sm:$0xff]  }
 0x906   : > { %v8999_v38 = vld [vmem:[%s15120_s16] sm:$0xf] }
 0x908   : > { %8922 = vmatpush1.bf16.msra.mxu1 %v12228_v20  ;;  %8963 = vmatpush1.bf16.msra.mxu0 %v12231_v10  ;;  %v8256_v20 = vpack.c.bf16 %v8113_v4, %v8113_v4  ;;  %v12312_v10 = vld [vmem:[%s15121_s17] ss:$8 sps:$4 sm:$0xff]  }
 0x909   : > { %8923 = vmatprep.subr.bf16.mxu1 %v12236_v11  ;;  %8964 = vmatprep.subr.bf16.mxu0 %v12239_v17  ;;  %v12314_v11 = vld [vmem:[%s15121_s17 + $0x4] ss:$8 sps:$4 sm:$0xff]   ;;  %v12317_v17 = vld [vmem:[%s15121_s17 + $0x14] ss:$8 sps:$4 sm:$0xff]  }
 0x90c   : > { %8924 = vmatpush1.bf16.msra.mxu1 %v12234_v51  ;;  %8965 = vmatpush1.bf16.msra.mxu0 %v12237_v37  ;;  %v12315_v51 = vld [vmem:[%s15121_s17 + $0x10] ss:$8 sps:$4 sm:$0xff]   ;;  %v12320_v37 = vld [vmem:[%s15121_s17 + $0x24] ss:$8 sps:$4 sm:$0xff]  }
 0x90d   : > { %8925 = vmatprep.subr.bf16.mxu1 %v12242_v0  ;;  %8966 = vmatprep.subr.bf16.mxu0 %v12245_v1  ;;  %v12318_v0 = vld [vmem:[%s15121_s17 + $0x20] ss:$8 sps:$4 sm:$0xff]   ;;  %v12323_v1 = vld [vmem:[%s15121_s17 + $0x34] ss:$8 sps:$4 sm:$0xff]  }
 0x910   : > { %8926 = vmatpush1.bf16.msra.mxu1 %v12240_v14  ;;  %8967 = vmatpush1.bf16.msra.mxu0 %v12243_v25  ;;  %v12321_v14 = vld [vmem:[%s15121_s17 + $0x30] ss:$8 sps:$4 sm:$0xff]   ;;  %v12326_v25 = vld [vmem:[%s15121_s17 + $0x44] ss:$8 sps:$4 sm:$0xff]  }
 0x911   : > { %8927 = vmatprep.subr.bf16.mxu1 %v12248_v18  ;;  %8968 = vmatprep.subr.bf16.mxu0 %v12251_v55  ;;  %v12324_v18 = vld [vmem:[%s15121_s17 + $0x40] ss:$8 sps:$4 sm:$0xff]   ;;  %v12329_v55 = vld [vmem:[%s15121_s17 + $0x54] ss:$8 sps:$4 sm:$0xff]  }
 0x914   : > { %8928 = vmatpush1.bf16.msra.mxu1 %v12246_v12  ;;  %8969 = vmatpush1.bf16.msra.mxu0 %v12249_v34  ;;  %v12327_v12 = vld [vmem:[%s15121_s17 + $0x50] ss:$8 sps:$4 sm:$0xff]   ;;  %v12332_v34 = vld [vmem:[%s15121_s17 + $0x64] ss:$8 sps:$4 sm:$0xff]  }
 0x915   : > { %8929 = vmatprep.subr.bf16.mxu1 %v12254_v42  ;;  %8970 = vmatprep.subr.bf16.mxu0 %v12257_v46  ;;  %v12330_v42 = vld [vmem:[%s15121_s17 + $0x60] ss:$8 sps:$4 sm:$0xff]   ;;  %v12335_v46 = vld [vmem:[%s15121_s17 + $0x74] ss:$8 sps:$4 sm:$0xff]  }
 0x918   : > { %8930 = vmatpush1.bf16.msra.mxu1 %v12252_v5  ;;  %8971 = vmatpush1.bf16.msra.mxu0 %v12255_v31  ;;  %v12333_v5 = vld [vmem:[%s15121_s17 + $0x70] ss:$8 sps:$4 sm:$0xff]   ;;  %v12338_v31 = vld [vmem:[%s15121_s17 + $0x84] ss:$8 sps:$4 sm:$0xff]  }
 0x919   : > { %8931 = vmatprep.subr.bf16.mxu1 %v12260_v52  ;;  %8972 = vmatprep.subr.bf16.mxu0 %v12263_v48  ;;  %v12336_v52 = vld [vmem:[%s15121_s17 + $0x80] ss:$8 sps:$4 sm:$0xff]   ;;  %v12341_v48 = vld [vmem:[%s15121_s17 + $0x94] ss:$8 sps:$4 sm:$0xff]  }
 0x91c   : > { %8932 = vmatpush1.bf16.msra.mxu1 %v12258_v57  ;;  %8973 = vmatpush1.bf16.msra.mxu0 %v12261_v7  ;;  %v12339_v57 = vld [vmem:[%s15121_s17 + $0x90] ss:$8 sps:$4 sm:$0xff]   ;;  %v12344_v7 = vld [vmem:[%s15121_s17 + $0xa4] ss:$8 sps:$4 sm:$0xff]  }
 0x91d   : > { %8933 = vmatprep.subr.bf16.mxu1 %v12266_v60  ;;  %8974 = vmatprep.subr.bf16.mxu0 %v12269_v16  ;;  %v12342_v60 = vld [vmem:[%s15121_s17 + $0xa0] ss:$8 sps:$4 sm:$0xff]   ;;  %v12347_v16 = vld [vmem:[%s15121_s17 + $0xb4] ss:$8 sps:$4 sm:$0xff]  }
 0x920   : > { %8934 = vmatpush1.bf16.msra.mxu1 %v12264_v23  ;;  %8975 = vmatpush1.bf16.msra.mxu0 %v12267_v9  ;;  %v12345_v23 = vld [vmem:[%s15121_s17 + $0xb0] ss:$8 sps:$4 sm:$0xff]   ;;  %v12350_v9 = vld [vmem:[%s15121_s17 + $0xc4] ss:$8 sps:$4 sm:$0xff]  }
 0x921   : > { %8935 = vmatprep.subr.bf16.mxu1 %v12272_v36  ;;  %8976 = vmatprep.subr.bf16.mxu0 %v12275_v19  ;;  %v12348_v36 = vld [vmem:[%s15121_s17 + $0xc0] ss:$8 sps:$4 sm:$0xff]   ;;  %v12353_v19 = vld [vmem:[%s15121_s17 + $0xd4] ss:$8 sps:$4 sm:$0xff]  }
 0x924   : > { %8936 = vmatpush1.bf16.msra.mxu1 %v12270_v63  ;;  %8977 = vmatpush1.bf16.msra.mxu0 %v12273_v35  ;;  %v12351_v63 = vld [vmem:[%s15121_s17 + $0xd0] ss:$8 sps:$4 sm:$0xff]   ;;  %v12354_v35 = vld [vmem:[%s15121_s17 + $0xe0] ss:$8 sps:$4 sm:$0xff]  }
 0x925   : > { %8937 = vmatprep.subr.bf16.mxu1 %v12278_v50  ;;  %8978 = vmatprep.subr.bf16.mxu0 %v12281_v58  ;;  %v12359_v50 = vld [vmem:[%s15121_s17 + $0xf4] ss:$8 sps:$4 sm:$0xff]   ;;  %v12357_v58 = vld [vmem:[%s15121_s17 + $0xf0] ss:$8 sps:$4 sm:$0xff]  }
 0x928   : > { %8938 = vmatpush1.bf16.msra.mxu1 %v12276_v59  ;;  %8979 = vmatpush1.bf16.msra.mxu0 %v12279_v3  ;;  %v12362_v59 = vld [vmem:[%s15121_s17 + $0x104] ss:$8 sps:$4 sm:$0xff]  }
 0x929   : > { %8939 = vmatprep.subr.bf16.mxu1 %v12284_v15  ;;  %8980 = vmatprep.subr.bf16.mxu0 %v12287_v32 }
 0x92c   : > { %8940 = vmatpush1.bf16.msra.mxu1 %v12282_v41  ;;  %8981 = vmatpush1.bf16.msra.mxu0 %v12285_v45 }
 0x92d   : > { %8941 = vmatprep.subr.bf16.mxu1 %v12290_v54  ;;  %8982 = vmatprep.subr.bf16.mxu0 %v12293_v44  ;;  %v12408_v44 = vld [vmem:[%s15123_s19 + $0x40] sm:$0xff]  }
 0x930   : > { %8942 = vmatpush1.bf16.msra.mxu1 %v12288_v33  ;;  %8983 = vmatpush1.bf16.msra.mxu0 %v12291_v62  ;;  %v12409_v33 = vld [vmem:[%s15123_s19] sm:$0xff]   ;;  %v12410_v62 = vld [vmem:[%s15123_s19 + $0x48] sm:$0xff]  }
 0x931   : > { %8943 = vmatprep.subr.bf16.mxu1 %v12296_v49  ;;  %8984 = vmatprep.subr.bf16.mxu0 %v12299_v21  ;;  %v12412_v49 = vld [vmem:[%s15123_s19 + $0x50] sm:$0xff]  }
 0x932   : > { %v12413_v21 = vld [vmem:[%s15123_s19 + $0x10] sm:$0xff]  }
 0x934   : > { %8944 = vmatpush1.bf16.msra.mxu1 %v12294_v40  ;;  %8985 = vmatpush1.bf16.msra.mxu0 %v12297_v61  ;;  %v12414_v40 = vld [vmem:[%s15123_s19 + $0x58] sm:$0xff]  }
 0x935   : > { %8945 = vmatprep.subr.bf16.mxu1 %v12302_v26  ;;  %8986 = vmatprep.subr.bf16.mxu0 %v12305_v22  ;;  %v12415_v61 = vld [vmem:[%s15123_s19 + $0x18] sm:$0xff]   ;;  %v12417_v26 = vld [vmem:[%s15123_s19 + $0x20] sm:$0xff]   ;;  %v12418_v22 = vld [vmem:[%s15123_s19 + $0x68] sm:$0xff]  }
 0x938   : > { %8946 = vmatpush1.bf16.msra.mxu1 %v12300_v27  ;;  %8987 = vmatpush1.bf16.msra.mxu0 %v12303_v30  ;;  %v12419_v27 = vld [vmem:[%s15123_s19 + $0x28] sm:$0xff]   ;;  %v9011_v30 = vsub.s32 2, %v13337_v13 }
 0x939   : > { %8947 = vmatprep.subr.bf16.mxu1 %v12308_v47  ;;  %8988 = vmatprep.subr.bf16.mxu0 %v12311_v39  ;;  %v9015_v47 = vsub.s32 3, %v13337_v13  ;;  %v9004_v39 = vrot.slane %v8999_v38, %v13348_v6 }
 0x93c   : > { %8948 = vmatpush1.bf16.msra.mxu1 %v12306_v8  ;;  %8989 = vmatpush1.bf16.msra.mxu0 %v12309_v56  ;;  %v9012_v8 = vrot.slane %v8999_v38, %v9011_v30  ;;  %v12420_v30 = vld [vmem:[%s15123_s19 + $0x70] sm:$0xff]  }
 0x93d   : > { %9429 = vmatprep.subr.bf16.mxu1 %v12314_v11  ;;  %10923 = vmatprep.subr.bf16.mxu0 %v12408_v44  ;;  %v12395_v44 = vld [vmem:[%s15121_s17 + $0x1b4] ss:$8 sps:$4 sm:$0xff]  }
 0x93f   : > { %8950 = vmatmul.mubr.bf16.vlgmr.msra.gmra.mrb[84].mxu1 %v8256_v20  ;;  %8991 = vmatmul.mubr.bf16.vlgmr.msra.gmra.mrb[52].mxu0 %v8256_v20  ;;  %v9008_v20 = vrot.slane %v8999_v38, %v14598_v24 }
 0x940   : > { %9430 = vmatpush1.bf16.msra.mxu1 %v12312_v10  ;;  %10924 = vmatpush3.bf16.msra.mxu0 %v12409_v33  ;;  %v9016_v10 = vrot.slane %v8999_v38, %v9015_v47  ;;  %v12393_v33 = vld [vmem:[%s15121_s17 + $0x1b0] ss:$8 sps:$4 sm:$0xff]  }
 0x941   : > { %9431 = vmatprep.subr.bf16.mxu1 %v12317_v17  ;;  %10925 = vmatprep.subr.bf16.mxu0 %v12410_v62  ;;  %v12398_v62 = vld [vmem:[%s15121_s17 + $0x1c4] ss:$8 sps:$4 sm:$0xff]   ;;  %v12421_v38 = vld [vmem:[%s15123_s19 + $0x30] sm:$0xff]   ;;  %v12422_v47 = vld [vmem:[%s15123_s19 + $0x78] sm:$0xff]  }
 0x944   : > { %9432 = vmatpush1.bf16.msra.mxu1 %v12315_v51  ;;  %10926 = vmatpush3.bf16.msra.mxu0 %v12411_v28  ;;  %v12396_v28 = vld [vmem:[%s15121_s17 + $0x1c0] ss:$8 sps:$4 sm:$0xff]  }
 0x945   : > { %9433 = vmatprep.subr.bf16.mxu1 %v12320_v37  ;;  %10927 = vmatprep.subr.bf16.mxu0 %v12412_v49  ;;  %v12401_v49 = vld [vmem:[%s15121_s17 + $0x1d4] ss:$8 sps:$4 sm:$0xff]  }
 0x948   : > { %9434 = vmatpush1.bf16.msra.mxu1 %v12318_v0  ;;  %10928 = vmatpush3.bf16.msra.mxu0 %v12413_v21  ;;  %v12399_v21 = vld [vmem:[%s15121_s17 + $0x1d0] ss:$8 sps:$4 sm:$0xff]  }
 0x949   : > { %9435 = vmatprep.subr.bf16.mxu1 %v12323_v1  ;;  %10929 = vmatprep.subr.bf16.mxu0 %v12414_v40  ;;  %v12404_v40 = vld [vmem:[%s15121_s17 + $0x1e4] ss:$8 sps:$4 sm:$0xff]  }
 0x94c   : > { %9436 = vmatpush1.bf16.msra.mxu1 %v12321_v14  ;;  %10930 = vmatpush3.bf16.msra.mxu0 %v12415_v61  ;;  %v12402_v61 = vld [vmem:[%s15121_s17 + $0x1e0] ss:$8 sps:$4 sm:$0xff]  }
 0x94d   : > { %9437 = vmatprep.subr.bf16.mxu1 %v12326_v25  ;;  %10931 = vmatprep.subr.bf16.mxu0 %v12416_v43  ;;  %v12407_v43 = vld [vmem:[%s15121_s17 + $0x1f4] ss:$8 sps:$4 sm:$0xff]  }
 0x950   : > { %9438 = vmatpush1.bf16.msra.mxu1 %v12324_v18  ;;  %10932 = vmatpush3.bf16.msra.mxu0 %v12417_v26  ;;  %v12405_v26 = vld [vmem:[%s15121_s17 + $0x1f0] ss:$8 sps:$4 sm:$0xff]  }
 0x951   : > { %9439 = vmatprep.subr.bf16.mxu1 %v12329_v55  ;;  %10933 = vmatprep.subr.bf16.mxu0 %v12418_v22 }
 0x954   : > { %9440 = vmatpush1.bf16.msra.mxu1 %v12327_v12  ;;  %10934 = vmatpush3.bf16.msra.mxu0 %v12419_v27 }
 0x955   : > { %9441 = vmatprep.subr.bf16.mxu1 %v12332_v34  ;;  %10935 = vmatprep.subr.bf16.mxu0 %v12420_v30 }
 0x958   : > { %9442 = vmatpush1.bf16.msra.mxu1 %v12330_v42  ;;  %10936 = vmatpush3.bf16.msra.mxu0 %v12421_v38 }
 0x959   : > { %9443 = vmatprep.subr.bf16.mxu1 %v12335_v46  ;;  %10937 = vmatprep.subr.bf16.mxu0 %v12422_v47 }
 0x95c   : > { %9444 = vmatpush1.bf16.msra.mxu1 %v12333_v5 }
 0x95d   : > { %9445 = vmatprep.subr.bf16.mxu1 %v12338_v31 }
 0x960   : > { %9446 = vmatpush1.bf16.msra.mxu1 %v12336_v52 }
 0x961   : > { %9447 = vmatprep.subr.bf16.mxu1 %v12341_v48  ;;  %v12360_v48 = vld [vmem:[%s15121_s17 + $0x100] ss:$8 sps:$4 sm:$0xff]  }
 0x964   : > { %9448 = vmatpush1.bf16.msra.mxu1 %v12339_v57 }
 0x965   : > { %9449 = vmatprep.subr.bf16.mxu1 %v12344_v7  ;;  %v12365_v7 = vld [vmem:[%s15121_s17 + $0x114] ss:$8 sps:$4 sm:$0xff]  }
 0x968   : > { %9450 = vmatpush1.bf16.msra.mxu1 %v12342_v60 }
 0x969   : > { %9451 = vmatprep.subr.bf16.mxu1 %v12347_v16  ;;  %v12363_v16 = vld [vmem:[%s15121_s17 + $0x110] ss:$8 sps:$4 sm:$0xff]  }
 0x96c   : > { %9452 = vmatpush1.bf16.msra.mxu1 %v12345_v23  ;;  %v12368_v23 = vld [vmem:[%s15121_s17 + $0x124] ss:$8 sps:$4 sm:$0xff]  }
 0x96d   : > { %9453 = vmatprep.subr.bf16.mxu1 %v12350_v9  ;;  %v12366_v9 = vld [vmem:[%s15121_s17 + $0x120] ss:$8 sps:$4 sm:$0xff]  }
 0x970   : > { %9454 = vmatpush1.bf16.msra.mxu1 %v12348_v36  ;;  %v12371_v36 = vld [vmem:[%s15121_s17 + $0x134] ss:$8 sps:$4 sm:$0xff]  }
 0x971   : > { %9455 = vmatprep.subr.bf16.mxu1 %v12353_v19  ;;  %v12369_v19 = vld [vmem:[%s15121_s17 + $0x130] ss:$8 sps:$4 sm:$0xff]  }
 0x974   : > { %9456 = vmatpush1.bf16.msra.mxu1 %v12351_v63  ;;  %v12374_v63 = vld [vmem:[%s15121_s17 + $0x144] ss:$8 sps:$4 sm:$0xff]  }
 0x975   : > { %9457 = vmatprep.subr.bf16.mxu1 %v12356_v53  ;;  %v12377_v53 = vld [vmem:[%s15121_s17 + $0x154] ss:$8 sps:$4 sm:$0xff]  }
 0x978   : > { %9458 = vmatpush1.bf16.msra.mxu1 %v12354_v35  ;;  %v12372_v35 = vld [vmem:[%s15121_s17 + $0x140] ss:$8 sps:$4 sm:$0xff]  }
 0x979   : > { %9459 = vmatprep.subr.bf16.mxu1 %v12359_v50  ;;  %v12375_v50 = vld [vmem:[%s15121_s17 + $0x150] ss:$8 sps:$4 sm:$0xff]  }
 0x97c   : > { %9460 = vmatpush1.bf16.msra.mxu1 %v12357_v58  ;;  %v12380_v58 = vld [vmem:[%s15121_s17 + $0x164] ss:$8 sps:$4 sm:$0xff]  }
 0x97d   : > { %9470 = vmatprep.subr.bf16.mxu1 %v12362_v59  ;;  %v12378_v59 = vld [vmem:[%s15121_s17 + $0x160] ss:$8 sps:$4 sm:$0xff]  }
 0x9d2   : > { %v8549_v3 = vpop.f32.mrb[80].mxu1  ;;  %v8590_v29 = vpop.f32.mrb[48].mxu0 }
 0x9d3   : > { %v8551_v15 = vpop.f32.mrb[81].mxu1  ;;  %v8592_v32 = vpop.f32.mrb[49].mxu0 }
 0x9d4   : > { %v8553_v41 = vpop.f32.mrb[82].mxu1  ;;  %v8594_v45 = vpop.f32.mrb[50].mxu0 }
 0x9d5   : > { %v8554_v2 = vpop.f32.mrb[83].mxu1  ;;  %v8595_v54 = vpop.f32.mrb[51].mxu0  ;;  %v12389_v41 = vld [vmem:[%s15121_s17 + $0x194] ss:$8 sps:$4 sm:$0xff]   ;;  %v12387_v45 = vld [vmem:[%s15121_s17 + $0x190] ss:$8 sps:$4 sm:$0xff]  }
 0x9d6   : > { %v12392_v2 = vld [vmem:[%s15121_s17 + $0x1a4] ss:$8 sps:$4 sm:$0xff]   ;;  %v12390_v54 = vld [vmem:[%s15121_s17 + $0x1a0] ss:$8 sps:$4 sm:$0xff]  }
 0xa12   : > { %v8951_v56 = vpop.f32.mrb[84].mxu1  ;;  %v8992_v4 = vpop.f32.mrb[52].mxu0 }
 0xa13   : > { %v8952_v11 = vadd.f32 %v8951_v56, %v8549_v3  ;;  %v8993_v17 = vadd.f32 %v8992_v4, %v8590_v29  ;;  %v8953_v51 = vpop.f32.mrb[85].mxu1  ;;  %v8994_v37 = vpop.f32.mrb[53].mxu0  ;;  %v12383_v3 = vld [vmem:[%s15121_s17 + $0x174] ss:$8 sps:$4 sm:$0xff]   ;;  %v12381_v29 = vld [vmem:[%s15121_s17 + $0x170] ss:$8 sps:$4 sm:$0xff]  }
 0xa14   : > { %v8954_v0 = vadd.f32 %v8953_v51, %v8551_v15  ;;  %v8995_v1 = vadd.f32 %v8994_v37, %v8592_v32  ;;  %v8955_v14 = vpop.f32.mrb[86].mxu1  ;;  %v8996_v25 = vpop.f32.mrb[54].mxu0  ;;  %v12386_v15 = vld [vmem:[%s15121_s17 + $0x184] ss:$8 sps:$4 sm:$0xff]   ;;  %v12384_v32 = vld [vmem:[%s15121_s17 + $0x180] ss:$8 sps:$4 sm:$0xff]  }
 0xa15   : > { %v9021_v18 = vadd.f32 %v9004_v39, %v8952_v11  ;;  %v14941_v55 = vadd.f32 %v9012_v8, %v8993_v17  ;;  %v8956_v13 = vpop.f32.mrb[87].mxu1  ;;  %v8997_v12 = vpop.f32.mrb[55].mxu0  ;;  %v12423_v39 = vld [vmem:[%s15123_s19 + $0x38] sm:$0xff]   ;;  %v9097_v8 = vld [vmem:[%s15122_s18] sm:$0x3] }
 0xa16   : > { %v9022_v34 = vadd.f32 %v9008_v20, %v8954_v0  ;;  %v9024_v42 = vadd.f32 %v9016_v10, %v8995_v1  ;;  %10938 = vmatpush3.bf16.msra.mxu0 %v12423_v39  ;;  %v9422_v56 = vrot.slane %v9097_v8, %v13348_v6  ;;  %v9426_v4 = vrot.slane %v9097_v8, %v14598_v24  ;;  %v9547_v6 = vld [vmem:[%s15124_s20] sm:$0x1] }
 0xa17   : > { %v9025_v46 = vmax.f32 %v9021_v18, 0.0  ;;  %v9027_v22 = vmax.f32 %v14941_v55, 0.0 }
 0xa18   : > { %v9026_v5 = vmax.f32 %v9022_v34, 0.0  ;;  %v9028_v31 = vmax.f32 %v9024_v42, 0.0 }
 0xa19   : > { %v9029_v57 = vpack.c.bf16 %v9025_v46, %v9025_v46  ;;  %v9031_v27 = vpack.c.bf16 %v9027_v22, %v9027_v22 }
 0xa1a   : > { %v9030_v52 = vpack.c.bf16 %v9026_v5, %v9026_v5  ;;  %v9032_v60 = vpack.c.bf16 %v9028_v31, %v9028_v31 }
 0xa1c   : > { %9461 = vmatprep.mubr.bf16.mxu1 %v9030_v52 }
 0xa1d   : > { %9462 = vmatmul.mubr.bf16.vlgmr.msra.gmra.mrb[88].mxu1 %v9029_v57 }
 0xa1e   : > { %9471 = vmatpush1.bf16.msra.mxu1 %v12360_v48  ;;  %9502 = vmatprep.mubr.bf16.mxu1 %v9032_v60 }
 0xa1f   : > { %9472 = vmatprep.subr.bf16.mxu1 %v12365_v7 }
 0xa22   : > { %9473 = vmatpush1.bf16.msra.mxu1 %v12363_v16 }
 0xa23   : > { %9474 = vmatprep.subr.bf16.mxu1 %v12368_v23 }
 0xa26   : > { %9475 = vmatpush1.bf16.msra.mxu1 %v12366_v9 }
 0xa27   : > { %9476 = vmatprep.subr.bf16.mxu1 %v12371_v36 }
 0xa2a   : > { %9477 = vmatpush1.bf16.msra.mxu1 %v12369_v19 }
 0xa2b   : > { %9478 = vmatprep.subr.bf16.mxu1 %v12374_v63 }
 0xa2e   : > { %9479 = vmatpush1.bf16.msra.mxu1 %v12372_v35 }
 0xa2f   : > { %9480 = vmatprep.subr.bf16.mxu1 %v12377_v53 }
 0xa32   : > { %9481 = vmatpush1.bf16.msra.mxu1 %v12375_v50 }
 0xa33   : > { %9482 = vmatprep.subr.bf16.mxu1 %v12380_v58 }
 0xa36   : > { %9483 = vmatpush1.bf16.msra.mxu1 %v12378_v59 }
 0xa37   : > { %9484 = vmatprep.subr.bf16.mxu1 %v12383_v3 }
 0xa3a   : > { %9485 = vmatpush1.bf16.msra.mxu1 %v12381_v29 }
 0xa3b   : > { %9486 = vmatprep.subr.bf16.mxu1 %v12386_v15 }
 0xa3e   : > { %9487 = vmatpush1.bf16.msra.mxu1 %v12384_v32 }
 0xa3f   : > { %9488 = vmatprep.subr.bf16.mxu1 %v12389_v41 }
 0xa42   : > { %9489 = vmatpush1.bf16.msra.mxu1 %v12387_v45 }
 0xa43   : > { %9490 = vmatprep.subr.bf16.mxu1 %v12392_v2 }
 0xa46   : > { %9491 = vmatpush1.bf16.msra.mxu1 %v12390_v54 }
 0xa47   : > { %9492 = vmatprep.subr.bf16.mxu1 %v12395_v44 }
 0xa4a   : > { %9493 = vmatpush1.bf16.msra.mxu1 %v12393_v33 }
 0xa4b   : > { %9494 = vmatprep.subr.bf16.mxu1 %v12398_v62 }
 0xa4e   : > { %9495 = vmatpush1.bf16.msra.mxu1 %v12396_v28 }
 0xa4f   : > { %9496 = vmatprep.subr.bf16.mxu1 %v12401_v49 }
 0xa52   : > { %9497 = vmatpush1.bf16.msra.mxu1 %v12399_v21 }
 0xa53   : > { %9498 = vmatprep.subr.bf16.mxu1 %v12404_v40 }
 0xa56   : > { %9499 = vmatpush1.bf16.msra.mxu1 %v12402_v61 }
 0xa57   : > { %9500 = vmatprep.subr.bf16.mxu1 %v12407_v43 }
 0xa5a   : > { %9501 = vmatpush1.bf16.msra.mxu1 %v12405_v26 }
 0xa5d   : > { %9503 = vmatmul.mubr.bf16.vlgmr.msra.gmra.mrb[88].mxu1 %v9031_v27 }
 0xb30   : > { %v9504_v20 = vpop.f32.mrb[88].mxu1 }
 0xb31   : > { %v11495_v10 = vadd.f32 %v9504_v20, %v9422_v56  ;;  %v9506_v11 = vpop.f32.mrb[89].mxu1 }
 0xb32   : > { %v11496_v17 = vadd.f32 %v9506_v11, %v9426_v4  ;;  %v9508_v51 = vpop.f32.mrb[90].mxu1 }
 0xb33   : > { %v9511_v37 = vmax.f32 %v11495_v10, 0.0  ;;  %v9509_v0 = vpop.f32.mrb[91].mxu1 }
 0xb34   : > { %v9512_v1 = vmax.f32 %v11496_v17, 0.0 }
 0xb35   : > { %v9513_v25 = vpack.c.bf16 %v9511_v37, %v9511_v37 }
 0xb36   : > { %v9514_v14 = vpack.c.bf16 %v9512_v1, %v9512_v1 }
 0xb38   : > { %9676 = vmatprep.mubr.bf16.mxu0 %v9514_v14 }
 0xb39   : > { %9677 = vmatmul.mubr.bf16.vlgmr.msra.gmra.mrb[56].mxu0 %v9513_v25 }
 0xc0c   : > { %v10939_v18 = vpop.f32.mrb[56].mxu0 }
 0xc0d   : > { %v10940_v24 = vpop.f32.mrb[57].mxu0 }
 0xc0e   : > { %v10941_v55 = vadd.f32 %v10940_v24, %v10939_v18  ;;  %v10942_v13 = vpop.f32.mrb[58].mxu0 }
 0xc0f   : > { %v10943_v12 = vpop.f32.mrb[59].mxu0 }
 0xc10   : > { %v9679_v34 = vadd.f32 %v10941_v55, %v9547_v6 }
 0xc12   : > { %9685 = vst.msk [vmem:[%s659_s23] sm:$0x1] %vm9684_vm0, %v9679_v34 }
 0xc13   : > { %12446 = shalt.err (!%p12443_p3)
}
 0xc14   : > { %s12447_s30 = scalar_lea.hbm %s15062_s6, 16  ;;  %s12451_s23 = scalar_lea.hbm %s15125_s21, 32 }
 0xc15   : > { %p12448_p4 = scmp.ne.s32.totalorder %s15062_s6, %s12447_s30  ;;  %p12452_p9 = scmp.lt.u32.totalorder %s15062_s6, %s15125_s21 }
 0xc16   : > { %p12453_p10 = scmp.lt.u32.totalorder %s12451_s23, %s12447_s30  ;;  %p12455_p12 = scmp.lt.u32.totalorder %s12447_s30, %s15062_s6 }
 0xc17   : > { %p12449_p7 = pnand %p12448_p4, %p12650_p5 }
 0xc18   : > { %p12454_p11 = por %p12453_p10, %p12452_p9 }
 0xc19   : > { %p12450_p8 = pneg %p12449_p7 }
 0xc1a   : > { %p12456_p13 = por %p12455_p12, %p12454_p11 }
 0xc1c   : > { %p12457_p0 = pnand %p12456_p13, %p12450_p8 }
 0xc1e   : > { %12460 = shalt.err (!%p12457_p0)
}
 0xc1f   : > { %11822 = dma.vmem_to_hbm [thread:$0]  (%p12650_p5), %s15064_s22, 16, %s15062_s6, %s9687_s28  }
 0xc20 PF: > { %s15156_s3 = sld [smem:[#allocation9_spill]]  ;;  %p11828_p1 = scmp.ge.s32.totalorder %s12495_s27, 2 }
 0xc22   : > { %p11825_p2 = pnand %p11828_p1, %p12654_p6 }
 0xc26   : > { %s9711_s26 = sand.u32 1, %s15156_s3  }
 0xc27   : > { %s9712_s0 = scalar_lea.sflag [#allocation7], %s9711_s26 }
 0xc28   : > { %12478 = dma.done.wait (!%p11825_p2), %s9712_s0, 16  }
 0xc29   : > { %12480 = vsyncadd (!%p11825_p2), %s9712_s0, 4294967280  ;;  %s15158_s27 = sld [smem:[#allocation11_spill]]  ;;  %s15159_s30 = sld [smem:[#allocation10_spill]] }
 0xc2a   : > { %s15160_s26 = sld [smem:[#allocation12_spill]]  ;;  %s15161_s2 = smov %s12487_s25 }
 0xc2f   : > { %p31_p3 = scmp.ge.s32.totalorder %s15158_s27, 4   ;;  %s15162_s25 = smov %s15159_s30 }
 0xc31   :  { %33 = sbr.rel (!%p31_p3) target bundleno = 11 (0xb), region = 182 }
 0xc38   :  { %9716 = vsyncpa [#allocation7], 1 }
 0xc39   :  { %9718 = vsyncpa [#allocation7 + $0x1], 1 }

</bundles_post_ra>
